<compile_context>
chip_gen: v5e
topology: v5e:2x2
jax: 0.10.0
libtpu: 0.0.40
codegen_flags: <defaults>
</compile_context>

<pallas_src>
import functools
import math

import jax
import jax.numpy as jnp
from jax.experimental import pallas as pl
from jax.experimental.pallas import tpu as pltpu


_MATMUL_DTYPE = jnp.bfloat16        # MXU operand / activation storage dtype
_BLOCK_M = 512                      # encoder token-tile rows (1024 on v5e/v6e)
_BLOCK_M_DEC = 128                  # decoder token-tile rows (>=2 grid steps on v7x)
_BLOCK_Q = 512                      # query-tile rows for attention
_VMEM_LIMIT = 32 * 1024 * 1024      # explicit VMEM budget (safe for v7x 64 MiB)
_HEAD_PAD = 128                     # pad tiny head output dims to full lane width

_PARAMS_1D = pltpu.CompilerParams(dimension_semantics=("parallel",),
                                  vmem_limit_bytes=_VMEM_LIMIT)
_PARAMS_2D = pltpu.CompilerParams(dimension_semantics=("parallel", "parallel"),
                                  vmem_limit_bytes=_VMEM_LIMIT)
_PARAMS_NOGRID = pltpu.CompilerParams(vmem_limit_bytes=_VMEM_LIMIT)


# ----------------------------- Pallas kernels ------------------------------

def _fused_linear_kernel(*refs, activation, has_pre, has_res, has_ln, ln_eps):
    """y = act((x [+ a]) @ w + b) [+ residual] [-> LayerNorm]."""
    it = iter(refs)
    x = next(it)[...]                               # (TM, K) bf16
    if has_pre:
        x = x + next(it)[...]                       # fused positional / query add
    w = next(it)[...]                               # (K, N) bf16, resident
    b = next(it)[...]                               # (1, N) f32
    y = jnp.dot(x, w, preferred_element_type=jnp.float32) + b
    if activation == "relu":
        y = jnp.maximum(y, 0.0)
    elif activation == "sigmoid":
        y = jax.nn.sigmoid(y)
    if has_res:
        y = y + next(it)[...].astype(jnp.float32)   # fused residual add
    if has_ln:                                      # fused LayerNorm epilogue (f32)
        g = next(it)[...]
        beta = next(it)[...]
        mu = jnp.mean(y, axis=-1, keepdims=True)
        var = jnp.mean(jnp.square(y - mu), axis=-1, keepdims=True)
        y = (y - mu) * jax.lax.rsqrt(var + ln_eps) * g + beta
    o_ref = next(it)
    o_ref[...] = y.astype(o_ref.dtype)


def fused_linear(x, w, b, *, pre_add=None, residual=None, ln=None, activation=None,
                 out_dtype=_MATMUL_DTYPE, block_m=_BLOCK_M, ln_eps=1e-5):
    """act((x [+ pre_add]) @ w + b) [+ residual] [-> LN], tiled over the token axis."""
    orig_lead = x.shape[:-1]
    K = x.shape[-1]
    N = w.shape[1]
    x2 = x.reshape(-1, K)
    M = x2.shape[0]
    TM = min(M, block_m)                            # block_m is a multiple of 8
    Mp = pl.cdiv(M, TM) * TM                        # pad rows -> no ragged blocks

    def pad_rows(a):
        return jnp.pad(a, ((0, Mp - M), (0, 0))) if Mp != M else a

    inputs = [pad_rows(x2)]
    in_specs = [pl.BlockSpec((TM, K), lambda i: (i, 0))]
    has_pre = pre_add is not None
    if has_pre:
        inputs.append(pad_rows(pre_add.reshape(-1, K)))
        in_specs.append(pl.BlockSpec((TM, K), lambda i: (i, 0)))
    inputs += [w, b.reshape(1, N)]
    in_specs += [pl.BlockSpec((K, N), lambda i: (0, 0)),        # resident weight
                 pl.BlockSpec((1, N), lambda i: (0, 0))]
    has_res = residual is not None
    if has_res:
        inputs.append(pad_rows(residual.reshape(-1, N)))
        in_specs.append(pl.BlockSpec((TM, N), lambda i: (i, 0)))
    has_ln = ln is not None
    if has_ln:
        g, beta = ln
        inputs += [g.reshape(1, N), beta.reshape(1, N)]
        in_specs += [pl.BlockSpec((1, N), lambda i: (0, 0)),
                     pl.BlockSpec((1, N), lambda i: (0, 0))]

    out = pl.pallas_call(
        functools.partial(_fused_linear_kernel, activation=activation,
                          has_pre=has_pre, has_res=has_res, has_ln=has_ln,
                          ln_eps=ln_eps),
        out_shape=jax.ShapeDtypeStruct((Mp, N), out_dtype),
        grid=(Mp // TM,),
        in_specs=in_specs,
        out_specs=pl.BlockSpec((TM, N), lambda i: (i, 0)),
        compiler_params=_PARAMS_1D,
    )(*inputs)
    if Mp != M:
        out = out[:M]
    return out.reshape(orig_lead + (N,))


def _qkv_kernel(x_ref, pos_ref, wa_ref, ba_ref, wb_ref, bb_ref, *out_refs, split_a):
    """ya = (x + pos) @ wa + ba (split into `split_a` outputs); yb = x @ wb + bb."""
    x = x_ref[...]                                  # (TM, d) bf16
    xp = x + pos_ref[...]
    ya = jnp.dot(xp, wa_ref[...], preferred_element_type=jnp.float32) + ba_ref[...]
    yb = jnp.dot(x, wb_ref[...], preferred_element_type=jnp.float32) + bb_ref[...]
    na = ya.shape[-1] // split_a
    for s in range(split_a):
        out_refs[s][...] = ya[:, s * na:(s + 1) * na].astype(out_refs[s].dtype)
    out_refs[split_a][...] = yb.astype(out_refs[split_a].dtype)


def fused_qkv(x, pos, wa, ba, wb, bb, *, split_a, block_m=_BLOCK_M,
              out_dtype=_MATMUL_DTYPE):
    """One pass over x/pos producing split_a outputs of (x+pos)@wa and one of x@wb."""
    d = x.shape[-1]
    Na, Nb = wa.shape[1], wb.shape[1]
    x2 = x.reshape(-1, d)
    p2 = pos.reshape(-1, d)
    M = x2.shape[0]
    TM = min(M, block_m)
    Mp = pl.cdiv(M, TM) * TM
    if Mp != M:
        x2 = jnp.pad(x2, ((0, Mp - M), (0, 0)))
        p2 = jnp.pad(p2, ((0, Mp - M), (0, 0)))
    na = Na // split_a

    out_shape = tuple([jax.ShapeDtypeStruct((Mp, na), out_dtype)] * split_a
                      + [jax.ShapeDtypeStruct((Mp, Nb), out_dtype)])
    out_specs = tuple([pl.BlockSpec((TM, na), lambda i: (i, 0))] * split_a
                      + [pl.BlockSpec((TM, Nb), lambda i: (i, 0))])
    outs = pl.pallas_call(
        functools.partial(_qkv_kernel, split_a=split_a),
        out_shape=out_shape,
        grid=(Mp // TM,),
        in_specs=[pl.BlockSpec((TM, d), lambda i: (i, 0)),
                  pl.BlockSpec((TM, d), lambda i: (i, 0)),
                  pl.BlockSpec((d, Na), lambda i: (0, 0)),
                  pl.BlockSpec((1, Na), lambda i: (0, 0)),
                  pl.BlockSpec((d, Nb), lambda i: (0, 0)),
                  pl.BlockSpec((1, Nb), lambda i: (0, 0))],
        out_specs=out_specs,
        compiler_params=_PARAMS_1D,
    )(x2, p2, wa, ba.reshape(1, Na), wb, bb.reshape(1, Nb))
    if Mp != M:
        outs = [o[:M] for o in outs]
    return tuple(outs)


def _ffn_kernel(x_ref, w1_ref, b1_ref, w2_ref, b2_ref, g_ref, beta_ref, o_ref, *, eps):
    """LayerNorm(x + relu(x@w1+b1)@w2 + b2): the dff-wide intermediate never leaves VMEM."""
    x = x_ref[...]                                  # (TM, d) bf16
    h = jnp.dot(x, w1_ref[...], preferred_element_type=jnp.float32) + b1_ref[...]
    h = jnp.maximum(h, 0.0).astype(x.dtype)         # (TM, dff) bf16, VMEM-resident
    y = jnp.dot(h, w2_ref[...], preferred_element_type=jnp.float32) + b2_ref[...]
    y = y + x.astype(jnp.float32)                   # residual
    mu = jnp.mean(y, axis=-1, keepdims=True)
    var = jnp.mean(jnp.square(y - mu), axis=-1, keepdims=True)
    y = (y - mu) * jax.lax.rsqrt(var + eps) * g_ref[...] + beta_ref[...]
    o_ref[...] = y.astype(o_ref.dtype)


def fused_ffn(x, w1, b1, w2, b2, ln, *, block_m=_BLOCK_M, ln_eps=1e-5,
              out_dtype=_MATMUL_DTYPE):
    d = x.shape[-1]
    dff = w1.shape[1]
    x2 = x.reshape(-1, d)
    M = x2.shape[0]
    TM = min(M, block_m)
    Mp = pl.cdiv(M, TM) * TM
    if Mp != M:
        x2 = jnp.pad(x2, ((0, Mp - M), (0, 0)))
    g, beta = ln
    out = pl.pallas_call(
        functools.partial(_ffn_kernel, eps=ln_eps),
        out_shape=jax.ShapeDtypeStruct((Mp, d), out_dtype),
        grid=(Mp // TM,),
        in_specs=[pl.BlockSpec((TM, d), lambda i: (i, 0)),
                  pl.BlockSpec((d, dff), lambda i: (0, 0)),
                  pl.BlockSpec((1, dff), lambda i: (0, 0)),
                  pl.BlockSpec((dff, d), lambda i: (0, 0)),
                  pl.BlockSpec((1, d), lambda i: (0, 0)),
                  pl.BlockSpec((1, d), lambda i: (0, 0)),
                  pl.BlockSpec((1, d), lambda i: (0, 0))],
        out_specs=pl.BlockSpec((TM, d), lambda i: (i, 0)),
        compiler_params=_PARAMS_1D,
    )(x2, w1, b1.reshape(1, dff), w2, b2.reshape(1, d),
      g.reshape(1, d), beta.reshape(1, d))
    if Mp != M:
        out = out[:M]
    return out.reshape(x.shape[:-1] + (d,))


def _attention_kernel(q_ref, k_ref, v_ref, bias_ref, o_ref, *, num_heads, scale):
    q = q_ref[0]                                    # (TQ, d) bf16
    k = k_ref[0]                                    # (Lk, d) bf16, resident across q-tiles
    v = v_ref[0]                                    # (Lk, d) bf16
    bias = bias_ref[0]                              # (1, Lk) f32 additive mask bias
    d = q.shape[-1]
    dh = d // num_heads
    outs = []
    for h in range(num_heads):                      # static unroll over heads
        qh = q[:, h * dh:(h + 1) * dh] * scale      # scale folded into q (TQ*dh muls)
        kh = k[:, h * dh:(h + 1) * dh]
        vh = v[:, h * dh:(h + 1) * dh]
        s = jax.lax.dot_general(qh, kh, (((1,), (1,)), ((), ())),
                                preferred_element_type=jnp.float32)   # (TQ, Lk)
        s = s + bias
        s = s - jnp.max(s, axis=-1, keepdims=True)
        p = jnp.exp(s)
        inv = pl.reciprocal(jnp.sum(p, axis=-1, keepdims=True), approx=True)
        oh = jnp.dot(p.astype(vh.dtype), vh, preferred_element_type=jnp.float32)
        outs.append((oh * inv).astype(o_ref.dtype))  # normalize (TQ, dh), cast to bf16
    o_ref[0] = jnp.concatenate(outs, axis=-1)        # lane-dense (TQ, d) bf16


def attention(q, k, v, bias, num_heads, *, block_q=_BLOCK_Q):
    """q: (B, Lq, d), k/v: (B, Lk, d) bf16, bias: (B, 1, Lk) f32 additive mask."""
    B, Lq, d = q.shape
    Lk = k.shape[1]
    TQ = min(Lq, block_q)
    Lq_pad = pl.cdiv(Lq, TQ) * TQ                    # pad queries -> dense tiles
    if Lq_pad != Lq:
        q = jnp.pad(q, ((0, 0), (0, Lq_pad - Lq), (0, 0)))
    scale = 1.0 / math.sqrt(d // num_heads)
    out = pl.pallas_call(
        functools.partial(_attention_kernel, num_heads=num_heads, scale=scale),
        out_shape=jax.ShapeDtypeStruct((B, Lq_pad, d), q.dtype),
        grid=(B, Lq_pad // TQ),
        in_specs=[
            pl.BlockSpec((1, TQ, d), lambda b, qi: (b, qi, 0)),
            pl.BlockSpec((1, Lk, d), lambda b, qi: (b, 0, 0)),
            pl.BlockSpec((1, Lk, d), lambda b, qi: (b, 0, 0)),
            pl.BlockSpec((1, 1, Lk), lambda b, qi: (b, 0, 0)),
        ],
        out_specs=pl.BlockSpec((1, TQ, d), lambda b, qi: (b, qi, 0)),
        compiler_params=_PARAMS_2D,
    )(q, k, v, bias)
    if Lq_pad != Lq:
        out = out[:, :Lq, :]
    return out


def _heads_kernel(hs_ref, g_ref, b_ref, cw_ref, cb_ref,
                  w1_ref, b1_ref, w2_ref, b2_ref, w3_ref, b3_ref,
                  logits_ref, boxes_ref, *, eps):
    """decoder LayerNorm + class head + 3-layer bbox MLP, all weights resident."""
    x = hs_ref[...].astype(jnp.float32)
    mu = jnp.mean(x, axis=-1, keepdims=True)
    var = jnp.mean(jnp.square(x - mu), axis=-1, keepdims=True)
    h = (x - mu) * jax.lax.rsqrt(var + eps) * g_ref[...] + b_ref[...]
    hb = h.astype(jnp.bfloat16)
    logits_ref[...] = (jnp.dot(hb, cw_ref[...], preferred_element_type=jnp.float32)
                       + cb_ref[...]).astype(logits_ref.dtype)
    a = jnp.maximum(jnp.dot(hb, w1_ref[...], preferred_element_type=jnp.float32)
                    + b1_ref[...], 0.0).astype(jnp.bfloat16)
    a = jnp.maximum(jnp.dot(a, w2_ref[...], preferred_element_type=jnp.float32)
                    + b2_ref[...], 0.0).astype(jnp.bfloat16)
    boxes_ref[...] = jax.nn.sigmoid(
        jnp.dot(a, w3_ref[...], preferred_element_type=jnp.float32)
        + b3_ref[...]).astype(boxes_ref.dtype)


def prediction_heads(hs, p, *, ln_eps=1e-5):
    """Single grid-free pallas_call for decoder_norm + class head + bbox MLP."""
    M, d = hs.shape
    g, beta = p["transformer"]["decoder_norm"]
    n_pad = p["class_w"].shape[1]
    logits, boxes = pl.pallas_call(
        functools.partial(_heads_kernel, eps=ln_eps),
        out_shape=(jax.ShapeDtypeStruct((M, n_pad), jnp.float32),
                   jax.ShapeDtypeStruct((M, p["bbox_w3"].shape[1]), jnp.float32)),
        compiler_params=_PARAMS_NOGRID,
    )(hs, g.reshape(1, d), beta.reshape(1, d),
      p["class_w"], p["class_b"].reshape(1, -1),
      p["bbox_w1"], p["bbox_b1"].reshape(1, -1),
      p["bbox_w2"], p["bbox_b2"].reshape(1, -1),
      p["bbox_w3"], p["bbox_b3"].reshape(1, -1))
    return logits, boxes


# ------------------------------ model pieces -------------------------------

def encoder_layer(src, pos, mem_bias, p, num_heads, B, L, d):
    # fused QKV projection: q/k from (src + pos), v from src, one HBM pass
    q, k, v = fused_qkv(src, pos, p["wqk"], p["bqk"], p["wv"], p["bv"], split_a=2)
    attn = attention(q.reshape(B, L, d), k.reshape(B, L, d), v.reshape(B, L, d),
                     mem_bias, num_heads)
    # out-projection + residual + LayerNorm fused
    src = fused_linear(attn.reshape(B * L, d), p["wo"], p["bo"],
                       residual=src, ln=p["ln1"])
    # fused FFN: relu(x@w1)@w2 + residual + LN, dff intermediate stays in VMEM
    src = fused_ffn(src, p["w1"], p["b1"], p["w2"], p["b2"], p["ln2"])
    return src


def decoder_layer(tgt, memory, pos, qpos, mem_bias, self_bias, p, num_heads,
                  B, Q, L, d):
    # self-attention (queries)
    q, k, v = fused_qkv(tgt, qpos, p["sa_wqk"], p["sa_bqk"], p["sa_wv"], p["sa_bv"],
                        split_a=2, block_m=_BLOCK_M_DEC)
    sa = attention(q.reshape(B, Q, d), k.reshape(B, Q, d), v.reshape(B, Q, d),
                   self_bias, num_heads)
    tgt = fused_linear(sa.reshape(B * Q, d), p["sa_wo"], p["sa_bo"],
                       residual=tgt, ln=p["ln1"], block_m=_BLOCK_M_DEC)
    # cross-attention: q from (tgt + qpos); fused K/V projection on encoder memory
    qc = fused_linear(tgt, p["ca_wq"], p["ca_bq"], pre_add=qpos, block_m=_BLOCK_M_DEC)
    kc, vc = fused_qkv(memory, pos, p["ca_wk"], p["ca_bk"], p["ca_wv"], p["ca_bv"],
                       split_a=1)
    ca = attention(qc.reshape(B, Q, d), kc.reshape(B, L, d), vc.reshape(B, L, d),
                   mem_bias, num_heads)
    tgt = fused_linear(ca.reshape(B * Q, d), p["ca_wo"], p["ca_bo"],
                       residual=tgt, ln=p["ln2"], block_m=_BLOCK_M_DEC)
    # FFN
    tgt = fused_ffn(tgt, p["w1"], p["b1"], p["w2"], p["b2"], p["ln3"],
                    block_m=_BLOCK_M_DEC)
    return tgt


def position_embedding_sine(mask, num_pos_feats, temperature=10000.0, scale=2 * math.pi):
    """mask: (B, H, W) bool, True = padded. Returns (B, H, W, 2*num_pos_feats) f32."""
    not_mask = (~mask).astype(jnp.float32)
    y_embed = jnp.cumsum(not_mask, axis=1)
    x_embed = jnp.cumsum(not_mask, axis=2)
    eps = 1e-6
    y_embed = y_embed / (y_embed[:, -1:, :] + eps) * scale
    x_embed = x_embed / (x_embed[:, :, -1:] + eps) * scale

    dim_t = jnp.arange(num_pos_feats, dtype=jnp.float32)
    dim_t = temperature ** (2.0 * jnp.floor(dim_t / 2.0) / num_pos_feats)

    pos_x = x_embed[:, :, :, None] / dim_t
    pos_y = y_embed[:, :, :, None] / dim_t
    B, H, W = mask.shape
    pos_x = jnp.stack((jnp.sin(pos_x[:, :, :, 0::2]), jnp.cos(pos_x[:, :, :, 1::2])),
                      axis=4).reshape(B, H, W, num_pos_feats)
    pos_y = jnp.stack((jnp.sin(pos_y[:, :, :, 0::2]), jnp.cos(pos_y[:, :, :, 1::2])),
                      axis=4).reshape(B, H, W, num_pos_feats)
    return jnp.concatenate([pos_y, pos_x], axis=3)


def backbone_forward(x_nchw, mask, p, patch):
    """Simplified synthetic backbone: 4x4 patchify conv + ReLU, mask downsampled."""
    # TODO(synk): the reference Backbone (ResNet) is not provided; a patchify
    # conv stand-in producing `backbone_channels` features is used instead.
    B, C, H, W = x_nchw.shape
    x = jnp.transpose(x_nchw, (0, 2, 3, 1))                                 # NHWC
    x = x.reshape(B, H // patch, patch, W // patch, patch, C)
    x = jnp.transpose(x, (0, 1, 3, 2, 4, 5)).reshape(
        B, (H // patch) * (W // patch), patch * patch * C).astype(_MATMUL_DTYPE)
    feat = fused_linear(x, p["w"], p["b"], activation="relu")               # (B, HW, Cb)
    mask_ds = mask[:, ::patch, ::patch]
    return feat, mask_ds


def detr_forward(x_nchw, mask, params, cfg):
    d = cfg["d_model"]
    nh = cfg["num_heads"]
    Q = cfg["num_queries"]

    # backbone -> features['0']
    feat, mask_ds = backbone_forward(x_nchw, mask, params["backbone"], cfg["patch"])
    B, HW, _ = feat.shape

    # PositionEmbeddingSine(num_pos_feats=d//2, normalize=True)
    pos = position_embedding_sine(mask_ds, d // 2)                          # (B, Hf, Wf, d)
    pos_tok = pos.reshape(B * HW, d).astype(_MATMUL_DTYPE)                  # reused per layer

    # input_proj (1x1 conv == per-token linear)
    src = fused_linear(feat, params["input_proj_w"], params["input_proj_b"])
    src = src.reshape(B * HW, d)

    # small additive mask bias (B, 1, HW) instead of a (B*H, Lq, Lk) tensor
    mask_flat = mask_ds.reshape(B, HW)
    mem_bias = jnp.where(mask_flat, -1e9, 0.0).astype(jnp.float32)[:, None, :]
    self_bias = jnp.zeros((B, 1, Q), jnp.float32)                           # decoder self-attn

    memory = src
    for lp in params["transformer"]["encoder_layers"]:
        memory = encoder_layer(memory, pos_tok, mem_bias, lp, nh, B, HW, d)

    qpos = jnp.broadcast_to(params["query_embed"][None], (B, Q, d))
    qpos = qpos.reshape(B * Q, d).astype(_MATMUL_DTYPE)
    tgt = jnp.zeros((B * Q, d), _MATMUL_DTYPE)
    for lp in params["transformer"]["decoder_layers"]:
        tgt = decoder_layer(tgt, memory, pos_tok, qpos, mem_bias, self_bias,
                            lp, nh, B, Q, HW, d)

    # decoder LayerNorm + class head + bbox MLP fused in one pallas_call
    n_cls = cfg["num_classes"] + 1
    logits_pad, boxes_pad = prediction_heads(tgt, params)
    logits = logits_pad[:, :n_cls].reshape(B, Q, n_cls)
    coords = boxes_pad[:, :4].reshape(B, Q, 4)

    return {"pred_labels": logits, "pred_boxes": coords}


# --------------------------- parameter creation -----------------------------

def init_linear_params(key, in_dim, out_dim):
    kw, kb = jax.random.split(key)
    bound = 1.0 / math.sqrt(in_dim)
    w = jax.random.uniform(kw, (in_dim, out_dim), jnp.float32, -bound, bound)
    b = jax.random.uniform(kb, (out_dim,), jnp.float32, -bound, bound)
    return w.astype(_MATMUL_DTYPE), b                                       # bf16 weight, f32 bias


def init_ln_params(d):
    return (jnp.ones((d,), jnp.float32), jnp.zeros((d,), jnp.float32))


def _pad_head(w, b, multiple=_HEAD_PAD):
    """Zero-pad a head's output columns to a lane-dense multiple of 128."""
    n = w.shape[1]
    n_pad = ((n + multiple - 1) // multiple) * multiple
    wp = jnp.zeros((w.shape[0], n_pad), w.dtype).at[:, :n].set(w)
    bp = jnp.zeros((n_pad,), b.dtype).at[:n].set(b)
    return wp, bp


def init_encoder_layer(key, d, dff):
    ks = jax.random.split(key, 5)
    wqk, bqk = init_linear_params(ks[0], d, 2 * d)          # fused Q/K projection
    wv, bv = init_linear_params(ks[1], d, d)
    wo, bo = init_linear_params(ks[2], d, d)
    w1, b1 = init_linear_params(ks[3], d, dff)
    w2, b2 = init_linear_params(ks[4], dff, d)
    return {"wqk": wqk, "bqk": bqk, "wv": wv, "bv": bv, "wo": wo, "bo": bo,
            "ln1": init_ln_params(d), "ln2": init_ln_params(d),
            "w1": w1, "b1": b1, "w2": w2, "b2": b2}


def init_decoder_layer(key, d, dff):
    ks = jax.random.split(key, 9)
    sa_wqk, sa_bqk = init_linear_params(ks[0], d, 2 * d)
    sa_wv, sa_bv = init_linear_params(ks[1], d, d)
    sa_wo, sa_bo = init_linear_params(ks[2], d, d)
    ca_wq, ca_bq = init_linear_params(ks[3], d, d)
    ca_wk, ca_bk = init_linear_params(ks[4], d, d)
    ca_wv, ca_bv = init_linear_params(ks[5], d, d)
    ca_wo, ca_bo = init_linear_params(ks[6], d, d)
    w1, b1 = init_linear_params(ks[7], d, dff)
    w2, b2 = init_linear_params(ks[8], dff, d)
    return {"sa_wqk": sa_wqk, "sa_bqk": sa_bqk, "sa_wv": sa_wv, "sa_bv": sa_bv,
            "sa_wo": sa_wo, "sa_bo": sa_bo,
            "ca_wq": ca_wq, "ca_bq": ca_bq, "ca_wk": ca_wk, "ca_bk": ca_bk,
            "ca_wv": ca_wv, "ca_bv": ca_bv, "ca_wo": ca_wo, "ca_bo": ca_bo,
            "ln1": init_ln_params(d), "ln2": init_ln_params(d), "ln3": init_ln_params(d),
            "w1": w1, "b1": b1, "w2": w2, "b2": b2}


def init_detr_params(key, cfg):
    d, dff = cfg["d_model"], cfg["dim_feedforward"]
    ks = jax.random.split(key, 10)

    bb_w, bb_b = init_linear_params(ks[0], 3 * cfg["patch"] * cfg["patch"],
                                    cfg["backbone_channels"])
    ip_w, ip_b = init_linear_params(ks[1], cfg["backbone_channels"], d)

    enc_keys = jax.random.split(ks[2], cfg["num_encoder_layers"])
    dec_keys = jax.random.split(ks[3], cfg["num_decoder_layers"])
    transformer = {
        "encoder_layers": [init_encoder_layer(k, d, dff) for k in enc_keys],
        "decoder_layers": [init_decoder_layer(k, d, dff) for k in dec_keys],
        "decoder_norm": init_ln_params(d),
    }

    query_embed = jax.random.normal(ks[4], (cfg["num_queries"], d), jnp.float32)

    n_cls = cfg["num_classes"] + 1
    cls_w, _ = init_linear_params(ks[5], d, n_cls)
    cls_b = jnp.full((n_cls,), -4.0, jnp.float32)            # constant_(bias, -4.0)
    cls_w, cls_b = _pad_head(cls_w, cls_b)

    bw1, bb1 = init_linear_params(ks[6], d, d)
    bw2, bb2 = init_linear_params(ks[7], d, d)
    bw3 = jnp.zeros((d, 4), _MATMUL_DTYPE)                   # constant_(weight, 0)
    bb3 = jnp.zeros((4,), jnp.float32)                       # constant_(bias, 0)
    bw3, bb3 = _pad_head(bw3, bb3)

    return {
        "backbone": {"w": bb_w, "b": bb_b},
        "input_proj_w": ip_w, "input_proj_b": ip_b,
        "transformer": transformer,
        "query_embed": query_embed,
        "class_w": cls_w, "class_b": cls_b,
        "bbox_w1": bw1, "bbox_b1": bb1,
        "bbox_w2": bw2, "bbox_b2": bb2,
        "bbox_w3": bw3, "bbox_b3": bb3,
    }


# ---------------------------------- main ------------------------------------

if __name__ == "__main__":
    cfg = {
        "d_model": 32,
        "num_heads": 4,
        "dim_feedforward": 64,
        "num_encoder_layers": 2,
        "num_decoder_layers": 2,
        "num_queries": 8,
        "num_classes": 4,
        "backbone_channels": 8,
        "patch": 4,
    }

    key = jax.random.PRNGKey(0)
    k_img, k_params = jax.random.split(key)

    B, H, W = 2, 16, 16
    x = jax.random.normal(k_img, (B, 3, H, W), jnp.float32)          # NCHW image
    mask = jnp.zeros((B, H, W), dtype=bool)
    mask = mask.at[1, :, 12:].set(True)                              # pad right strip of sample 1

    params = init_detr_params(k_params, cfg)

    fwd = jax.jit(lambda img, msk, prm: detr_forward(img, msk, prm, cfg))
    out = fwd(x, mask, params)
    jax.block_until_ready(out)

    assert out["pred_labels"].shape == (B, cfg["num_queries"], cfg["num_classes"] + 1)
    assert out["pred_boxes"].shape == (B, cfg["num_queries"], 4)
    print("KERNEL_OK")
</pallas_src>

<mosaic_0001>
module attributes {stable_mosaic.version = 11 : i64} {
  func.func @_fused_linear_kernel(%arg0: i32, %arg1: memref<32x48xbf16, #tpu.memory_space<vmem>>, %arg2: memref<48x8xbf16, #tpu.memory_space<vmem>>, %arg3: memref<1x8xf32, #tpu.memory_space<vmem>>, %arg4: memref<32x8xbf16, #tpu.memory_space<vmem>>) attributes {dimension_semantics = [#tpu.dimension_semantics<parallel>], iteration_bounds = array<i64: 1>, scalar_prefetch = 0 : i64, scratch_operands = 0 : i64, tpu.core_type = #tpu.core_type<tc>, window_params = [{transform_indices = @transform_0, window_bounds = array<i64: 32, 48>}, {pipeline_mode = #tpu.pipeline_mode<synchronous>, transform_indices = @transform_1, window_bounds = array<i64: 48, 8>}, {pipeline_mode = #tpu.pipeline_mode<synchronous>, transform_indices = @transform_2, window_bounds = array<i64: 1, 8>}, {transform_indices = @transform_3, window_bounds = array<i64: 32, 8>}]} {
    %c0 = arith.constant 0 : index
    %c0_0 = arith.constant 0 : index
    %0 = vector.load %arg1[%c0, %c0_0] : memref<32x48xbf16, #tpu.memory_space<vmem>>, vector<32x48xbf16>
    %c0_1 = arith.constant 0 : index
    %c0_2 = arith.constant 0 : index
    %1 = vector.load %arg2[%c0_1, %c0_2] : memref<48x8xbf16, #tpu.memory_space<vmem>>, vector<48x8xbf16>
    %c0_3 = arith.constant 0 : index
    %c0_4 = arith.constant 0 : index
    %2 = vector.load %arg3[%c0_3, %c0_4] : memref<1x8xf32, #tpu.memory_space<vmem>>, vector<1x8xf32>
    %cst = arith.constant dense<0.000000e+00> : vector<32x8xf32>
    %3 = tpu.matmul %0, %1, %cst {dimension_numbers = #tpu.dot_dimension_numbers<[1], [0], [0], [1], [0, 0, 1, 1], [], []>} : vector<32x48xbf16>, vector<48x8xbf16>, vector<32x8xf32> -> vector<32x8xf32>
    %4 = vector.broadcast %2 : vector<1x8xf32> to vector<32x8xf32>
    %5 = arith.addf %3, %4 : vector<32x8xf32>
    %cst_5 = arith.constant 0.000000e+00 : f32
    %6 = vector.broadcast %cst_5 : f32 to vector<32x8xf32>
    %7 = arith.maximumf %5, %6 : vector<32x8xf32>
    %8 = arith.truncf %7 : vector<32x8xf32> to vector<32x8xbf16>
    %c0_6 = arith.constant 0 : index
    %c0_7 = arith.constant 0 : index
    %9 = vector.load %arg4[%c0_6, %c0_7] : memref<32x8xbf16, #tpu.memory_space<vmem>>, vector<32x8xbf16>
    tpu.vector_store %arg4[%c0_6, %c0_7], %8 {strides = array<i32>} : memref<32x8xbf16, #tpu.memory_space<vmem>>, vector<32x8xbf16>,
    return
  }
  func.func @transform_0(%arg0: i32) -> (i32, i32) {
    %c0_i32 = arith.constant 0 : i32
    %c0_i32_0 = arith.constant 0 : i32
    return %arg0, %c0_i32 : i32, i32
  }
  func.func @transform_1(%arg0: i32) -> (i32, i32) {
    %c0_i32 = arith.constant 0 : i32
    %c0_i32_0 = arith.constant 0 : i32
    %c0_i32_1 = arith.constant 0 : i32
    return %c0_i32, %c0_i32_0 : i32, i32
  }
  func.func @transform_2(%arg0: i32) -> (i32, i32) {
    %c0_i32 = arith.constant 0 : i32
    %c0_i32_0 = arith.constant 0 : i32
    %c0_i32_1 = arith.constant 0 : i32
    return %c0_i32, %c0_i32_0 : i32, i32
  }
  func.func @transform_3(%arg0: i32) -> (i32, i32) {
    %c0_i32 = arith.constant 0 : i32
    %c0_i32_0 = arith.constant 0 : i32
    return %arg0, %c0_i32 : i32, i32
  }
}

module attributes {stable_mosaic.version = 11 : i64} {
  func.func @_fused_linear_kernel(%arg0: i32, %arg1: memref<32x8xbf16, #tpu.memory_space<vmem>>, %arg2: memref<8x32xbf16, #tpu.memory_space<vmem>>, %arg3: memref<1x32xf32, #tpu.memory_space<vmem>>, %arg4: memref<32x32xbf16, #tpu.memory_space<vmem>>) attributes {dimension_semantics = [#tpu.dimension_semantics<parallel>], iteration_bounds = array<i64: 1>, scalar_prefetch = 0 : i64, scratch_operands = 0 : i64, tpu.core_type = #tpu.core_type<tc>, window_params = [{transform_indices = @transform_0, window_bounds = array<i64: 32, 8>}, {pipeline_mode = #tpu.pipeline_mode<synchronous>, transform_indices = @transform_1, window_bounds = array<i64: 8, 32>}, {pipeline_mode = #tpu.pipeline_mode<synchronous>, transform_indices = @transform_2, window_bounds = array<i64: 1, 32>}, {transform_indices = @transform_3, window_bounds = array<i64: 32, 32>}]} {
    %c0 = arith.constant 0 : index
    %c0_0 = arith.constant 0 : index
    %0 = vector.load %arg1[%c0, %c0_0] : memref<32x8xbf16, #tpu.memory_space<vmem>>, vector<32x8xbf16>
    %c0_1 = arith.constant 0 : index
    %c0_2 = arith.constant 0 : index
    %1 = vector.load %arg2[%c0_1, %c0_2] : memref<8x32xbf16, #tpu.memory_space<vmem>>, vector<8x32xbf16>
    %c0_3 = arith.constant 0 : index
    %c0_4 = arith.constant 0 : index
    %2 = vector.load %arg3[%c0_3, %c0_4] : memref<1x32xf32, #tpu.memory_space<vmem>>, vector<1x32xf32>
    %cst = arith.constant dense<0.000000e+00> : vector<32x32xf32>
    %3 = tpu.matmul %0, %1, %cst {dimension_numbers = #tpu.dot_dimension_numbers<[1], [0], [0], [1], [0, 0, 1, 1], [], []>} : vector<32x8xbf16>, vector<8x32xbf16>, vector<32x32xf32> -> vector<32x32xf32>
    %4 = vector.broadcast %2 : vector<1x32xf32> to vector<32x32xf32>
    %5 = arith.addf %3, %4 : vector<32x32xf32>
    %6 = arith.truncf %5 : vector<32x32xf32> to vector<32x32xbf16>
    %c0_5 = arith.constant 0 : index
    %c0_6 = arith.constant 0 : index
    %7 = vector.load %arg4[%c0_5, %c0_6] : memref<32x32xbf16, #tpu.memory_space<vmem>>, vector<32x32xbf16>
    tpu.vector_store %arg4[%c0_5, %c0_6], %6 {strides = array<i32>} : memref<32x32xbf16, #tpu.memory_space<vmem>>, vector<32x32xbf16>,
    return
  }
  func.func @transform_0(%arg0: i32) -> (i32, i32) {
    %c0_i32 = arith.constant 0 : i32
    %c0_i32_0 = arith.constant 0 : i32
    return %arg0, %c0_i32 : i32, i32
  }
  func.func @transform_1(%arg0: i32) -> (i32, i32) {
    %c0_i32 = arith.constant 0 : i32
    %c0_i32_0 = arith.constant 0 : i32
    %c0_i32_1 = arith.constant 0 : i32
    return %c0_i32, %c0_i32_0 : i32, i32
  }
  func.func @transform_2(%arg0: i32) -> (i32, i32) {
    %c0_i32 = arith.constant 0 : i32
    %c0_i32_0 = arith.constant 0 : i32
    %c0_i32_1 = arith.constant 0 : i32
    return %c0_i32, %c0_i32_0 : i32, i32
  }
  func.func @transform_3(%arg0: i32) -> (i32, i32) {
    %c0_i32 = arith.constant 0 : i32
    %c0_i32_0 = arith.constant 0 : i32
    return %arg0, %c0_i32 : i32, i32
  }
}

module attributes {stable_mosaic.version = 11 : i64} {
  func.func @_qkv_kernel(%arg0: i32, %arg1: memref<32x32xbf16, #tpu.memory_space<vmem>>, %arg2: memref<32x32xbf16, #tpu.memory_space<vmem>>, %arg3: memref<32x64xbf16, #tpu.memory_space<vmem>>, %arg4: memref<1x64xf32, #tpu.memory_space<vmem>>, %arg5: memref<32x32xbf16, #tpu.memory_space<vmem>>, %arg6: memref<1x32xf32, #tpu.memory_space<vmem>>, %arg7: memref<32x32xbf16, #tpu.memory_space<vmem>>, %arg8: memref<32x32xbf16, #tpu.memory_space<vmem>>, %arg9: memref<32x32xbf16, #tpu.memory_space<vmem>>) attributes {dimension_semantics = [#tpu.dimension_semantics<parallel>], iteration_bounds = array<i64: 1>, scalar_prefetch = 0 : i64, scratch_operands = 0 : i64, tpu.core_type = #tpu.core_type<tc>, window_params = [{transform_indices = @transform_0, window_bounds = array<i64: 32, 32>}, {transform_indices = @transform_1, window_bounds = array<i64: 32, 32>}, {pipeline_mode = #tpu.pipeline_mode<synchronous>, transform_indices = @transform_2, window_bounds = array<i64: 32, 64>}, {pipeline_mode = #tpu.pipeline_mode<synchronous>, transform_indices = @transform_3, window_bounds = array<i64: 1, 64>}, {pipeline_mode = #tpu.pipeline_mode<synchronous>, transform_indices = @transform_4, window_bounds = array<i64: 32, 32>}, {pipeline_mode = #tpu.pipeline_mode<synchronous>, transform_indices = @transform_5, window_bounds = array<i64: 1, 32>}, {transform_indices = @transform_6, window_bounds = array<i64: 32, 32>}, {transform_indices = @transform_7, window_bounds = array<i64: 32, 32>}, {transform_indices = @transform_8, window_bounds = array<i64: 32, 32>}]} {
    %c0 = arith.constant 0 : index
    %c0_0 = arith.constant 0 : index
    %0 = vector.load %arg1[%c0, %c0_0] : memref<32x32xbf16, #tpu.memory_space<vmem>>, vector<32x32xbf16>
    %c0_1 = arith.constant 0 : index
    %c0_2 = arith.constant 0 : index
    %1 = vector.load %arg2[%c0_1, %c0_2] : memref<32x32xbf16, #tpu.memory_space<vmem>>, vector<32x32xbf16>
    %2 = arith.addf %0, %1 : vector<32x32xbf16>
    %c0_3 = arith.constant 0 : index
    %c0_4 = arith.constant 0 : index
    %3 = vector.load %arg3[%c0_3, %c0_4] : memref<32x64xbf16, #tpu.memory_space<vmem>>, vector<32x64xbf16>
    %cst = arith.constant dense<0.000000e+00> : vector<32x64xf32>
    %4 = tpu.matmul %2, %3, %cst {dimension_numbers = #tpu.dot_dimension_numbers<[1], [0], [0], [1], [0, 0, 1, 1], [], []>} : vector<32x32xbf16>, vector<32x64xbf16>, vector<32x64xf32> -> vector<32x64xf32>
    %c0_5 = arith.constant 0 : index
    %c0_6 = arith.constant 0 : index
    %5 = vector.load %arg4[%c0_5, %c0_6] : memref<1x64xf32, #tpu.memory_space<vmem>>, vector<1x64xf32>
    %6 = vector.broadcast %5 : vector<1x64xf32> to vector<32x64xf32>
    %7 = arith.addf %4, %6 : vector<32x64xf32>
    %c0_7 = arith.constant 0 : index
    %c0_8 = arith.constant 0 : index
    %8 = vector.load %arg5[%c0_7, %c0_8] : memref<32x32xbf16, #tpu.memory_space<vmem>>, vector<32x32xbf16>
    %cst_9 = arith.constant dense<0.000000e+00> : vector<32x32xf32>
    %9 = tpu.matmul %0, %8, %cst_9 {dimension_numbers = #tpu.dot_dimension_numbers<[1], [0], [0], [1], [0, 0, 1, 1], [], []>} : vector<32x32xbf16>, vector<32x32xbf16>, vector<32x32xf32> -> vector<32x32xf32>
    %c0_10 = arith.constant 0 : index
    %c0_11 = arith.constant 0 : index
    %10 = vector.load %arg6[%c0_10, %c0_11] : memref<1x32xf32, #tpu.memory_space<vmem>>, vector<1x32xf32>
    %11 = vector.broadcast %10 : vector<1x32xf32> to vector<32x32xf32>
    %12 = arith.addf %9, %11 : vector<32x32xf32>
    %13 = vector.extract_strided_slice %7 {offsets = [0, 0], sizes = [32, 32], strides = [1, 1]} : vector<32x64xf32> to vector<32x32xf32>
    %14 = arith.truncf %13 : vector<32x32xf32> to vector<32x32xbf16>
    %c0_12 = arith.constant 0 : index
    %c0_13 = arith.constant 0 : index
    %15 = vector.load %arg7[%c0_12, %c0_13] : memref<32x32xbf16, #tpu.memory_space<vmem>>, vector<32x32xbf16>
    tpu.vector_store %arg7[%c0_12, %c0_13], %14 {strides = array<i32>} : memref<32x32xbf16, #tpu.memory_space<vmem>>, vector<32x32xbf16>,
    %16 = vector.extract_strided_slice %7 {offsets = [0, 32], sizes = [32, 32], strides = [1, 1]} : vector<32x64xf32> to vector<32x32xf32>
    %17 = arith.truncf %16 : vector<32x32xf32> to vector<32x32xbf16>
    %c0_14 = arith.constant 0 : index
    %c0_15 = arith.constant 0 : index
    %18 = vector.load %arg8[%c0_14, %c0_15] : memref<32x32xbf16, #tpu.memory_space<vmem>>, vector<32x32xbf16>
    tpu.vector_store %arg8[%c0_14, %c0_15], %17 {strides = array<i32>} : memref<32x32xbf16, #tpu.memory_space<vmem>>, vector<32x32xbf16>,
    %19 = arith.truncf %12 : vector<32x32xf32> to vector<32x32xbf16>
    %c0_16 = arith.constant 0 : index
    %c0_17 = arith.constant 0 : index
    %20 = vector.load %arg9[%c0_16, %c0_17] : memref<32x32xbf16, #tpu.memory_space<vmem>>, vector<32x32xbf16>
    tpu.vector_store %arg9[%c0_16, %c0_17], %19 {strides = array<i32>} : memref<32x32xbf16, #tpu.memory_space<vmem>>, vector<32x32xbf16>,
    return
  }
  func.func @transform_0(%arg0: i32) -> (i32, i32) {
    %c0_i32 = arith.constant 0 : i32
    %c0_i32_0 = arith.constant 0 : i32
    return %arg0, %c0_i32 : i32, i32
  }
  func.func @transform_1(%arg0: i32) -> (i32, i32) {
    %c0_i32 = arith.constant 0 : i32
    %c0_i32_0 = arith.constant 0 : i32
    return %arg0, %c0_i32 : i32, i32
  }
  func.func @transform_2(%arg0: i32) -> (i32, i32) {
    %c0_i32 = arith.constant 0 : i32
    %c0_i32_0 = arith.constant 0 : i32
    %c0_i32_1 = arith.constant 0 : i32
    return %c0_i32, %c0_i32_0 : i32, i32
  }
  func.func @transform_3(%arg0: i32) -> (i32, i32) {
    %c0_i32 = arith.constant 0 : i32
    %c0_i32_0 = arith.constant 0 : i32
    %c0_i32_1 = arith.constant 0 : i32
    return %c0_i32, %c0_i32_0 : i32, i32
  }
  func.func @transform_4(%arg0: i32) -> (i32, i32) {
    %c0_i32 = arith.constant 0 : i32
    %c0_i32_0 = arith.constant 0 : i32
    %c0_i32_1 = arith.constant 0 : i32
    return %c0_i32, %c0_i32_0 : i32, i32
  }
  func.func @transform_5(%arg0: i32) -> (i32, i32) {
    %c0_i32 = arith.constant 0 : i32
    %c0_i32_0 = arith.constant 0 : i32
    %c0_i32_1 = arith.constant 0 : i32
    return %c0_i32, %c0_i32_0 : i32, i32
  }
  func.func @transform_6(%arg0: i32) -> (i32, i32) {
    %c0_i32 = arith.constant 0 : i32
    %c0_i32_0 = arith.constant 0 : i32
    return %arg0, %c0_i32 : i32, i32
  }
  func.func @transform_7(%arg0: i32) -> (i32, i32) {
    %c0_i32 = arith.constant 0 : i32
    %c0_i32_0 = arith.constant 0 : i32
    return %arg0, %c0_i32 : i32, i32
  }
  func.func @transform_8(%arg0: i32) -> (i32, i32) {
    %c0_i32 = arith.constant 0 : i32
    %c0_i32_0 = arith.constant 0 : i32
    return %arg0, %c0_i32 : i32, i32
  }
}

module attributes {stable_mosaic.version = 11 : i64} {
  func.func @_attention_kernel(%arg0: i32, %arg1: i32, %arg2: memref<1x16x32xbf16, #tpu.memory_space<vmem>>, %arg3: memref<1x16x32xbf16, #tpu.memory_space<vmem>>, %arg4: memref<1x16x32xbf16, #tpu.memory_space<vmem>>, %arg5: memref<1x1x16xf32, #tpu.memory_space<vmem>>, %arg6: memref<1x16x32xbf16, #tpu.memory_space<vmem>>) attributes {dimension_semantics = [#tpu.dimension_semantics<parallel>, #tpu.dimension_semantics<parallel>], iteration_bounds = array<i64: 2, 1>, scalar_prefetch = 0 : i64, scratch_operands = 0 : i64, tpu.core_type = #tpu.core_type<tc>, window_params = [{transform_indices = @transform_0, window_bounds = array<i64: 1, 16, 32>}, {transform_indices = @transform_1, window_bounds = array<i64: 1, 16, 32>}, {transform_indices = @transform_2, window_bounds = array<i64: 1, 16, 32>}, {transform_indices = @transform_3, window_bounds = array<i64: 1, 1, 16>}, {transform_indices = @transform_4, window_bounds = array<i64: 1, 16, 32>}]} {
    %c0 = arith.constant 0 : index
    %c0_0 = arith.constant 0 : index
    %c0_1 = arith.constant 0 : index
    %0 = vector.load %arg2[%c0, %c0_0, %c0_1] : memref<1x16x32xbf16, #tpu.memory_space<vmem>>, vector<1x16x32xbf16>
    %1 = vector.shape_cast %0 : vector<1x16x32xbf16> to vector<16x32xbf16>
    %c0_2 = arith.constant 0 : index
    %c0_3 = arith.constant 0 : index
    %c0_4 = arith.constant 0 : index
    %2 = vector.load %arg3[%c0_2, %c0_3, %c0_4] : memref<1x16x32xbf16, #tpu.memory_space<vmem>>, vector<1x16x32xbf16>
    %3 = vector.shape_cast %2 : vector<1x16x32xbf16> to vector<16x32xbf16>
    %c0_5 = arith.constant 0 : index
    %c0_6 = arith.constant 0 : index
    %c0_7 = arith.constant 0 : index
    %4 = vector.load %arg4[%c0_5, %c0_6, %c0_7] : memref<1x16x32xbf16, #tpu.memory_space<vmem>>, vector<1x16x32xbf16>
    %5 = vector.shape_cast %4 : vector<1x16x32xbf16> to vector<16x32xbf16>
    %c0_8 = arith.constant 0 : index
    %c0_9 = arith.constant 0 : index
    %c0_10 = arith.constant 0 : index
    %6 = vector.load %arg5[%c0_8, %c0_9, %c0_10] : memref<1x1x16xf32, #tpu.memory_space<vmem>>, vector<1x1x16xf32>
    %7 = vector.shape_cast %6 : vector<1x1x16xf32> to vector<1x16xf32>
    %8 = vector.extract_strided_slice %1 {offsets = [0, 0], sizes = [16, 8], strides = [1, 1]} : vector<16x32xbf16> to vector<16x8xbf16>
    %cst = arith.constant 3.535160e-01 : bf16
    %9 = vector.broadcast %cst : bf16 to vector<16x8xbf16>
    %10 = arith.mulf %8, %9 : vector<16x8xbf16>
    %11 = vector.extract_strided_slice %3 {offsets = [0, 0], sizes = [16, 8], strides = [1, 1]} : vector<16x32xbf16> to vector<16x8xbf16>
    %12 = vector.extract_strided_slice %5 {offsets = [0, 0], sizes = [16, 8], strides = [1, 1]} : vector<16x32xbf16> to vector<16x8xbf16>
    %cst_11 = arith.constant dense<0.000000e+00> : vector<16x16xf32>
    %13 = tpu.matmul %10, %11, %cst_11 {dimension_numbers = #tpu.dot_dimension_numbers<[1], [1], [0], [0], [0, 0, 1, 0], [], []>} : vector<16x8xbf16>, vector<16x8xbf16>, vector<16x16xf32> -> vector<16x16xf32>
    %14 = vector.broadcast %7 : vector<1x16xf32> to vector<16x16xf32>
    %15 = arith.addf %13, %14 : vector<16x16xf32>
    %cst_12 = arith.constant dense<0xFF800000> : vector<16xf32>
    %16 = vector.multi_reduction <maximumf>, %15, %cst_12 [1] : vector<16x16xf32> to vector<16xf32>
    %17 = vector.shape_cast %16 : vector<16xf32> to vector<16x1xf32>
    %18 = vector.broadcast %17 : vector<16x1xf32> to vector<16x16xf32>
    %19 = arith.subf %15, %18 : vector<16x16xf32>
    %20 = math.exp %19 : vector<16x16xf32>
    %cst_13 = arith.constant dense<0.000000e+00> : vector<16xf32>
    %21 = vector.multi_reduction <add>, %20, %cst_13 [1] : vector<16x16xf32> to vector<16xf32>
    %22 = vector.shape_cast %21 : vector<16xf32> to vector<16x1xf32>
    %23 = tpu.reciprocal %22 {approx = true} : vector<16x1xf32> -> vector<16x1xf32>
    %24 = arith.truncf %20 : vector<16x16xf32> to vector<16x16xbf16>
    %cst_14 = arith.constant dense<0.000000e+00> : vector<16x8xf32>
    %25 = tpu.matmul %24, %12, %cst_14 {dimension_numbers = #tpu.dot_dimension_numbers<[1], [0], [0], [1], [0, 0, 1, 1], [], []>} : vector<16x16xbf16>, vector<16x8xbf16>, vector<16x8xf32> -> vector<16x8xf32>
    %26 = vector.broadcast %23 : vector<16x1xf32> to vector<16x8xf32>
    %27 = arith.mulf %25, %26 : vector<16x8xf32>
    %28 = arith.truncf %27 : vector<16x8xf32> to vector<16x8xbf16>
    %29 = vector.extract_strided_slice %1 {offsets = [0, 8], sizes = [16, 8], strides = [1, 1]} : vector<16x32xbf16> to vector<16x8xbf16>
    %cst_15 = arith.constant 3.535160e-01 : bf16
    %30 = vector.broadcast %cst_15 : bf16 to vector<16x8xbf16>
    %31 = arith.mulf %29, %30 : vector<16x8xbf16>
    %32 = vector.extract_strided_slice %3 {offsets = [0, 8], sizes = [16, 8], strides = [1, 1]} : vector<16x32xbf16> to vector<16x8xbf16>
    %33 = vector.extract_strided_slice %5 {offsets = [0, 8], sizes = [16, 8], strides = [1, 1]} : vector<16x32xbf16> to vector<16x8xbf16>
    %cst_16 = arith.constant dense<0.000000e+00> : vector<16x16xf32>
    %34 = tpu.matmul %31, %32, %cst_16 {dimension_numbers = #tpu.dot_dimension_numbers<[1], [1], [0], [0], [0, 0, 1, 0], [], []>} : vector<16x8xbf16>, vector<16x8xbf16>, vector<16x16xf32> -> vector<16x16xf32>
    %35 = vector.broadcast %7 : vector<1x16xf32> to vector<16x16xf32>
    %36 = arith.addf %34, %35 : vector<16x16xf32>
    %cst_17 = arith.constant dense<0xFF800000> : vector<16xf32>
    %37 = vector.multi_reduction <maximumf>, %36, %cst_17 [1] : vector<16x16xf32> to vector<16xf32>
    %38 = vector.shape_cast %37 : vector<16xf32> to vector<16x1xf32>
    %39 = vector.broadcast %38 : vector<16x1xf32> to vector<16x16xf32>
    %40 = arith.subf %36, %39 : vector<16x16xf32>
    %41 = math.exp %40 : vector<16x16xf32>
    %cst_18 = arith.constant dense<0.000000e+00> : vector<16xf32>
    %42 = vector.multi_reduction <add>, %41, %cst_18 [1] : vector<16x16xf32> to vector<16xf32>
    %43 = vector.shape_cast %42 : vector<16xf32> to vector<16x1xf32>
    %44 = tpu.reciprocal %43 {approx = true} : vector<16x1xf32> -> vector<16x1xf32>
    %45 = arith.truncf %41 : vector<16x16xf32> to vector<16x16xbf16>
    %cst_19 = arith.constant dense<0.000000e+00> : vector<16x8xf32>
    %46 = tpu.matmul %45, %33, %cst_19 {dimension_numbers = #tpu.dot_dimension_numbers<[1], [0], [0], [1], [0, 0, 1, 1], [], []>} : vector<16x16xbf16>, vector<16x8xbf16>, vector<16x8xf32> -> vector<16x8xf32>
    %47 = vector.broadcast %44 : vector<16x1xf32> to vector<16x8xf32>
    %48 = arith.mulf %46, %47 : vector<16x8xf32>
    %49 = arith.truncf %48 : vector<16x8xf32> to vector<16x8xbf16>
    %50 = vector.extract_strided_slice %1 {offsets = [0, 16], sizes = [16, 8], strides = [1, 1]} : vector<16x32xbf16> to vector<16x8xbf16>
    %cst_20 = arith.constant 3.535160e-01 : bf16
    %51 = vector.broadcast %cst_20 : bf16 to vector<16x8xbf16>
    %52 = arith.mulf %50, %51 : vector<16x8xbf16>
    %53 = vector.extract_strided_slice %3 {offsets = [0, 16], sizes = [16, 8], strides = [1, 1]} : vector<16x32xbf16> to vector<16x8xbf16>
    %54 = vector.extract_strided_slice %5 {offsets = [0, 16], sizes = [16, 8], strides = [1, 1]} : vector<16x32xbf16> to vector<16x8xbf16>
    %cst_21 = arith.constant dense<0.000000e+00> : vector<16x16xf32>
    %55 = tpu.matmul %52, %53, %cst_21 {dimension_numbers = #tpu.dot_dimension_numbers<[1], [1], [0], [0], [0, 0, 1, 0], [], []>} : vector<16x8xbf16>, vector<16x8xbf16>, vector<16x16xf32> -> vector<16x16xf32>
    %56 = vector.broadcast %7 : vector<1x16xf32> to vector<16x16xf32>
    %57 = arith.addf %55, %56 : vector<16x16xf32>
    %cst_22 = arith.constant dense<0xFF800000> : vector<16xf32>
    %58 = vector.multi_reduction <maximumf>, %57, %cst_22 [1] : vector<16x16xf32> to vector<16xf32>
    %59 = vector.shape_cast %58 : vector<16xf32> to vector<16x1xf32>
    %60 = vector.broadcast %59 : vector<16x1xf32> to vector<16x16xf32>
    %61 = arith.subf %57, %60 : vector<16x16xf32>
    %62 = math.exp %61 : vector<16x16xf32>
    %cst_23 = arith.constant dense<0.000000e+00> : vector<16xf32>
    %63 = vector.multi_reduction <add>, %62, %cst_23 [1] : vector<16x16xf32> to vector<16xf32>
    %64 = vector.shape_cast %63 : vector<16xf32> to vector<16x1xf32>
    %65 = tpu.reciprocal %64 {approx = true} : vector<16x1xf32> -> vector<16x1xf32>
    %66 = arith.truncf %62 : vector<16x16xf32> to vector<16x16xbf16>
    %cst_24 = arith.constant dense<0.000000e+00> : vector<16x8xf32>
    %67 = tpu.matmul %66, %54, %cst_24 {dimension_numbers = #tpu.dot_dimension_numbers<[1], [0], [0], [1], [0, 0, 1, 1], [], []>} : vector<16x16xbf16>, vector<16x8xbf16>, vector<16x8xf32> -> vector<16x8xf32>
    %68 = vector.broadcast %65 : vector<16x1xf32> to vector<16x8xf32>
    %69 = arith.mulf %67, %68 : vector<16x8xf32>
    %70 = arith.truncf %69 : vector<16x8xf32> to vector<16x8xbf16>
    %71 = vector.extract_strided_slice %1 {offsets = [0, 24], sizes = [16, 8], strides = [1, 1]} : vector<16x32xbf16> to vector<16x8xbf16>
    %cst_25 = arith.constant 3.535160e-01 : bf16
    %72 = vector.broadcast %cst_25 : bf16 to vector<16x8xbf16>
    %73 = arith.mulf %71, %72 : vector<16x8xbf16>
    %74 = vector.extract_strided_slice %3 {offsets = [0, 24], sizes = [16, 8], strides = [1, 1]} : vector<16x32xbf16> to vector<16x8xbf16>
    %75 = vector.extract_strided_slice %5 {offsets = [0, 24], sizes = [16, 8], strides = [1, 1]} : vector<16x32xbf16> to vector<16x8xbf16>
    %cst_26 = arith.constant dense<0.000000e+00> : vector<16x16xf32>
    %76 = tpu.matmul %73, %74, %cst_26 {dimension_numbers = #tpu.dot_dimension_numbers<[1], [1], [0], [0], [0, 0, 1, 0], [], []>} : vector<16x8xbf16>, vector<16x8xbf16>, vector<16x16xf32> -> vector<16x16xf32>
    %77 = vector.broadcast %7 : vector<1x16xf32> to vector<16x16xf32>
    %78 = arith.addf %76, %77 : vector<16x16xf32>
    %cst_27 = arith.constant dense<0xFF800000> : vector<16xf32>
    %79 = vector.multi_reduction <maximumf>, %78, %cst_27 [1] : vector<16x16xf32> to vector<16xf32>
    %80 = vector.shape_cast %79 : vector<16xf32> to vector<16x1xf32>
    %81 = vector.broadcast %80 : vector<16x1xf32> to vector<16x16xf32>
    %82 = arith.subf %78, %81 : vector<16x16xf32>
    %83 = math.exp %82 : vector<16x16xf32>
    %cst_28 = arith.constant dense<0.000000e+00> : vector<16xf32>
    %84 = vector.multi_reduction <add>, %83, %cst_28 [1] : vector<16x16xf32> to vector<16xf32>
    %85 = vector.shape_cast %84 : vector<16xf32> to vector<16x1xf32>
    %86 = tpu.reciprocal %85 {approx = true} : vector<16x1xf32> -> vector<16x1xf32>
    %87 = arith.truncf %83 : vector<16x16xf32> to vector<16x16xbf16>
    %cst_29 = arith.constant dense<0.000000e+00> : vector<16x8xf32>
    %88 = tpu.matmul %87, %75, %cst_29 {dimension_numbers = #tpu.dot_dimension_numbers<[1], [0], [0], [1], [0, 0, 1, 1], [], []>} : vector<16x16xbf16>, vector<16x8xbf16>, vector<16x8xf32> -> vector<16x8xf32>
    %89 = vector.broadcast %86 : vector<16x1xf32> to vector<16x8xf32>
    %90 = arith.mulf %88, %89 : vector<16x8xf32>
    %91 = arith.truncf %90 : vector<16x8xf32> to vector<16x8xbf16>
    %92 = tpu.concatenate %28, %49, %70, %91 in 1 : vector<16x8xbf16>, vector<16x8xbf16>, vector<16x8xbf16>, vector<16x8xbf16> -> vector<16x32xbf16>
    %c0_30 = arith.constant 0 : index
    %c0_31 = arith.constant 0 : index
    %c0_32 = arith.constant 0 : index
    %93 = vector.load %arg6[%c0_30, %c0_31, %c0_32] : memref<1x16x32xbf16, #tpu.memory_space<vmem>>, vector<1x16x32xbf16>
    %94 = vector.shape_cast %93 : vector<1x16x32xbf16> to vector<16x32xbf16>
    %95 = vector.shape_cast %92 : vector<16x32xbf16> to vector<1x16x32xbf16>
    tpu.vector_store %arg6[%c0_30, %c0_31, %c0_32], %95 {strides = array<i32>} : memref<1x16x32xbf16, #tpu.memory_space<vmem>>, vector<1x16x32xbf16>,
    return
  }
  func.func @transform_0(%arg0: i32, %arg1: i32) -> (i32, i32, i32) {
    %c0_i32 = arith.constant 0 : i32
    %c0_i32_0 = arith.constant 0 : i32
    return %arg0, %arg1, %c0_i32 : i32, i32, i32
  }
  func.func @transform_1(%arg0: i32, %arg1: i32) -> (i32, i32, i32) {
    %c0_i32 = arith.constant 0 : i32
    %c0_i32_0 = arith.constant 0 : i32
    %c0_i32_1 = arith.constant 0 : i32
    return %arg0, %c0_i32, %c0_i32_0 : i32, i32, i32
  }
  func.func @transform_2(%arg0: i32, %arg1: i32) -> (i32, i32, i32) {
    %c0_i32 = arith.constant 0 : i32
    %c0_i32_0 = arith.constant 0 : i32
    %c0_i32_1 = arith.constant 0 : i32
    return %arg0, %c0_i32, %c0_i32_0 : i32, i32, i32
  }
  func.func @transform_3(%arg0: i32, %arg1: i32) -> (i32, i32, i32) {
    %c0_i32 = arith.constant 0 : i32
    %c0_i32_0 = arith.constant 0 : i32
    %c0_i32_1 = arith.constant 0 : i32
    return %arg0, %c0_i32, %c0_i32_0 : i32, i32, i32
  }
  func.func @transform_4(%arg0: i32, %arg1: i32) -> (i32, i32, i32) {
    %c0_i32 = arith.constant 0 : i32
    %c0_i32_0 = arith.constant 0 : i32
    return %arg0, %arg1, %c0_i32 : i32, i32, i32
  }
}

module attributes {stable_mosaic.version = 11 : i64} {
  func.func @_fused_linear_kernel(%arg0: i32, %arg1: memref<32x32xbf16, #tpu.memory_space<vmem>>, %arg2: memref<32x32xbf16, #tpu.memory_space<vmem>>, %arg3: memref<1x32xf32, #tpu.memory_space<vmem>>, %arg4: memref<32x32xbf16, #tpu.memory_space<vmem>>, %arg5: memref<1x32xf32, #tpu.memory_space<vmem>>, %arg6: memref<1x32xf32, #tpu.memory_space<vmem>>, %arg7: memref<32x32xbf16, #tpu.memory_space<vmem>>) attributes {dimension_semantics = [#tpu.dimension_semantics<parallel>], iteration_bounds = array<i64: 1>, scalar_prefetch = 0 : i64, scratch_operands = 0 : i64, tpu.core_type = #tpu.core_type<tc>, window_params = [{transform_indices = @transform_0, window_bounds = array<i64: 32, 32>}, {pipeline_mode = #tpu.pipeline_mode<synchronous>, transform_indices = @transform_1, window_bounds = array<i64: 32, 32>}, {pipeline_mode = #tpu.pipeline_mode<synchronous>, transform_indices = @transform_2, window_bounds = array<i64: 1, 32>}, {transform_indices = @transform_3, window_bounds = array<i64: 32, 32>}, {pipeline_mode = #tpu.pipeline_mode<synchronous>, transform_indices = @transform_4, window_bounds = array<i64: 1, 32>}, {pipeline_mode = #tpu.pipeline_mode<synchronous>, transform_indices = @transform_5, window_bounds = array<i64: 1, 32>}, {transform_indices = @transform_6, window_bounds = array<i64: 32, 32>}]} {
    %c0 = arith.constant 0 : index
    %c0_0 = arith.constant 0 : index
    %0 = vector.load %arg1[%c0, %c0_0] : memref<32x32xbf16, #tpu.memory_space<vmem>>, vector<32x32xbf16>
    %c0_1 = arith.constant 0 : index
    %c0_2 = arith.constant 0 : index
    %1 = vector.load %arg2[%c0_1, %c0_2] : memref<32x32xbf16, #tpu.memory_space<vmem>>, vector<32x32xbf16>
    %c0_3 = arith.constant 0 : index
    %c0_4 = arith.constant 0 : index
    %2 = vector.load %arg3[%c0_3, %c0_4] : memref<1x32xf32, #tpu.memory_space<vmem>>, vector<1x32xf32>
    %cst = arith.constant dense<0.000000e+00> : vector<32x32xf32>
    %3 = tpu.matmul %0, %1, %cst {dimension_numbers = #tpu.dot_dimension_numbers<[1], [0], [0], [1], [0, 0, 1, 1], [], []>} : vector<32x32xbf16>, vector<32x32xbf16>, vector<32x32xf32> -> vector<32x32xf32>
    %4 = vector.broadcast %2 : vector<1x32xf32> to vector<32x32xf32>
    %5 = arith.addf %3, %4 : vector<32x32xf32>
    %c0_5 = arith.constant 0 : index
    %c0_6 = arith.constant 0 : index
    %6 = vector.load %arg4[%c0_5, %c0_6] : memref<32x32xbf16, #tpu.memory_space<vmem>>, vector<32x32xbf16>
    %7 = arith.extf %6 : vector<32x32xbf16> to vector<32x32xf32>
    %8 = arith.addf %5, %7 : vector<32x32xf32>
    %c0_7 = arith.constant 0 : index
    %c0_8 = arith.constant 0 : index
    %9 = vector.load %arg5[%c0_7, %c0_8] : memref<1x32xf32, #tpu.memory_space<vmem>>, vector<1x32xf32>
    %c0_9 = arith.constant 0 : index
    %c0_10 = arith.constant 0 : index
    %10 = vector.load %arg6[%c0_9, %c0_10] : memref<1x32xf32, #tpu.memory_space<vmem>>, vector<1x32xf32>
    %cst_11 = arith.constant dense<0.000000e+00> : vector<32xf32>
    %11 = vector.multi_reduction <add>, %8, %cst_11 [1] : vector<32x32xf32> to vector<32xf32>
    %12 = vector.shape_cast %11 : vector<32xf32> to vector<32x1xf32>
    %cst_12 = arith.constant 3.200000e+01 : f32
    %13 = vector.broadcast %cst_12 : f32 to vector<32x1xf32>
    %14 = arith.divf %12, %13 : vector<32x1xf32>
    %15 = vector.broadcast %14 : vector<32x1xf32> to vector<32x32xf32>
    %16 = arith.subf %8, %15 : vector<32x32xf32>
    %17 = arith.mulf %16, %16 : vector<32x32xf32>
    %cst_13 = arith.constant dense<0.000000e+00> : vector<32xf32>
    %18 = vector.multi_reduction <add>, %17, %cst_13 [1] : vector<32x32xf32> to vector<32xf32>
    %19 = vector.shape_cast %18 : vector<32xf32> to vector<32x1xf32>
    %cst_14 = arith.constant 3.200000e+01 : f32
    %20 = vector.broadcast %cst_14 : f32 to vector<32x1xf32>
    %21 = arith.divf %19, %20 : vector<32x1xf32>
    %22 = vector.broadcast %14 : vector<32x1xf32> to vector<32x32xf32>
    %23 = arith.subf %8, %22 : vector<32x32xf32>
    %cst_15 = arith.constant 9.99999974E-6 : f32
    %24 = vector.broadcast %cst_15 : f32 to vector<32x1xf32>
    %25 = arith.addf %21, %24 : vector<32x1xf32>
    %26 = math.rsqrt %25 : vector<32x1xf32>
    %27 = vector.broadcast %26 : vector<32x1xf32> to vector<32x32xf32>
    %28 = arith.mulf %23, %27 : vector<32x32xf32>
    %29 = vector.broadcast %9 : vector<1x32xf32> to vector<32x32xf32>
    %30 = arith.mulf %28, %29 : vector<32x32xf32>
    %31 = vector.broadcast %10 : vector<1x32xf32> to vector<32x32xf32>
    %32 = arith.addf %30, %31 : vector<32x32xf32>
    %33 = arith.truncf %32 : vector<32x32xf32> to vector<32x32xbf16>
    %c0_16 = arith.constant 0 : index
    %c0_17 = arith.constant 0 : index
    %34 = vector.load %arg7[%c0_16, %c0_17] : memref<32x32xbf16, #tpu.memory_space<vmem>>, vector<32x32xbf16>
    tpu.vector_store %arg7[%c0_16, %c0_17], %33 {strides = array<i32>} : memref<32x32xbf16, #tpu.memory_space<vmem>>, vector<32x32xbf16>,
    return
  }
  func.func @transform_0(%arg0: i32) -> (i32, i32) {
    %c0_i32 = arith.constant 0 : i32
    %c0_i32_0 = arith.constant 0 : i32
    return %arg0, %c0_i32 : i32, i32
  }
  func.func @transform_1(%arg0: i32) -> (i32, i32) {
    %c0_i32 = arith.constant 0 : i32
    %c0_i32_0 = arith.constant 0 : i32
    %c0_i32_1 = arith.constant 0 : i32
    return %c0_i32, %c0_i32_0 : i32, i32
  }
  func.func @transform_2(%arg0: i32) -> (i32, i32) {
    %c0_i32 = arith.constant 0 : i32
    %c0_i32_0 = arith.constant 0 : i32
    %c0_i32_1 = arith.constant 0 : i32
    return %c0_i32, %c0_i32_0 : i32, i32
  }
  func.func @transform_3(%arg0: i32) -> (i32, i32) {
    %c0_i32 = arith.constant 0 : i32
    %c0_i32_0 = arith.constant 0 : i32
    return %arg0, %c0_i32 : i32, i32
  }
  func.func @transform_4(%arg0: i32) -> (i32, i32) {
    %c0_i32 = arith.constant 0 : i32
    %c0_i32_0 = arith.constant 0 : i32
    %c0_i32_1 = arith.constant 0 : i32
    return %c0_i32, %c0_i32_0 : i32, i32
  }
  func.func @transform_5(%arg0: i32) -> (i32, i32) {
    %c0_i32 = arith.constant 0 : i32
    %c0_i32_0 = arith.constant 0 : i32
    %c0_i32_1 = arith.constant 0 : i32
    return %c0_i32, %c0_i32_0 : i32, i32
  }
  func.func @transform_6(%arg0: i32) -> (i32, i32) {
    %c0_i32 = arith.constant 0 : i32
    %c0_i32_0 = arith.constant 0 : i32
    return %arg0, %c0_i32 : i32, i32
  }
}

module attributes {stable_mosaic.version = 11 : i64} {
  func.func @_ffn_kernel(%arg0: i32, %arg1: memref<32x32xbf16, #tpu.memory_space<vmem>>, %arg2: memref<32x64xbf16, #tpu.memory_space<vmem>>, %arg3: memref<1x64xf32, #tpu.memory_space<vmem>>, %arg4: memref<64x32xbf16, #tpu.memory_space<vmem>>, %arg5: memref<1x32xf32, #tpu.memory_space<vmem>>, %arg6: memref<1x32xf32, #tpu.memory_space<vmem>>, %arg7: memref<1x32xf32, #tpu.memory_space<vmem>>, %arg8: memref<32x32xbf16, #tpu.memory_space<vmem>>) attributes {dimension_semantics = [#tpu.dimension_semantics<parallel>], iteration_bounds = array<i64: 1>, scalar_prefetch = 0 : i64, scratch_operands = 0 : i64, tpu.core_type = #tpu.core_type<tc>, window_params = [{transform_indices = @transform_0, window_bounds = array<i64: 32, 32>}, {pipeline_mode = #tpu.pipeline_mode<synchronous>, transform_indices = @transform_1, window_bounds = array<i64: 32, 64>}, {pipeline_mode = #tpu.pipeline_mode<synchronous>, transform_indices = @transform_2, window_bounds = array<i64: 1, 64>}, {pipeline_mode = #tpu.pipeline_mode<synchronous>, transform_indices = @transform_3, window_bounds = array<i64: 64, 32>}, {pipeline_mode = #tpu.pipeline_mode<synchronous>, transform_indices = @transform_4, window_bounds = array<i64: 1, 32>}, {pipeline_mode = #tpu.pipeline_mode<synchronous>, transform_indices = @transform_5, window_bounds = array<i64: 1, 32>}, {pipeline_mode = #tpu.pipeline_mode<synchronous>, transform_indices = @transform_6, window_bounds = array<i64: 1, 32>}, {transform_indices = @transform_7, window_bounds = array<i64: 32, 32>}]} {
    %c0 = arith.constant 0 : index
    %c0_0 = arith.constant 0 : index
    %0 = vector.load %arg1[%c0, %c0_0] : memref<32x32xbf16, #tpu.memory_space<vmem>>, vector<32x32xbf16>
    %c0_1 = arith.constant 0 : index
    %c0_2 = arith.constant 0 : index
    %1 = vector.load %arg2[%c0_1, %c0_2] : memref<32x64xbf16, #tpu.memory_space<vmem>>, vector<32x64xbf16>
    %cst = arith.constant dense<0.000000e+00> : vector<32x64xf32>
    %2 = tpu.matmul %0, %1, %cst {dimension_numbers = #tpu.dot_dimension_numbers<[1], [0], [0], [1], [0, 0, 1, 1], [], []>} : vector<32x32xbf16>, vector<32x64xbf16>, vector<32x64xf32> -> vector<32x64xf32>
    %c0_3 = arith.constant 0 : index
    %c0_4 = arith.constant 0 : index
    %3 = vector.load %arg3[%c0_3, %c0_4] : memref<1x64xf32, #tpu.memory_space<vmem>>, vector<1x64xf32>
    %4 = vector.broadcast %3 : vector<1x64xf32> to vector<32x64xf32>
    %5 = arith.addf %2, %4 : vector<32x64xf32>
    %cst_5 = arith.constant 0.000000e+00 : f32
    %6 = vector.broadcast %cst_5 : f32 to vector<32x64xf32>
    %7 = arith.maximumf %5, %6 : vector<32x64xf32>
    %8 = arith.truncf %7 : vector<32x64xf32> to vector<32x64xbf16>
    %c0_6 = arith.constant 0 : index
    %c0_7 = arith.constant 0 : index
    %9 = vector.load %arg4[%c0_6, %c0_7] : memref<64x32xbf16, #tpu.memory_space<vmem>>, vector<64x32xbf16>
    %cst_8 = arith.constant dense<0.000000e+00> : vector<32x32xf32>
    %10 = tpu.matmul %8, %9, %cst_8 {dimension_numbers = #tpu.dot_dimension_numbers<[1], [0], [0], [1], [0, 0, 1, 1], [], []>} : vector<32x64xbf16>, vector<64x32xbf16>, vector<32x32xf32> -> vector<32x32xf32>
    %c0_9 = arith.constant 0 : index
    %c0_10 = arith.constant 0 : index
    %11 = vector.load %arg5[%c0_9, %c0_10] : memref<1x32xf32, #tpu.memory_space<vmem>>, vector<1x32xf32>
    %12 = vector.broadcast %11 : vector<1x32xf32> to vector<32x32xf32>
    %13 = arith.addf %10, %12 : vector<32x32xf32>
    %14 = arith.extf %0 : vector<32x32xbf16> to vector<32x32xf32>
    %15 = arith.addf %13, %14 : vector<32x32xf32>
    %cst_11 = arith.constant dense<0.000000e+00> : vector<32xf32>
    %16 = vector.multi_reduction <add>, %15, %cst_11 [1] : vector<32x32xf32> to vector<32xf32>
    %17 = vector.shape_cast %16 : vector<32xf32> to vector<32x1xf32>
    %cst_12 = arith.constant 3.200000e+01 : f32
    %18 = vector.broadcast %cst_12 : f32 to vector<32x1xf32>
    %19 = arith.divf %17, %18 : vector<32x1xf32>
    %20 = vector.broadcast %19 : vector<32x1xf32> to vector<32x32xf32>
    %21 = arith.subf %15, %20 : vector<32x32xf32>
    %22 = arith.mulf %21, %21 : vector<32x32xf32>
    %cst_13 = arith.constant dense<0.000000e+00> : vector<32xf32>
    %23 = vector.multi_reduction <add>, %22, %cst_13 [1] : vector<32x32xf32> to vector<32xf32>
    %24 = vector.shape_cast %23 : vector<32xf32> to vector<32x1xf32>
    %cst_14 = arith.constant 3.200000e+01 : f32
    %25 = vector.broadcast %cst_14 : f32 to vector<32x1xf32>
    %26 = arith.divf %24, %25 : vector<32x1xf32>
    %27 = vector.broadcast %19 : vector<32x1xf32> to vector<32x32xf32>
    %28 = arith.subf %15, %27 : vector<32x32xf32>
    %cst_15 = arith.constant 9.99999974E-6 : f32
    %29 = vector.broadcast %cst_15 : f32 to vector<32x1xf32>
    %30 = arith.addf %26, %29 : vector<32x1xf32>
    %31 = math.rsqrt %30 : vector<32x1xf32>
    %32 = vector.broadcast %31 : vector<32x1xf32> to vector<32x32xf32>
    %33 = arith.mulf %28, %32 : vector<32x32xf32>
    %c0_16 = arith.constant 0 : index
    %c0_17 = arith.constant 0 : index
    %34 = vector.load %arg6[%c0_16, %c0_17] : memref<1x32xf32, #tpu.memory_space<vmem>>, vector<1x32xf32>
    %35 = vector.broadcast %34 : vector<1x32xf32> to vector<32x32xf32>
    %36 = arith.mulf %33, %35 : vector<32x32xf32>
    %c0_18 = arith.constant 0 : index
    %c0_19 = arith.constant 0 : index
    %37 = vector.load %arg7[%c0_18, %c0_19] : memref<1x32xf32, #tpu.memory_space<vmem>>, vector<1x32xf32>
    %38 = vector.broadcast %37 : vector<1x32xf32> to vector<32x32xf32>
    %39 = arith.addf %36, %38 : vector<32x32xf32>
    %40 = arith.truncf %39 : vector<32x32xf32> to vector<32x32xbf16>
    %c0_20 = arith.constant 0 : index
    %c0_21 = arith.constant 0 : index
    %41 = vector.load %arg8[%c0_20, %c0_21] : memref<32x32xbf16, #tpu.memory_space<vmem>>, vector<32x32xbf16>
    tpu.vector_store %arg8[%c0_20, %c0_21], %40 {strides = array<i32>} : memref<32x32xbf16, #tpu.memory_space<vmem>>, vector<32x32xbf16>,
    return
  }
  func.func @transform_0(%arg0: i32) -> (i32, i32) {
    %c0_i32 = arith.constant 0 : i32
    %c0_i32_0 = arith.constant 0 : i32
    return %arg0, %c0_i32 : i32, i32
  }
  func.func @transform_1(%arg0: i32) -> (i32, i32) {
    %c0_i32 = arith.constant 0 : i32
    %c0_i32_0 = arith.constant 0 : i32
    %c0_i32_1 = arith.constant 0 : i32
    return %c0_i32, %c0_i32_0 : i32, i32
  }
  func.func @transform_2(%arg0: i32) -> (i32, i32) {
    %c0_i32 = arith.constant 0 : i32
    %c0_i32_0 = arith.constant 0 : i32
    %c0_i32_1 = arith.constant 0 : i32
    return %c0_i32, %c0_i32_0 : i32, i32
  }
  func.func @transform_3(%arg0: i32) -> (i32, i32) {
    %c0_i32 = arith.constant 0 : i32
    %c0_i32_0 = arith.constant 0 : i32
    %c0_i32_1 = arith.constant 0 : i32
    return %c0_i32, %c0_i32_0 : i32, i32
  }
  func.func @transform_4(%arg0: i32) -> (i32, i32) {
    %c0_i32 = arith.constant 0 : i32
    %c0_i32_0 = arith.constant 0 : i32
    %c0_i32_1 = arith.constant 0 : i32
    return %c0_i32, %c0_i32_0 : i32, i32
  }
  func.func @transform_5(%arg0: i32) -> (i32, i32) {
    %c0_i32 = arith.constant 0 : i32
    %c0_i32_0 = arith.constant 0 : i32
    %c0_i32_1 = arith.constant 0 : i32
    return %c0_i32, %c0_i32_0 : i32, i32
  }
  func.func @transform_6(%arg0: i32) -> (i32, i32) {
    %c0_i32 = arith.constant 0 : i32
    %c0_i32_0 = arith.constant 0 : i32
    %c0_i32_1 = arith.constant 0 : i32
    return %c0_i32, %c0_i32_0 : i32, i32
  }
  func.func @transform_7(%arg0: i32) -> (i32, i32) {
    %c0_i32 = arith.constant 0 : i32
    %c0_i32_0 = arith.constant 0 : i32
    return %arg0, %c0_i32 : i32, i32
  }
}

module attributes {stable_mosaic.version = 11 : i64} {
  func.func @_ffn_kernel(%arg0: i32, %arg1: memref<32x32xbf16, #tpu.memory_space<vmem>>, %arg2: memref<32x64xbf16, #tpu.memory_space<vmem>>, %arg3: memref<1x64xf32, #tpu.memory_space<vmem>>, %arg4: memref<64x32xbf16, #tpu.memory_space<vmem>>, %arg5: memref<1x32xf32, #tpu.memory_space<vmem>>, %arg6: memref<1x32xf32, #tpu.memory_space<vmem>>, %arg7: memref<1x32xf32, #tpu.memory_space<vmem>>, %arg8: memref<32x32xbf16, #tpu.memory_space<vmem>>) attributes {dimension_semantics = [#tpu.dimension_semantics<parallel>], iteration_bounds = array<i64: 1>, scalar_prefetch = 0 : i64, scratch_operands = 0 : i64, tpu.core_type = #tpu.core_type<tc>, window_params = [{transform_indices = @transform_0, window_bounds = array<i64: 32, 32>}, {pipeline_mode = #tpu.pipeline_mode<synchronous>, transform_indices = @transform_1, window_bounds = array<i64: 32, 64>}, {pipeline_mode = #tpu.pipeline_mode<synchronous>, transform_indices = @transform_2, window_bounds = array<i64: 1, 64>}, {pipeline_mode = #tpu.pipeline_mode<synchronous>, transform_indices = @transform_3, window_bounds = array<i64: 64, 32>}, {pipeline_mode = #tpu.pipeline_mode<synchronous>, transform_indices = @transform_4, window_bounds = array<i64: 1, 32>}, {pipeline_mode = #tpu.pipeline_mode<synchronous>, transform_indices = @transform_5, window_bounds = array<i64: 1, 32>}, {pipeline_mode = #tpu.pipeline_mode<synchronous>, transform_indices = @transform_6, window_bounds = array<i64: 1, 32>}, {transform_indices = @transform_7, window_bounds = array<i64: 32, 32>}]} {
    %c0 = arith.constant 0 : index
    %c0_0 = arith.constant 0 : index
    %0 = vector.load %arg1[%c0, %c0_0] : memref<32x32xbf16, #tpu.memory_space<vmem>>, vector<32x32xbf16>
    %c0_1 = arith.constant 0 : index
    %c0_2 = arith.constant 0 : index
    %1 = vector.load %arg2[%c0_1, %c0_2] : memref<32x64xbf16, #tpu.memory_space<vmem>>, vector<32x64xbf16>
    %cst = arith.constant dense<0.000000e+00> : vector<32x64xf32>
    %2 = tpu.matmul %0, %1, %cst {dimension_numbers = #tpu.dot_dimension_numbers<[1], [0], [0], [1], [0, 0, 1, 1], [], []>} : vector<32x32xbf16>, vector<32x64xbf16>, vector<32x64xf32> -> vector<32x64xf32>
    %c0_3 = arith.constant 0 : index
    %c0_4 = arith.constant 0 : index
    %3 = vector.load %arg3[%c0_3, %c0_4] : memref<1x64xf32, #tpu.memory_space<vmem>>, vector<1x64xf32>
    %4 = vector.broadcast %3 : vector<1x64xf32> to vector<32x64xf32>
    %5 = arith.addf %2, %4 : vector<32x64xf32>
    %cst_5 = arith.constant 0.000000e+00 : f32
    %6 = vector.broadcast %cst_5 : f32 to vector<32x64xf32>
    %7 = arith.maximumf %5, %6 : vector<32x64xf32>
    %8 = arith.truncf %7 : vector<32x64xf32> to vector<32x64xbf16>
    %c0_6 = arith.constant 0 : index
    %c0_7 = arith.constant 0 : index
    %9 = vector.load %arg4[%c0_6, %c0_7] : memref<64x32xbf16, #tpu.memory_space<vmem>>, vector<64x32xbf16>
    %cst_8 = arith.constant dense<0.000000e+00> : vector<32x32xf32>
    %10 = tpu.matmul %8, %9, %cst_8 {dimension_numbers = #tpu.dot_dimension_numbers<[1], [0], [0], [1], [0, 0, 1, 1], [], []>} : vector<32x64xbf16>, vector<64x32xbf16>, vector<32x32xf32> -> vector<32x32xf32>
    %c0_9 = arith.constant 0 : index
    %c0_10 = arith.constant 0 : index
    %11 = vector.load %arg5[%c0_9, %c0_10] : memref<1x32xf32, #tpu.memory_space<vmem>>, vector<1x32xf32>
    %12 = vector.broadcast %11 : vector<1x32xf32> to vector<32x32xf32>
    %13 = arith.addf %10, %12 : vector<32x32xf32>
    %14 = arith.extf %0 : vector<32x32xbf16> to vector<32x32xf32>
    %15 = arith.addf %13, %14 : vector<32x32xf32>
    %cst_11 = arith.constant dense<0.000000e+00> : vector<32xf32>
    %16 = vector.multi_reduction <add>, %15, %cst_11 [1] : vector<32x32xf32> to vector<32xf32>
    %17 = vector.shape_cast %16 : vector<32xf32> to vector<32x1xf32>
    %cst_12 = arith.constant 3.200000e+01 : f32
    %18 = vector.broadcast %cst_12 : f32 to vector<32x1xf32>
    %19 = arith.divf %17, %18 : vector<32x1xf32>
    %20 = vector.broadcast %19 : vector<32x1xf32> to vector<32x32xf32>
    %21 = arith.subf %15, %20 : vector<32x32xf32>
    %22 = arith.mulf %21, %21 : vector<32x32xf32>
    %cst_13 = arith.constant dense<0.000000e+00> : vector<32xf32>
    %23 = vector.multi_reduction <add>, %22, %cst_13 [1] : vector<32x32xf32> to vector<32xf32>
    %24 = vector.shape_cast %23 : vector<32xf32> to vector<32x1xf32>
    %cst_14 = arith.constant 3.200000e+01 : f32
    %25 = vector.broadcast %cst_14 : f32 to vector<32x1xf32>
    %26 = arith.divf %24, %25 : vector<32x1xf32>
    %27 = vector.broadcast %19 : vector<32x1xf32> to vector<32x32xf32>
    %28 = arith.subf %15, %27 : vector<32x32xf32>
    %cst_15 = arith.constant 9.99999974E-6 : f32
    %29 = vector.broadcast %cst_15 : f32 to vector<32x1xf32>
    %30 = arith.addf %26, %29 : vector<32x1xf32>
    %31 = math.rsqrt %30 : vector<32x1xf32>
    %32 = vector.broadcast %31 : vector<32x1xf32> to vector<32x32xf32>
    %33 = arith.mulf %28, %32 : vector<32x32xf32>
    %c0_16 = arith.constant 0 : index
    %c0_17 = arith.constant 0 : index
    %34 = vector.load %arg6[%c0_16, %c0_17] : memref<1x32xf32, #tpu.memory_space<vmem>>, vector<1x32xf32>
    %35 = vector.broadcast %34 : vector<1x32xf32> to vector<32x32xf32>
    %36 = arith.mulf %33, %35 : vector<32x32xf32>
    %c0_18 = arith.constant 0 : index
    %c0_19 = arith.constant 0 : index
    %37 = vector.load %arg7[%c0_18, %c0_19] : memref<1x32xf32, #tpu.memory_space<vmem>>, vector<1x32xf32>
    %38 = vector.broadcast %37 : vector<1x32xf32> to vector<32x32xf32>
    %39 = arith.addf %36, %38 : vector<32x32xf32>
    %40 = arith.truncf %39 : vector<32x32xf32> to vector<32x32xbf16>
    %c0_20 = arith.constant 0 : index
    %c0_21 = arith.constant 0 : index
    %41 = vector.load %arg8[%c0_20, %c0_21] : memref<32x32xbf16, #tpu.memory_space<vmem>>, vector<32x32xbf16>
    tpu.vector_store %arg8[%c0_20, %c0_21], %40 {strides = array<i32>} : memref<32x32xbf16, #tpu.memory_space<vmem>>, vector<32x32xbf16>,
    return
  }
  func.func @transform_0(%arg0: i32) -> (i32, i32) {
    %c0_i32 = arith.constant 0 : i32
    %c0_i32_0 = arith.constant 0 : i32
    return %arg0, %c0_i32 : i32, i32
  }
  func.func @transform_1(%arg0: i32) -> (i32, i32) {
    %c0_i32 = arith.constant 0 : i32
    %c0_i32_0 = arith.constant 0 : i32
    %c0_i32_1 = arith.constant 0 : i32
    return %c0_i32, %c0_i32_0 : i32, i32
  }
  func.func @transform_2(%arg0: i32) -> (i32, i32) {
    %c0_i32 = arith.constant 0 : i32
    %c0_i32_0 = arith.constant 0 : i32
    %c0_i32_1 = arith.constant 0 : i32
    return %c0_i32, %c0_i32_0 : i32, i32
  }
  func.func @transform_3(%arg0: i32) -> (i32, i32) {
    %c0_i32 = arith.constant 0 : i32
    %c0_i32_0 = arith.constant 0 : i32
    %c0_i32_1 = arith.constant 0 : i32
    return %c0_i32, %c0_i32_0 : i32, i32
  }
  func.func @transform_4(%arg0: i32) -> (i32, i32) {
    %c0_i32 = arith.constant 0 : i32
    %c0_i32_0 = arith.constant 0 : i32
    %c0_i32_1 = arith.constant 0 : i32
    return %c0_i32, %c0_i32_0 : i32, i32
  }
  func.func @transform_5(%arg0: i32) -> (i32, i32) {
    %c0_i32 = arith.constant 0 : i32
    %c0_i32_0 = arith.constant 0 : i32
    %c0_i32_1 = arith.constant 0 : i32
    return %c0_i32, %c0_i32_0 : i32, i32
  }
  func.func @transform_6(%arg0: i32) -> (i32, i32) {
    %c0_i32 = arith.constant 0 : i32
    %c0_i32_0 = arith.constant 0 : i32
    %c0_i32_1 = arith.constant 0 : i32
    return %c0_i32, %c0_i32_0 : i32, i32
  }
  func.func @transform_7(%arg0: i32) -> (i32, i32) {
    %c0_i32 = arith.constant 0 : i32
    %c0_i32_0 = arith.constant 0 : i32
    return %arg0, %c0_i32 : i32, i32
  }
}

module attributes {stable_mosaic.version = 11 : i64} {
  func.func @_qkv_kernel(%arg0: i32, %arg1: memref<32x32xbf16, #tpu.memory_space<vmem>>, %arg2: memref<32x32xbf16, #tpu.memory_space<vmem>>, %arg3: memref<32x32xbf16, #tpu.memory_space<vmem>>, %arg4: memref<1x32xf32, #tpu.memory_space<vmem>>, %arg5: memref<32x32xbf16, #tpu.memory_space<vmem>>, %arg6: memref<1x32xf32, #tpu.memory_space<vmem>>, %arg7: memref<32x32xbf16, #tpu.memory_space<vmem>>, %arg8: memref<32x32xbf16, #tpu.memory_space<vmem>>) attributes {dimension_semantics = [#tpu.dimension_semantics<parallel>], iteration_bounds = array<i64: 1>, scalar_prefetch = 0 : i64, scratch_operands = 0 : i64, tpu.core_type = #tpu.core_type<tc>, window_params = [{transform_indices = @transform_0, window_bounds = array<i64: 32, 32>}, {transform_indices = @transform_1, window_bounds = array<i64: 32, 32>}, {pipeline_mode = #tpu.pipeline_mode<synchronous>, transform_indices = @transform_2, window_bounds = array<i64: 32, 32>}, {pipeline_mode = #tpu.pipeline_mode<synchronous>, transform_indices = @transform_3, window_bounds = array<i64: 1, 32>}, {pipeline_mode = #tpu.pipeline_mode<synchronous>, transform_indices = @transform_4, window_bounds = array<i64: 32, 32>}, {pipeline_mode = #tpu.pipeline_mode<synchronous>, transform_indices = @transform_5, window_bounds = array<i64: 1, 32>}, {transform_indices = @transform_6, window_bounds = array<i64: 32, 32>}, {transform_indices = @transform_7, window_bounds = array<i64: 32, 32>}]} {
    %c0 = arith.constant 0 : index
    %c0_0 = arith.constant 0 : index
    %0 = vector.load %arg1[%c0, %c0_0] : memref<32x32xbf16, #tpu.memory_space<vmem>>, vector<32x32xbf16>
    %c0_1 = arith.constant 0 : index
    %c0_2 = arith.constant 0 : index
    %1 = vector.load %arg2[%c0_1, %c0_2] : memref<32x32xbf16, #tpu.memory_space<vmem>>, vector<32x32xbf16>
    %2 = arith.addf %0, %1 : vector<32x32xbf16>
    %c0_3 = arith.constant 0 : index
    %c0_4 = arith.constant 0 : index
    %3 = vector.load %arg3[%c0_3, %c0_4] : memref<32x32xbf16, #tpu.memory_space<vmem>>, vector<32x32xbf16>
    %cst = arith.constant dense<0.000000e+00> : vector<32x32xf32>
    %4 = tpu.matmul %2, %3, %cst {dimension_numbers = #tpu.dot_dimension_numbers<[1], [0], [0], [1], [0, 0, 1, 1], [], []>} : vector<32x32xbf16>, vector<32x32xbf16>, vector<32x32xf32> -> vector<32x32xf32>
    %c0_5 = arith.constant 0 : index
    %c0_6 = arith.constant 0 : index
    %5 = vector.load %arg4[%c0_5, %c0_6] : memref<1x32xf32, #tpu.memory_space<vmem>>, vector<1x32xf32>
    %6 = vector.broadcast %5 : vector<1x32xf32> to vector<32x32xf32>
    %7 = arith.addf %4, %6 : vector<32x32xf32>
    %c0_7 = arith.constant 0 : index
    %c0_8 = arith.constant 0 : index
    %8 = vector.load %arg5[%c0_7, %c0_8] : memref<32x32xbf16, #tpu.memory_space<vmem>>, vector<32x32xbf16>
    %cst_9 = arith.constant dense<0.000000e+00> : vector<32x32xf32>
    %9 = tpu.matmul %0, %8, %cst_9 {dimension_numbers = #tpu.dot_dimension_numbers<[1], [0], [0], [1], [0, 0, 1, 1], [], []>} : vector<32x32xbf16>, vector<32x32xbf16>, vector<32x32xf32> -> vector<32x32xf32>
    %c0_10 = arith.constant 0 : index
    %c0_11 = arith.constant 0 : index
    %10 = vector.load %arg6[%c0_10, %c0_11] : memref<1x32xf32, #tpu.memory_space<vmem>>, vector<1x32xf32>
    %11 = vector.broadcast %10 : vector<1x32xf32> to vector<32x32xf32>
    %12 = arith.addf %9, %11 : vector<32x32xf32>
    %13 = arith.truncf %7 : vector<32x32xf32> to vector<32x32xbf16>
    %c0_12 = arith.constant 0 : index
    %c0_13 = arith.constant 0 : index
    %14 = vector.load %arg7[%c0_12, %c0_13] : memref<32x32xbf16, #tpu.memory_space<vmem>>, vector<32x32xbf16>
    tpu.vector_store %arg7[%c0_12, %c0_13], %13 {strides = array<i32>} : memref<32x32xbf16, #tpu.memory_space<vmem>>, vector<32x32xbf16>,
    %15 = arith.truncf %12 : vector<32x32xf32> to vector<32x32xbf16>
    %c0_14 = arith.constant 0 : index
    %c0_15 = arith.constant 0 : index
    %16 = vector.load %arg8[%c0_14, %c0_15] : memref<32x32xbf16, #tpu.memory_space<vmem>>, vector<32x32xbf16>
    tpu.vector_store %arg8[%c0_14, %c0_15], %15 {strides = array<i32>} : memref<32x32xbf16, #tpu.memory_space<vmem>>, vector<32x32xbf16>,
    return
  }
  func.func @transform_0(%arg0: i32) -> (i32, i32) {
    %c0_i32 = arith.constant 0 : i32
    %c0_i32_0 = arith.constant 0 : i32
    return %arg0, %c0_i32 : i32, i32
  }
  func.func @transform_1(%arg0: i32) -> (i32, i32) {
    %c0_i32 = arith.constant 0 : i32
    %c0_i32_0 = arith.constant 0 : i32
    return %arg0, %c0_i32 : i32, i32
  }
  func.func @transform_2(%arg0: i32) -> (i32, i32) {
    %c0_i32 = arith.constant 0 : i32
    %c0_i32_0 = arith.constant 0 : i32
    %c0_i32_1 = arith.constant 0 : i32
    return %c0_i32, %c0_i32_0 : i32, i32
  }
  func.func @transform_3(%arg0: i32) -> (i32, i32) {
    %c0_i32 = arith.constant 0 : i32
    %c0_i32_0 = arith.constant 0 : i32
    %c0_i32_1 = arith.constant 0 : i32
    return %c0_i32, %c0_i32_0 : i32, i32
  }
  func.func @transform_4(%arg0: i32) -> (i32, i32) {
    %c0_i32 = arith.constant 0 : i32
    %c0_i32_0 = arith.constant 0 : i32
    %c0_i32_1 = arith.constant 0 : i32
    return %c0_i32, %c0_i32_0 : i32, i32
  }
  func.func @transform_5(%arg0: i32) -> (i32, i32) {
    %c0_i32 = arith.constant 0 : i32
    %c0_i32_0 = arith.constant 0 : i32
    %c0_i32_1 = arith.constant 0 : i32
    return %c0_i32, %c0_i32_0 : i32, i32
  }
  func.func @transform_6(%arg0: i32) -> (i32, i32) {
    %c0_i32 = arith.constant 0 : i32
    %c0_i32_0 = arith.constant 0 : i32
    return %arg0, %c0_i32 : i32, i32
  }
  func.func @transform_7(%arg0: i32) -> (i32, i32) {
    %c0_i32 = arith.constant 0 : i32
    %c0_i32_0 = arith.constant 0 : i32
    return %arg0, %c0_i32 : i32, i32
  }
}

module attributes {stable_mosaic.version = 11 : i64} {
  func.func @_qkv_kernel(%arg0: i32, %arg1: memref<16x32xbf16, #tpu.memory_space<vmem>>, %arg2: memref<16x32xbf16, #tpu.memory_space<vmem>>, %arg3: memref<32x64xbf16, #tpu.memory_space<vmem>>, %arg4: memref<1x64xf32, #tpu.memory_space<vmem>>, %arg5: memref<32x32xbf16, #tpu.memory_space<vmem>>, %arg6: memref<1x32xf32, #tpu.memory_space<vmem>>, %arg7: memref<16x32xbf16, #tpu.memory_space<vmem>>, %arg8: memref<16x32xbf16, #tpu.memory_space<vmem>>, %arg9: memref<16x32xbf16, #tpu.memory_space<vmem>>) attributes {dimension_semantics = [#tpu.dimension_semantics<parallel>], iteration_bounds = array<i64: 1>, scalar_prefetch = 0 : i64, scratch_operands = 0 : i64, tpu.core_type = #tpu.core_type<tc>, window_params = [{transform_indices = @transform_0, window_bounds = array<i64: 16, 32>}, {transform_indices = @transform_1, window_bounds = array<i64: 16, 32>}, {pipeline_mode = #tpu.pipeline_mode<synchronous>, transform_indices = @transform_2, window_bounds = array<i64: 32, 64>}, {pipeline_mode = #tpu.pipeline_mode<synchronous>, transform_indices = @transform_3, window_bounds = array<i64: 1, 64>}, {pipeline_mode = #tpu.pipeline_mode<synchronous>, transform_indices = @transform_4, window_bounds = array<i64: 32, 32>}, {pipeline_mode = #tpu.pipeline_mode<synchronous>, transform_indices = @transform_5, window_bounds = array<i64: 1, 32>}, {transform_indices = @transform_6, window_bounds = array<i64: 16, 32>}, {transform_indices = @transform_7, window_bounds = array<i64: 16, 32>}, {transform_indices = @transform_8, window_bounds = array<i64: 16, 32>}]} {
    %c0 = arith.constant 0 : index
    %c0_0 = arith.constant 0 : index
    %0 = vector.load %arg1[%c0, %c0_0] : memref<16x32xbf16, #tpu.memory_space<vmem>>, vector<16x32xbf16>
    %c0_1 = arith.constant 0 : index
    %c0_2 = arith.constant 0 : index
    %1 = vector.load %arg2[%c0_1, %c0_2] : memref<16x32xbf16, #tpu.memory_space<vmem>>, vector<16x32xbf16>
    %2 = arith.addf %0, %1 : vector<16x32xbf16>
    %c0_3 = arith.constant 0 : index
    %c0_4 = arith.constant 0 : index
    %3 = vector.load %arg3[%c0_3, %c0_4] : memref<32x64xbf16, #tpu.memory_space<vmem>>, vector<32x64xbf16>
    %cst = arith.constant dense<0.000000e+00> : vector<16x64xf32>
    %4 = tpu.matmul %2, %3, %cst {dimension_numbers = #tpu.dot_dimension_numbers<[1], [0], [0], [1], [0, 0, 1, 1], [], []>} : vector<16x32xbf16>, vector<32x64xbf16>, vector<16x64xf32> -> vector<16x64xf32>
    %c0_5 = arith.constant 0 : index
    %c0_6 = arith.constant 0 : index
    %5 = vector.load %arg4[%c0_5, %c0_6] : memref<1x64xf32, #tpu.memory_space<vmem>>, vector<1x64xf32>
    %6 = vector.broadcast %5 : vector<1x64xf32> to vector<16x64xf32>
    %7 = arith.addf %4, %6 : vector<16x64xf32>
    %c0_7 = arith.constant 0 : index
    %c0_8 = arith.constant 0 : index
    %8 = vector.load %arg5[%c0_7, %c0_8] : memref<32x32xbf16, #tpu.memory_space<vmem>>, vector<32x32xbf16>
    %cst_9 = arith.constant dense<0.000000e+00> : vector<16x32xf32>
    %9 = tpu.matmul %0, %8, %cst_9 {dimension_numbers = #tpu.dot_dimension_numbers<[1], [0], [0], [1], [0, 0, 1, 1], [], []>} : vector<16x32xbf16>, vector<32x32xbf16>, vector<16x32xf32> -> vector<16x32xf32>
    %c0_10 = arith.constant 0 : index
    %c0_11 = arith.constant 0 : index
    %10 = vector.load %arg6[%c0_10, %c0_11] : memref<1x32xf32, #tpu.memory_space<vmem>>, vector<1x32xf32>
    %11 = vector.broadcast %10 : vector<1x32xf32> to vector<16x32xf32>
    %12 = arith.addf %9, %11 : vector<16x32xf32>
    %13 = vector.extract_strided_slice %7 {offsets = [0, 0], sizes = [16, 32], strides = [1, 1]} : vector<16x64xf32> to vector<16x32xf32>
    %14 = arith.truncf %13 : vector<16x32xf32> to vector<16x32xbf16>
    %c0_12 = arith.constant 0 : index
    %c0_13 = arith.constant 0 : index
    %15 = vector.load %arg7[%c0_12, %c0_13] : memref<16x32xbf16, #tpu.memory_space<vmem>>, vector<16x32xbf16>
    tpu.vector_store %arg7[%c0_12, %c0_13], %14 {strides = array<i32>} : memref<16x32xbf16, #tpu.memory_space<vmem>>, vector<16x32xbf16>,
    %16 = vector.extract_strided_slice %7 {offsets = [0, 32], sizes = [16, 32], strides = [1, 1]} : vector<16x64xf32> to vector<16x32xf32>
    %17 = arith.truncf %16 : vector<16x32xf32> to vector<16x32xbf16>
    %c0_14 = arith.constant 0 : index
    %c0_15 = arith.constant 0 : index
    %18 = vector.load %arg8[%c0_14, %c0_15] : memref<16x32xbf16, #tpu.memory_space<vmem>>, vector<16x32xbf16>
    tpu.vector_store %arg8[%c0_14, %c0_15], %17 {strides = array<i32>} : memref<16x32xbf16, #tpu.memory_space<vmem>>, vector<16x32xbf16>,
    %19 = arith.truncf %12 : vector<16x32xf32> to vector<16x32xbf16>
    %c0_16 = arith.constant 0 : index
    %c0_17 = arith.constant 0 : index
    %20 = vector.load %arg9[%c0_16, %c0_17] : memref<16x32xbf16, #tpu.memory_space<vmem>>, vector<16x32xbf16>
    tpu.vector_store %arg9[%c0_16, %c0_17], %19 {strides = array<i32>} : memref<16x32xbf16, #tpu.memory_space<vmem>>, vector<16x32xbf16>,
    return
  }
  func.func @transform_0(%arg0: i32) -> (i32, i32) {
    %c0_i32 = arith.constant 0 : i32
    %c0_i32_0 = arith.constant 0 : i32
    return %arg0, %c0_i32 : i32, i32
  }
  func.func @transform_1(%arg0: i32) -> (i32, i32) {
    %c0_i32 = arith.constant 0 : i32
    %c0_i32_0 = arith.constant 0 : i32
    return %arg0, %c0_i32 : i32, i32
  }
  func.func @transform_2(%arg0: i32) -> (i32, i32) {
    %c0_i32 = arith.constant 0 : i32
    %c0_i32_0 = arith.constant 0 : i32
    %c0_i32_1 = arith.constant 0 : i32
    return %c0_i32, %c0_i32_0 : i32, i32
  }
  func.func @transform_3(%arg0: i32) -> (i32, i32) {
    %c0_i32 = arith.constant 0 : i32
    %c0_i32_0 = arith.constant 0 : i32
    %c0_i32_1 = arith.constant 0 : i32
    return %c0_i32, %c0_i32_0 : i32, i32
  }
  func.func @transform_4(%arg0: i32) -> (i32, i32) {
    %c0_i32 = arith.constant 0 : i32
    %c0_i32_0 = arith.constant 0 : i32
    %c0_i32_1 = arith.constant 0 : i32
    return %c0_i32, %c0_i32_0 : i32, i32
  }
  func.func @transform_5(%arg0: i32) -> (i32, i32) {
    %c0_i32 = arith.constant 0 : i32
    %c0_i32_0 = arith.constant 0 : i32
    %c0_i32_1 = arith.constant 0 : i32
    return %c0_i32, %c0_i32_0 : i32, i32
  }
  func.func @transform_6(%arg0: i32) -> (i32, i32) {
    %c0_i32 = arith.constant 0 : i32
    %c0_i32_0 = arith.constant 0 : i32
    return %arg0, %c0_i32 : i32, i32
  }
  func.func @transform_7(%arg0: i32) -> (i32, i32) {
    %c0_i32 = arith.constant 0 : i32
    %c0_i32_0 = arith.constant 0 : i32
    return %arg0, %c0_i32 : i32, i32
  }
  func.func @transform_8(%arg0: i32) -> (i32, i32) {
    %c0_i32 = arith.constant 0 : i32
    %c0_i32_0 = arith.constant 0 : i32
    return %arg0, %c0_i32 : i32, i32
  }
}

module attributes {stable_mosaic.version = 11 : i64} {
  func.func @_attention_kernel(%arg0: i32, %arg1: i32, %arg2: memref<1x8x32xbf16, #tpu.memory_space<vmem>>, %arg3: memref<1x8x32xbf16, #tpu.memory_space<vmem>>, %arg4: memref<1x8x32xbf16, #tpu.memory_space<vmem>>, %arg5: memref<1x1x8xf32, #tpu.memory_space<vmem>>, %arg6: memref<1x8x32xbf16, #tpu.memory_space<vmem>>) attributes {dimension_semantics = [#tpu.dimension_semantics<parallel>, #tpu.dimension_semantics<parallel>], iteration_bounds = array<i64: 2, 1>, scalar_prefetch = 0 : i64, scratch_operands = 0 : i64, tpu.core_type = #tpu.core_type<tc>, window_params = [{transform_indices = @transform_0, window_bounds = array<i64: 1, 8, 32>}, {transform_indices = @transform_1, window_bounds = array<i64: 1, 8, 32>}, {transform_indices = @transform_2, window_bounds = array<i64: 1, 8, 32>}, {transform_indices = @transform_3, window_bounds = array<i64: 1, 1, 8>}, {transform_indices = @transform_4, window_bounds = array<i64: 1, 8, 32>}]} {
    %c0 = arith.constant 0 : index
    %c0_0 = arith.constant 0 : index
    %c0_1 = arith.constant 0 : index
    %0 = vector.load %arg2[%c0, %c0_0, %c0_1] : memref<1x8x32xbf16, #tpu.memory_space<vmem>>, vector<1x8x32xbf16>
    %1 = vector.shape_cast %0 : vector<1x8x32xbf16> to vector<8x32xbf16>
    %c0_2 = arith.constant 0 : index
    %c0_3 = arith.constant 0 : index
    %c0_4 = arith.constant 0 : index
    %2 = vector.load %arg3[%c0_2, %c0_3, %c0_4] : memref<1x8x32xbf16, #tpu.memory_space<vmem>>, vector<1x8x32xbf16>
    %3 = vector.shape_cast %2 : vector<1x8x32xbf16> to vector<8x32xbf16>
    %c0_5 = arith.constant 0 : index
    %c0_6 = arith.constant 0 : index
    %c0_7 = arith.constant 0 : index
    %4 = vector.load %arg4[%c0_5, %c0_6, %c0_7] : memref<1x8x32xbf16, #tpu.memory_space<vmem>>, vector<1x8x32xbf16>
    %5 = vector.shape_cast %4 : vector<1x8x32xbf16> to vector<8x32xbf16>
    %c0_8 = arith.constant 0 : index
    %c0_9 = arith.constant 0 : index
    %c0_10 = arith.constant 0 : index
    %6 = vector.load %arg5[%c0_8, %c0_9, %c0_10] : memref<1x1x8xf32, #tpu.memory_space<vmem>>, vector<1x1x8xf32>
    %7 = vector.shape_cast %6 : vector<1x1x8xf32> to vector<1x8xf32>
    %8 = vector.extract_strided_slice %1 {offsets = [0, 0], sizes = [8, 8], strides = [1, 1]} : vector<8x32xbf16> to vector<8x8xbf16>
    %cst = arith.constant 3.535160e-01 : bf16
    %9 = vector.broadcast %cst : bf16 to vector<8x8xbf16>
    %10 = arith.mulf %8, %9 : vector<8x8xbf16>
    %11 = vector.extract_strided_slice %3 {offsets = [0, 0], sizes = [8, 8], strides = [1, 1]} : vector<8x32xbf16> to vector<8x8xbf16>
    %12 = vector.extract_strided_slice %5 {offsets = [0, 0], sizes = [8, 8], strides = [1, 1]} : vector<8x32xbf16> to vector<8x8xbf16>
    %cst_11 = arith.constant dense<0.000000e+00> : vector<8x8xf32>
    %13 = tpu.matmul %10, %11, %cst_11 {dimension_numbers = #tpu.dot_dimension_numbers<[1], [1], [0], [0], [0, 0, 1, 0], [], []>} : vector<8x8xbf16>, vector<8x8xbf16>, vector<8x8xf32> -> vector<8x8xf32>
    %14 = vector.broadcast %7 : vector<1x8xf32> to vector<8x8xf32>
    %15 = arith.addf %13, %14 : vector<8x8xf32>
    %cst_12 = arith.constant dense<0xFF800000> : vector<8xf32>
    %16 = vector.multi_reduction <maximumf>, %15, %cst_12 [1] : vector<8x8xf32> to vector<8xf32>
    %17 = vector.shape_cast %16 : vector<8xf32> to vector<8x1xf32>
    %18 = vector.broadcast %17 : vector<8x1xf32> to vector<8x8xf32>
    %19 = arith.subf %15, %18 : vector<8x8xf32>
    %20 = math.exp %19 : vector<8x8xf32>
    %cst_13 = arith.constant dense<0.000000e+00> : vector<8xf32>
    %21 = vector.multi_reduction <add>, %20, %cst_13 [1] : vector<8x8xf32> to vector<8xf32>
    %22 = vector.shape_cast %21 : vector<8xf32> to vector<8x1xf32>
    %23 = tpu.reciprocal %22 {approx = true} : vector<8x1xf32> -> vector<8x1xf32>
    %24 = arith.truncf %20 : vector<8x8xf32> to vector<8x8xbf16>
    %cst_14 = arith.constant dense<0.000000e+00> : vector<8x8xf32>
    %25 = tpu.matmul %24, %12, %cst_14 {dimension_numbers = #tpu.dot_dimension_numbers<[1], [0], [0], [1], [0, 0, 1, 1], [], []>} : vector<8x8xbf16>, vector<8x8xbf16>, vector<8x8xf32> -> vector<8x8xf32>
    %26 = vector.broadcast %23 : vector<8x1xf32> to vector<8x8xf32>
    %27 = arith.mulf %25, %26 : vector<8x8xf32>
    %28 = arith.truncf %27 : vector<8x8xf32> to vector<8x8xbf16>
    %29 = vector.extract_strided_slice %1 {offsets = [0, 8], sizes = [8, 8], strides = [1, 1]} : vector<8x32xbf16> to vector<8x8xbf16>
    %cst_15 = arith.constant 3.535160e-01 : bf16
    %30 = vector.broadcast %cst_15 : bf16 to vector<8x8xbf16>
    %31 = arith.mulf %29, %30 : vector<8x8xbf16>
    %32 = vector.extract_strided_slice %3 {offsets = [0, 8], sizes = [8, 8], strides = [1, 1]} : vector<8x32xbf16> to vector<8x8xbf16>
    %33 = vector.extract_strided_slice %5 {offsets = [0, 8], sizes = [8, 8], strides = [1, 1]} : vector<8x32xbf16> to vector<8x8xbf16>
    %cst_16 = arith.constant dense<0.000000e+00> : vector<8x8xf32>
    %34 = tpu.matmul %31, %32, %cst_16 {dimension_numbers = #tpu.dot_dimension_numbers<[1], [1], [0], [0], [0, 0, 1, 0], [], []>} : vector<8x8xbf16>, vector<8x8xbf16>, vector<8x8xf32> -> vector<8x8xf32>
    %35 = vector.broadcast %7 : vector<1x8xf32> to vector<8x8xf32>
    %36 = arith.addf %34, %35 : vector<8x8xf32>
    %cst_17 = arith.constant dense<0xFF800000> : vector<8xf32>
    %37 = vector.multi_reduction <maximumf>, %36, %cst_17 [1] : vector<8x8xf32> to vector<8xf32>
    %38 = vector.shape_cast %37 : vector<8xf32> to vector<8x1xf32>
    %39 = vector.broadcast %38 : vector<8x1xf32> to vector<8x8xf32>
    %40 = arith.subf %36, %39 : vector<8x8xf32>
    %41 = math.exp %40 : vector<8x8xf32>
    %cst_18 = arith.constant dense<0.000000e+00> : vector<8xf32>
    %42 = vector.multi_reduction <add>, %41, %cst_18 [1] : vector<8x8xf32> to vector<8xf32>
    %43 = vector.shape_cast %42 : vector<8xf32> to vector<8x1xf32>
    %44 = tpu.reciprocal %43 {approx = true} : vector<8x1xf32> -> vector<8x1xf32>
    %45 = arith.truncf %41 : vector<8x8xf32> to vector<8x8xbf16>
    %cst_19 = arith.constant dense<0.000000e+00> : vector<8x8xf32>
    %46 = tpu.matmul %45, %33, %cst_19 {dimension_numbers = #tpu.dot_dimension_numbers<[1], [0], [0], [1], [0, 0, 1, 1], [], []>} : vector<8x8xbf16>, vector<8x8xbf16>, vector<8x8xf32> -> vector<8x8xf32>
    %47 = vector.broadcast %44 : vector<8x1xf32> to vector<8x8xf32>
    %48 = arith.mulf %46, %47 : vector<8x8xf32>
    %49 = arith.truncf %48 : vector<8x8xf32> to vector<8x8xbf16>
    %50 = vector.extract_strided_slice %1 {offsets = [0, 16], sizes = [8, 8], strides = [1, 1]} : vector<8x32xbf16> to vector<8x8xbf16>
    %cst_20 = arith.constant 3.535160e-01 : bf16
    %51 = vector.broadcast %cst_20 : bf16 to vector<8x8xbf16>
    %52 = arith.mulf %50, %51 : vector<8x8xbf16>
    %53 = vector.extract_strided_slice %3 {offsets = [0, 16], sizes = [8, 8], strides = [1, 1]} : vector<8x32xbf16> to vector<8x8xbf16>
    %54 = vector.extract_strided_slice %5 {offsets = [0, 16], sizes = [8, 8], strides = [1, 1]} : vector<8x32xbf16> to vector<8x8xbf16>
    %cst_21 = arith.constant dense<0.000000e+00> : vector<8x8xf32>
    %55 = tpu.matmul %52, %53, %cst_21 {dimension_numbers = #tpu.dot_dimension_numbers<[1], [1], [0], [0], [0, 0, 1, 0], [], []>} : vector<8x8xbf16>, vector<8x8xbf16>, vector<8x8xf32> -> vector<8x8xf32>
    %56 = vector.broadcast %7 : vector<1x8xf32> to vector<8x8xf32>
    %57 = arith.addf %55, %56 : vector<8x8xf32>
    %cst_22 = arith.constant dense<0xFF800000> : vector<8xf32>
    %58 = vector.multi_reduction <maximumf>, %57, %cst_22 [1] : vector<8x8xf32> to vector<8xf32>
    %59 = vector.shape_cast %58 : vector<8xf32> to vector<8x1xf32>
    %60 = vector.broadcast %59 : vector<8x1xf32> to vector<8x8xf32>
    %61 = arith.subf %57, %60 : vector<8x8xf32>
    %62 = math.exp %61 : vector<8x8xf32>
    %cst_23 = arith.constant dense<0.000000e+00> : vector<8xf32>
    %63 = vector.multi_reduction <add>, %62, %cst_23 [1] : vector<8x8xf32> to vector<8xf32>
    %64 = vector.shape_cast %63 : vector<8xf32> to vector<8x1xf32>
    %65 = tpu.reciprocal %64 {approx = true} : vector<8x1xf32> -> vector<8x1xf32>
    %66 = arith.truncf %62 : vector<8x8xf32> to vector<8x8xbf16>
    %cst_24 = arith.constant dense<0.000000e+00> : vector<8x8xf32>
    %67 = tpu.matmul %66, %54, %cst_24 {dimension_numbers = #tpu.dot_dimension_numbers<[1], [0], [0], [1], [0, 0, 1, 1], [], []>} : vector<8x8xbf16>, vector<8x8xbf16>, vector<8x8xf32> -> vector<8x8xf32>
    %68 = vector.broadcast %65 : vector<8x1xf32> to vector<8x8xf32>
    %69 = arith.mulf %67, %68 : vector<8x8xf32>
    %70 = arith.truncf %69 : vector<8x8xf32> to vector<8x8xbf16>
    %71 = vector.extract_strided_slice %1 {offsets = [0, 24], sizes = [8, 8], strides = [1, 1]} : vector<8x32xbf16> to vector<8x8xbf16>
    %cst_25 = arith.constant 3.535160e-01 : bf16
    %72 = vector.broadcast %cst_25 : bf16 to vector<8x8xbf16>
    %73 = arith.mulf %71, %72 : vector<8x8xbf16>
    %74 = vector.extract_strided_slice %3 {offsets = [0, 24], sizes = [8, 8], strides = [1, 1]} : vector<8x32xbf16> to vector<8x8xbf16>
    %75 = vector.extract_strided_slice %5 {offsets = [0, 24], sizes = [8, 8], strides = [1, 1]} : vector<8x32xbf16> to vector<8x8xbf16>
    %cst_26 = arith.constant dense<0.000000e+00> : vector<8x8xf32>
    %76 = tpu.matmul %73, %74, %cst_26 {dimension_numbers = #tpu.dot_dimension_numbers<[1], [1], [0], [0], [0, 0, 1, 0], [], []>} : vector<8x8xbf16>, vector<8x8xbf16>, vector<8x8xf32> -> vector<8x8xf32>
    %77 = vector.broadcast %7 : vector<1x8xf32> to vector<8x8xf32>
    %78 = arith.addf %76, %77 : vector<8x8xf32>
    %cst_27 = arith.constant dense<0xFF800000> : vector<8xf32>
    %79 = vector.multi_reduction <maximumf>, %78, %cst_27 [1] : vector<8x8xf32> to vector<8xf32>
    %80 = vector.shape_cast %79 : vector<8xf32> to vector<8x1xf32>
    %81 = vector.broadcast %80 : vector<8x1xf32> to vector<8x8xf32>
    %82 = arith.subf %78, %81 : vector<8x8xf32>
    %83 = math.exp %82 : vector<8x8xf32>
    %cst_28 = arith.constant dense<0.000000e+00> : vector<8xf32>
    %84 = vector.multi_reduction <add>, %83, %cst_28 [1] : vector<8x8xf32> to vector<8xf32>
    %85 = vector.shape_cast %84 : vector<8xf32> to vector<8x1xf32>
    %86 = tpu.reciprocal %85 {approx = true} : vector<8x1xf32> -> vector<8x1xf32>
    %87 = arith.truncf %83 : vector<8x8xf32> to vector<8x8xbf16>
    %cst_29 = arith.constant dense<0.000000e+00> : vector<8x8xf32>
    %88 = tpu.matmul %87, %75, %cst_29 {dimension_numbers = #tpu.dot_dimension_numbers<[1], [0], [0], [1], [0, 0, 1, 1], [], []>} : vector<8x8xbf16>, vector<8x8xbf16>, vector<8x8xf32> -> vector<8x8xf32>
    %89 = vector.broadcast %86 : vector<8x1xf32> to vector<8x8xf32>
    %90 = arith.mulf %88, %89 : vector<8x8xf32>
    %91 = arith.truncf %90 : vector<8x8xf32> to vector<8x8xbf16>
    %92 = tpu.concatenate %28, %49, %70, %91 in 1 : vector<8x8xbf16>, vector<8x8xbf16>, vector<8x8xbf16>, vector<8x8xbf16> -> vector<8x32xbf16>
    %c0_30 = arith.constant 0 : index
    %c0_31 = arith.constant 0 : index
    %c0_32 = arith.constant 0 : index
    %93 = vector.load %arg6[%c0_30, %c0_31, %c0_32] : memref<1x8x32xbf16, #tpu.memory_space<vmem>>, vector<1x8x32xbf16>
    %94 = vector.shape_cast %93 : vector<1x8x32xbf16> to vector<8x32xbf16>
    %95 = vector.shape_cast %92 : vector<8x32xbf16> to vector<1x8x32xbf16>
    tpu.vector_store %arg6[%c0_30, %c0_31, %c0_32], %95 {strides = array<i32>} : memref<1x8x32xbf16, #tpu.memory_space<vmem>>, vector<1x8x32xbf16>,
    return
  }
  func.func @transform_0(%arg0: i32, %arg1: i32) -> (i32, i32, i32) {
    %c0_i32 = arith.constant 0 : i32
    %c0_i32_0 = arith.constant 0 : i32
    return %arg0, %arg1, %c0_i32 : i32, i32, i32
  }
  func.func @transform_1(%arg0: i32, %arg1: i32) -> (i32, i32, i32) {
    %c0_i32 = arith.constant 0 : i32
    %c0_i32_0 = arith.constant 0 : i32
    %c0_i32_1 = arith.constant 0 : i32
    return %arg0, %c0_i32, %c0_i32_0 : i32, i32, i32
  }
  func.func @transform_2(%arg0: i32, %arg1: i32) -> (i32, i32, i32) {
    %c0_i32 = arith.constant 0 : i32
    %c0_i32_0 = arith.constant 0 : i32
    %c0_i32_1 = arith.constant 0 : i32
    return %arg0, %c0_i32, %c0_i32_0 : i32, i32, i32
  }
  func.func @transform_3(%arg0: i32, %arg1: i32) -> (i32, i32, i32) {
    %c0_i32 = arith.constant 0 : i32
    %c0_i32_0 = arith.constant 0 : i32
    %c0_i32_1 = arith.constant 0 : i32
    return %arg0, %c0_i32, %c0_i32_0 : i32, i32, i32
  }
  func.func @transform_4(%arg0: i32, %arg1: i32) -> (i32, i32, i32) {
    %c0_i32 = arith.constant 0 : i32
    %c0_i32_0 = arith.constant 0 : i32
    return %arg0, %arg1, %c0_i32 : i32, i32, i32
  }
}

module attributes {stable_mosaic.version = 11 : i64} {
  func.func @_fused_linear_kernel(%arg0: i32, %arg1: memref<16x32xbf16, #tpu.memory_space<vmem>>, %arg2: memref<32x32xbf16, #tpu.memory_space<vmem>>, %arg3: memref<1x32xf32, #tpu.memory_space<vmem>>, %arg4: memref<16x32xbf16, #tpu.memory_space<vmem>>, %arg5: memref<1x32xf32, #tpu.memory_space<vmem>>, %arg6: memref<1x32xf32, #tpu.memory_space<vmem>>, %arg7: memref<16x32xbf16, #tpu.memory_space<vmem>>) attributes {dimension_semantics = [#tpu.dimension_semantics<parallel>], iteration_bounds = array<i64: 1>, scalar_prefetch = 0 : i64, scratch_operands = 0 : i64, tpu.core_type = #tpu.core_type<tc>, window_params = [{transform_indices = @transform_0, window_bounds = array<i64: 16, 32>}, {pipeline_mode = #tpu.pipeline_mode<synchronous>, transform_indices = @transform_1, window_bounds = array<i64: 32, 32>}, {pipeline_mode = #tpu.pipeline_mode<synchronous>, transform_indices = @transform_2, window_bounds = array<i64: 1, 32>}, {transform_indices = @transform_3, window_bounds = array<i64: 16, 32>}, {pipeline_mode = #tpu.pipeline_mode<synchronous>, transform_indices = @transform_4, window_bounds = array<i64: 1, 32>}, {pipeline_mode = #tpu.pipeline_mode<synchronous>, transform_indices = @transform_5, window_bounds = array<i64: 1, 32>}, {transform_indices = @transform_6, window_bounds = array<i64: 16, 32>}]} {
    %c0 = arith.constant 0 : index
    %c0_0 = arith.constant 0 : index
    %0 = vector.load %arg1[%c0, %c0_0] : memref<16x32xbf16, #tpu.memory_space<vmem>>, vector<16x32xbf16>
    %c0_1 = arith.constant 0 : index
    %c0_2 = arith.constant 0 : index
    %1 = vector.load %arg2[%c0_1, %c0_2] : memref<32x32xbf16, #tpu.memory_space<vmem>>, vector<32x32xbf16>
    %c0_3 = arith.constant 0 : index
    %c0_4 = arith.constant 0 : index
    %2 = vector.load %arg3[%c0_3, %c0_4] : memref<1x32xf32, #tpu.memory_space<vmem>>, vector<1x32xf32>
    %cst = arith.constant dense<0.000000e+00> : vector<16x32xf32>
    %3 = tpu.matmul %0, %1, %cst {dimension_numbers = #tpu.dot_dimension_numbers<[1], [0], [0], [1], [0, 0, 1, 1], [], []>} : vector<16x32xbf16>, vector<32x32xbf16>, vector<16x32xf32> -> vector<16x32xf32>
    %4 = vector.broadcast %2 : vector<1x32xf32> to vector<16x32xf32>
    %5 = arith.addf %3, %4 : vector<16x32xf32>
    %c0_5 = arith.constant 0 : index
    %c0_6 = arith.constant 0 : index
    %6 = vector.load %arg4[%c0_5, %c0_6] : memref<16x32xbf16, #tpu.memory_space<vmem>>, vector<16x32xbf16>
    %7 = arith.extf %6 : vector<16x32xbf16> to vector<16x32xf32>
    %8 = arith.addf %5, %7 : vector<16x32xf32>
    %c0_7 = arith.constant 0 : index
    %c0_8 = arith.constant 0 : index
    %9 = vector.load %arg5[%c0_7, %c0_8] : memref<1x32xf32, #tpu.memory_space<vmem>>, vector<1x32xf32>
    %c0_9 = arith.constant 0 : index
    %c0_10 = arith.constant 0 : index
    %10 = vector.load %arg6[%c0_9, %c0_10] : memref<1x32xf32, #tpu.memory_space<vmem>>, vector<1x32xf32>
    %cst_11 = arith.constant dense<0.000000e+00> : vector<16xf32>
    %11 = vector.multi_reduction <add>, %8, %cst_11 [1] : vector<16x32xf32> to vector<16xf32>
    %12 = vector.shape_cast %11 : vector<16xf32> to vector<16x1xf32>
    %cst_12 = arith.constant 3.200000e+01 : f32
    %13 = vector.broadcast %cst_12 : f32 to vector<16x1xf32>
    %14 = arith.divf %12, %13 : vector<16x1xf32>
    %15 = vector.broadcast %14 : vector<16x1xf32> to vector<16x32xf32>
    %16 = arith.subf %8, %15 : vector<16x32xf32>
    %17 = arith.mulf %16, %16 : vector<16x32xf32>
    %cst_13 = arith.constant dense<0.000000e+00> : vector<16xf32>
    %18 = vector.multi_reduction <add>, %17, %cst_13 [1] : vector<16x32xf32> to vector<16xf32>
    %19 = vector.shape_cast %18 : vector<16xf32> to vector<16x1xf32>
    %cst_14 = arith.constant 3.200000e+01 : f32
    %20 = vector.broadcast %cst_14 : f32 to vector<16x1xf32>
    %21 = arith.divf %19, %20 : vector<16x1xf32>
    %22 = vector.broadcast %14 : vector<16x1xf32> to vector<16x32xf32>
    %23 = arith.subf %8, %22 : vector<16x32xf32>
    %cst_15 = arith.constant 9.99999974E-6 : f32
    %24 = vector.broadcast %cst_15 : f32 to vector<16x1xf32>
    %25 = arith.addf %21, %24 : vector<16x1xf32>
    %26 = math.rsqrt %25 : vector<16x1xf32>
    %27 = vector.broadcast %26 : vector<16x1xf32> to vector<16x32xf32>
    %28 = arith.mulf %23, %27 : vector<16x32xf32>
    %29 = vector.broadcast %9 : vector<1x32xf32> to vector<16x32xf32>
    %30 = arith.mulf %28, %29 : vector<16x32xf32>
    %31 = vector.broadcast %10 : vector<1x32xf32> to vector<16x32xf32>
    %32 = arith.addf %30, %31 : vector<16x32xf32>
    %33 = arith.truncf %32 : vector<16x32xf32> to vector<16x32xbf16>
    %c0_16 = arith.constant 0 : index
    %c0_17 = arith.constant 0 : index
    %34 = vector.load %arg7[%c0_16, %c0_17] : memref<16x32xbf16, #tpu.memory_space<vmem>>, vector<16x32xbf16>
    tpu.vector_store %arg7[%c0_16, %c0_17], %33 {strides = array<i32>} : memref<16x32xbf16, #tpu.memory_space<vmem>>, vector<16x32xbf16>,
    return
  }
  func.func @transform_0(%arg0: i32) -> (i32, i32) {
    %c0_i32 = arith.constant 0 : i32
    %c0_i32_0 = arith.constant 0 : i32
    return %arg0, %c0_i32 : i32, i32
  }
  func.func @transform_1(%arg0: i32) -> (i32, i32) {
    %c0_i32 = arith.constant 0 : i32
    %c0_i32_0 = arith.constant 0 : i32
    %c0_i32_1 = arith.constant 0 : i32
    return %c0_i32, %c0_i32_0 : i32, i32
  }
  func.func @transform_2(%arg0: i32) -> (i32, i32) {
    %c0_i32 = arith.constant 0 : i32
    %c0_i32_0 = arith.constant 0 : i32
    %c0_i32_1 = arith.constant 0 : i32
    return %c0_i32, %c0_i32_0 : i32, i32
  }
  func.func @transform_3(%arg0: i32) -> (i32, i32) {
    %c0_i32 = arith.constant 0 : i32
    %c0_i32_0 = arith.constant 0 : i32
    return %arg0, %c0_i32 : i32, i32
  }
  func.func @transform_4(%arg0: i32) -> (i32, i32) {
    %c0_i32 = arith.constant 0 : i32
    %c0_i32_0 = arith.constant 0 : i32
    %c0_i32_1 = arith.constant 0 : i32
    return %c0_i32, %c0_i32_0 : i32, i32
  }
  func.func @transform_5(%arg0: i32) -> (i32, i32) {
    %c0_i32 = arith.constant 0 : i32
    %c0_i32_0 = arith.constant 0 : i32
    %c0_i32_1 = arith.constant 0 : i32
    return %c0_i32, %c0_i32_0 : i32, i32
  }
  func.func @transform_6(%arg0: i32) -> (i32, i32) {
    %c0_i32 = arith.constant 0 : i32
    %c0_i32_0 = arith.constant 0 : i32
    return %arg0, %c0_i32 : i32, i32
  }
}

module attributes {stable_mosaic.version = 11 : i64} {
  func.func @_fused_linear_kernel(%arg0: i32, %arg1: memref<16x32xbf16, #tpu.memory_space<vmem>>, %arg2: memref<16x32xbf16, #tpu.memory_space<vmem>>, %arg3: memref<32x32xbf16, #tpu.memory_space<vmem>>, %arg4: memref<1x32xf32, #tpu.memory_space<vmem>>, %arg5: memref<16x32xbf16, #tpu.memory_space<vmem>>) attributes {dimension_semantics = [#tpu.dimension_semantics<parallel>], iteration_bounds = array<i64: 1>, scalar_prefetch = 0 : i64, scratch_operands = 0 : i64, tpu.core_type = #tpu.core_type<tc>, window_params = [{transform_indices = @transform_0, window_bounds = array<i64: 16, 32>}, {transform_indices = @transform_1, window_bounds = array<i64: 16, 32>}, {pipeline_mode = #tpu.pipeline_mode<synchronous>, transform_indices = @transform_2, window_bounds = array<i64: 32, 32>}, {pipeline_mode = #tpu.pipeline_mode<synchronous>, transform_indices = @transform_3, window_bounds = array<i64: 1, 32>}, {transform_indices = @transform_4, window_bounds = array<i64: 16, 32>}]} {
    %c0 = arith.constant 0 : index
    %c0_0 = arith.constant 0 : index
    %0 = vector.load %arg1[%c0, %c0_0] : memref<16x32xbf16, #tpu.memory_space<vmem>>, vector<16x32xbf16>
    %c0_1 = arith.constant 0 : index
    %c0_2 = arith.constant 0 : index
    %1 = vector.load %arg2[%c0_1, %c0_2] : memref<16x32xbf16, #tpu.memory_space<vmem>>, vector<16x32xbf16>
    %2 = arith.addf %0, %1 : vector<16x32xbf16>
    %c0_3 = arith.constant 0 : index
    %c0_4 = arith.constant 0 : index
    %3 = vector.load %arg3[%c0_3, %c0_4] : memref<32x32xbf16, #tpu.memory_space<vmem>>, vector<32x32xbf16>
    %c0_5 = arith.constant 0 : index
    %c0_6 = arith.constant 0 : index
    %4 = vector.load %arg4[%c0_5, %c0_6] : memref<1x32xf32, #tpu.memory_space<vmem>>, vector<1x32xf32>
    %cst = arith.constant dense<0.000000e+00> : vector<16x32xf32>
    %5 = tpu.matmul %2, %3, %cst {dimension_numbers = #tpu.dot_dimension_numbers<[1], [0], [0], [1], [0, 0, 1, 1], [], []>} : vector<16x32xbf16>, vector<32x32xbf16>, vector<16x32xf32> -> vector<16x32xf32>
    %6 = vector.broadcast %4 : vector<1x32xf32> to vector<16x32xf32>
    %7 = arith.addf %5, %6 : vector<16x32xf32>
    %8 = arith.truncf %7 : vector<16x32xf32> to vector<16x32xbf16>
    %c0_7 = arith.constant 0 : index
    %c0_8 = arith.constant 0 : index
    %9 = vector.load %arg5[%c0_7, %c0_8] : memref<16x32xbf16, #tpu.memory_space<vmem>>, vector<16x32xbf16>
    tpu.vector_store %arg5[%c0_7, %c0_8], %8 {strides = array<i32>} : memref<16x32xbf16, #tpu.memory_space<vmem>>, vector<16x32xbf16>,
    return
  }
  func.func @transform_0(%arg0: i32) -> (i32, i32) {
    %c0_i32 = arith.constant 0 : i32
    %c0_i32_0 = arith.constant 0 : i32
    return %arg0, %c0_i32 : i32, i32
  }
  func.func @transform_1(%arg0: i32) -> (i32, i32) {
    %c0_i32 = arith.constant 0 : i32
    %c0_i32_0 = arith.constant 0 : i32
    return %arg0, %c0_i32 : i32, i32
  }
  func.func @transform_2(%arg0: i32) -> (i32, i32) {
    %c0_i32 = arith.constant 0 : i32
    %c0_i32_0 = arith.constant 0 : i32
    %c0_i32_1 = arith.constant 0 : i32
    return %c0_i32, %c0_i32_0 : i32, i32
  }
  func.func @transform_3(%arg0: i32) -> (i32, i32) {
    %c0_i32 = arith.constant 0 : i32
    %c0_i32_0 = arith.constant 0 : i32
    %c0_i32_1 = arith.constant 0 : i32
    return %c0_i32, %c0_i32_0 : i32, i32
  }
  func.func @transform_4(%arg0: i32) -> (i32, i32) {
    %c0_i32 = arith.constant 0 : i32
    %c0_i32_0 = arith.constant 0 : i32
    return %arg0, %c0_i32 : i32, i32
  }
}

module attributes {stable_mosaic.version = 11 : i64} {
  func.func @_attention_kernel(%arg0: i32, %arg1: i32, %arg2: memref<1x8x32xbf16, #tpu.memory_space<vmem>>, %arg3: memref<1x16x32xbf16, #tpu.memory_space<vmem>>, %arg4: memref<1x16x32xbf16, #tpu.memory_space<vmem>>, %arg5: memref<1x1x16xf32, #tpu.memory_space<vmem>>, %arg6: memref<1x8x32xbf16, #tpu.memory_space<vmem>>) attributes {dimension_semantics = [#tpu.dimension_semantics<parallel>, #tpu.dimension_semantics<parallel>], iteration_bounds = array<i64: 2, 1>, scalar_prefetch = 0 : i64, scratch_operands = 0 : i64, tpu.core_type = #tpu.core_type<tc>, window_params = [{transform_indices = @transform_0, window_bounds = array<i64: 1, 8, 32>}, {transform_indices = @transform_1, window_bounds = array<i64: 1, 16, 32>}, {transform_indices = @transform_2, window_bounds = array<i64: 1, 16, 32>}, {transform_indices = @transform_3, window_bounds = array<i64: 1, 1, 16>}, {transform_indices = @transform_4, window_bounds = array<i64: 1, 8, 32>}]} {
    %c0 = arith.constant 0 : index
    %c0_0 = arith.constant 0 : index
    %c0_1 = arith.constant 0 : index
    %0 = vector.load %arg2[%c0, %c0_0, %c0_1] : memref<1x8x32xbf16, #tpu.memory_space<vmem>>, vector<1x8x32xbf16>
    %1 = vector.shape_cast %0 : vector<1x8x32xbf16> to vector<8x32xbf16>
    %c0_2 = arith.constant 0 : index
    %c0_3 = arith.constant 0 : index
    %c0_4 = arith.constant 0 : index
    %2 = vector.load %arg3[%c0_2, %c0_3, %c0_4] : memref<1x16x32xbf16, #tpu.memory_space<vmem>>, vector<1x16x32xbf16>
    %3 = vector.shape_cast %2 : vector<1x16x32xbf16> to vector<16x32xbf16>
    %c0_5 = arith.constant 0 : index
    %c0_6 = arith.constant 0 : index
    %c0_7 = arith.constant 0 : index
    %4 = vector.load %arg4[%c0_5, %c0_6, %c0_7] : memref<1x16x32xbf16, #tpu.memory_space<vmem>>, vector<1x16x32xbf16>
    %5 = vector.shape_cast %4 : vector<1x16x32xbf16> to vector<16x32xbf16>
    %c0_8 = arith.constant 0 : index
    %c0_9 = arith.constant 0 : index
    %c0_10 = arith.constant 0 : index
    %6 = vector.load %arg5[%c0_8, %c0_9, %c0_10] : memref<1x1x16xf32, #tpu.memory_space<vmem>>, vector<1x1x16xf32>
    %7 = vector.shape_cast %6 : vector<1x1x16xf32> to vector<1x16xf32>
    %8 = vector.extract_strided_slice %1 {offsets = [0, 0], sizes = [8, 8], strides = [1, 1]} : vector<8x32xbf16> to vector<8x8xbf16>
    %cst = arith.constant 3.535160e-01 : bf16
    %9 = vector.broadcast %cst : bf16 to vector<8x8xbf16>
    %10 = arith.mulf %8, %9 : vector<8x8xbf16>
    %11 = vector.extract_strided_slice %3 {offsets = [0, 0], sizes = [16, 8], strides = [1, 1]} : vector<16x32xbf16> to vector<16x8xbf16>
    %12 = vector.extract_strided_slice %5 {offsets = [0, 0], sizes = [16, 8], strides = [1, 1]} : vector<16x32xbf16> to vector<16x8xbf16>
    %cst_11 = arith.constant dense<0.000000e+00> : vector<8x16xf32>
    %13 = tpu.matmul %10, %11, %cst_11 {dimension_numbers = #tpu.dot_dimension_numbers<[1], [1], [0], [0], [0, 0, 1, 0], [], []>} : vector<8x8xbf16>, vector<16x8xbf16>, vector<8x16xf32> -> vector<8x16xf32>
    %14 = vector.broadcast %7 : vector<1x16xf32> to vector<8x16xf32>
    %15 = arith.addf %13, %14 : vector<8x16xf32>
    %cst_12 = arith.constant dense<0xFF800000> : vector<8xf32>
    %16 = vector.multi_reduction <maximumf>, %15, %cst_12 [1] : vector<8x16xf32> to vector<8xf32>
    %17 = vector.shape_cast %16 : vector<8xf32> to vector<8x1xf32>
    %18 = vector.broadcast %17 : vector<8x1xf32> to vector<8x16xf32>
    %19 = arith.subf %15, %18 : vector<8x16xf32>
    %20 = math.exp %19 : vector<8x16xf32>
    %cst_13 = arith.constant dense<0.000000e+00> : vector<8xf32>
    %21 = vector.multi_reduction <add>, %20, %cst_13 [1] : vector<8x16xf32> to vector<8xf32>
    %22 = vector.shape_cast %21 : vector<8xf32> to vector<8x1xf32>
    %23 = tpu.reciprocal %22 {approx = true} : vector<8x1xf32> -> vector<8x1xf32>
    %24 = arith.truncf %20 : vector<8x16xf32> to vector<8x16xbf16>
    %cst_14 = arith.constant dense<0.000000e+00> : vector<8x8xf32>
    %25 = tpu.matmul %24, %12, %cst_14 {dimension_numbers = #tpu.dot_dimension_numbers<[1], [0], [0], [1], [0, 0, 1, 1], [], []>} : vector<8x16xbf16>, vector<16x8xbf16>, vector<8x8xf32> -> vector<8x8xf32>
    %26 = vector.broadcast %23 : vector<8x1xf32> to vector<8x8xf32>
    %27 = arith.mulf %25, %26 : vector<8x8xf32>
    %28 = arith.truncf %27 : vector<8x8xf32> to vector<8x8xbf16>
    %29 = vector.extract_strided_slice %1 {offsets = [0, 8], sizes = [8, 8], strides = [1, 1]} : vector<8x32xbf16> to vector<8x8xbf16>
    %cst_15 = arith.constant 3.535160e-01 : bf16
    %30 = vector.broadcast %cst_15 : bf16 to vector<8x8xbf16>
    %31 = arith.mulf %29, %30 : vector<8x8xbf16>
    %32 = vector.extract_strided_slice %3 {offsets = [0, 8], sizes = [16, 8], strides = [1, 1]} : vector<16x32xbf16> to vector<16x8xbf16>
    %33 = vector.extract_strided_slice %5 {offsets = [0, 8], sizes = [16, 8], strides = [1, 1]} : vector<16x32xbf16> to vector<16x8xbf16>
    %cst_16 = arith.constant dense<0.000000e+00> : vector<8x16xf32>
    %34 = tpu.matmul %31, %32, %cst_16 {dimension_numbers = #tpu.dot_dimension_numbers<[1], [1], [0], [0], [0, 0, 1, 0], [], []>} : vector<8x8xbf16>, vector<16x8xbf16>, vector<8x16xf32> -> vector<8x16xf32>
    %35 = vector.broadcast %7 : vector<1x16xf32> to vector<8x16xf32>
    %36 = arith.addf %34, %35 : vector<8x16xf32>
    %cst_17 = arith.constant dense<0xFF800000> : vector<8xf32>
    %37 = vector.multi_reduction <maximumf>, %36, %cst_17 [1] : vector<8x16xf32> to vector<8xf32>
    %38 = vector.shape_cast %37 : vector<8xf32> to vector<8x1xf32>
    %39 = vector.broadcast %38 : vector<8x1xf32> to vector<8x16xf32>
    %40 = arith.subf %36, %39 : vector<8x16xf32>
    %41 = math.exp %40 : vector<8x16xf32>
    %cst_18 = arith.constant dense<0.000000e+00> : vector<8xf32>
    %42 = vector.multi_reduction <add>, %41, %cst_18 [1] : vector<8x16xf32> to vector<8xf32>
    %43 = vector.shape_cast %42 : vector<8xf32> to vector<8x1xf32>
    %44 = tpu.reciprocal %43 {approx = true} : vector<8x1xf32> -> vector<8x1xf32>
    %45 = arith.truncf %41 : vector<8x16xf32> to vector<8x16xbf16>
    %cst_19 = arith.constant dense<0.000000e+00> : vector<8x8xf32>
    %46 = tpu.matmul %45, %33, %cst_19 {dimension_numbers = #tpu.dot_dimension_numbers<[1], [0], [0], [1], [0, 0, 1, 1], [], []>} : vector<8x16xbf16>, vector<16x8xbf16>, vector<8x8xf32> -> vector<8x8xf32>
    %47 = vector.broadcast %44 : vector<8x1xf32> to vector<8x8xf32>
    %48 = arith.mulf %46, %47 : vector<8x8xf32>
    %49 = arith.truncf %48 : vector<8x8xf32> to vector<8x8xbf16>
    %50 = vector.extract_strided_slice %1 {offsets = [0, 16], sizes = [8, 8], strides = [1, 1]} : vector<8x32xbf16> to vector<8x8xbf16>
    %cst_20 = arith.constant 3.535160e-01 : bf16
    %51 = vector.broadcast %cst_20 : bf16 to vector<8x8xbf16>
    %52 = arith.mulf %50, %51 : vector<8x8xbf16>
    %53 = vector.extract_strided_slice %3 {offsets = [0, 16], sizes = [16, 8], strides = [1, 1]} : vector<16x32xbf16> to vector<16x8xbf16>
    %54 = vector.extract_strided_slice %5 {offsets = [0, 16], sizes = [16, 8], strides = [1, 1]} : vector<16x32xbf16> to vector<16x8xbf16>
    %cst_21 = arith.constant dense<0.000000e+00> : vector<8x16xf32>
    %55 = tpu.matmul %52, %53, %cst_21 {dimension_numbers = #tpu.dot_dimension_numbers<[1], [1], [0], [0], [0, 0, 1, 0], [], []>} : vector<8x8xbf16>, vector<16x8xbf16>, vector<8x16xf32> -> vector<8x16xf32>
    %56 = vector.broadcast %7 : vector<1x16xf32> to vector<8x16xf32>
    %57 = arith.addf %55, %56 : vector<8x16xf32>
    %cst_22 = arith.constant dense<0xFF800000> : vector<8xf32>
    %58 = vector.multi_reduction <maximumf>, %57, %cst_22 [1] : vector<8x16xf32> to vector<8xf32>
    %59 = vector.shape_cast %58 : vector<8xf32> to vector<8x1xf32>
    %60 = vector.broadcast %59 : vector<8x1xf32> to vector<8x16xf32>
    %61 = arith.subf %57, %60 : vector<8x16xf32>
    %62 = math.exp %61 : vector<8x16xf32>
    %cst_23 = arith.constant dense<0.000000e+00> : vector<8xf32>
    %63 = vector.multi_reduction <add>, %62, %cst_23 [1] : vector<8x16xf32> to vector<8xf32>
    %64 = vector.shape_cast %63 : vector<8xf32> to vector<8x1xf32>
    %65 = tpu.reciprocal %64 {approx = true} : vector<8x1xf32> -> vector<8x1xf32>
    %66 = arith.truncf %62 : vector<8x16xf32> to vector<8x16xbf16>
    %cst_24 = arith.constant dense<0.000000e+00> : vector<8x8xf32>
    %67 = tpu.matmul %66, %54, %cst_24 {dimension_numbers = #tpu.dot_dimension_numbers<[1], [0], [0], [1], [0, 0, 1, 1], [], []>} : vector<8x16xbf16>, vector<16x8xbf16>, vector<8x8xf32> -> vector<8x8xf32>
    %68 = vector.broadcast %65 : vector<8x1xf32> to vector<8x8xf32>
    %69 = arith.mulf %67, %68 : vector<8x8xf32>
    %70 = arith.truncf %69 : vector<8x8xf32> to vector<8x8xbf16>
    %71 = vector.extract_strided_slice %1 {offsets = [0, 24], sizes = [8, 8], strides = [1, 1]} : vector<8x32xbf16> to vector<8x8xbf16>
    %cst_25 = arith.constant 3.535160e-01 : bf16
    %72 = vector.broadcast %cst_25 : bf16 to vector<8x8xbf16>
    %73 = arith.mulf %71, %72 : vector<8x8xbf16>
    %74 = vector.extract_strided_slice %3 {offsets = [0, 24], sizes = [16, 8], strides = [1, 1]} : vector<16x32xbf16> to vector<16x8xbf16>
    %75 = vector.extract_strided_slice %5 {offsets = [0, 24], sizes = [16, 8], strides = [1, 1]} : vector<16x32xbf16> to vector<16x8xbf16>
    %cst_26 = arith.constant dense<0.000000e+00> : vector<8x16xf32>
    %76 = tpu.matmul %73, %74, %cst_26 {dimension_numbers = #tpu.dot_dimension_numbers<[1], [1], [0], [0], [0, 0, 1, 0], [], []>} : vector<8x8xbf16>, vector<16x8xbf16>, vector<8x16xf32> -> vector<8x16xf32>
    %77 = vector.broadcast %7 : vector<1x16xf32> to vector<8x16xf32>
    %78 = arith.addf %76, %77 : vector<8x16xf32>
    %cst_27 = arith.constant dense<0xFF800000> : vector<8xf32>
    %79 = vector.multi_reduction <maximumf>, %78, %cst_27 [1] : vector<8x16xf32> to vector<8xf32>
    %80 = vector.shape_cast %79 : vector<8xf32> to vector<8x1xf32>
    %81 = vector.broadcast %80 : vector<8x1xf32> to vector<8x16xf32>
    %82 = arith.subf %78, %81 : vector<8x16xf32>
    %83 = math.exp %82 : vector<8x16xf32>
    %cst_28 = arith.constant dense<0.000000e+00> : vector<8xf32>
    %84 = vector.multi_reduction <add>, %83, %cst_28 [1] : vector<8x16xf32> to vector<8xf32>
    %85 = vector.shape_cast %84 : vector<8xf32> to vector<8x1xf32>
    %86 = tpu.reciprocal %85 {approx = true} : vector<8x1xf32> -> vector<8x1xf32>
    %87 = arith.truncf %83 : vector<8x16xf32> to vector<8x16xbf16>
    %cst_29 = arith.constant dense<0.000000e+00> : vector<8x8xf32>
    %88 = tpu.matmul %87, %75, %cst_29 {dimension_numbers = #tpu.dot_dimension_numbers<[1], [0], [0], [1], [0, 0, 1, 1], [], []>} : vector<8x16xbf16>, vector<16x8xbf16>, vector<8x8xf32> -> vector<8x8xf32>
    %89 = vector.broadcast %86 : vector<8x1xf32> to vector<8x8xf32>
    %90 = arith.mulf %88, %89 : vector<8x8xf32>
    %91 = arith.truncf %90 : vector<8x8xf32> to vector<8x8xbf16>
    %92 = tpu.concatenate %28, %49, %70, %91 in 1 : vector<8x8xbf16>, vector<8x8xbf16>, vector<8x8xbf16>, vector<8x8xbf16> -> vector<8x32xbf16>
    %c0_30 = arith.constant 0 : index
    %c0_31 = arith.constant 0 : index
    %c0_32 = arith.constant 0 : index
    %93 = vector.load %arg6[%c0_30, %c0_31, %c0_32] : memref<1x8x32xbf16, #tpu.memory_space<vmem>>, vector<1x8x32xbf16>
    %94 = vector.shape_cast %93 : vector<1x8x32xbf16> to vector<8x32xbf16>
    %95 = vector.shape_cast %92 : vector<8x32xbf16> to vector<1x8x32xbf16>
    tpu.vector_store %arg6[%c0_30, %c0_31, %c0_32], %95 {strides = array<i32>} : memref<1x8x32xbf16, #tpu.memory_space<vmem>>, vector<1x8x32xbf16>,
    return
  }
  func.func @transform_0(%arg0: i32, %arg1: i32) -> (i32, i32, i32) {
    %c0_i32 = arith.constant 0 : i32
    %c0_i32_0 = arith.constant 0 : i32
    return %arg0, %arg1, %c0_i32 : i32, i32, i32
  }
  func.func @transform_1(%arg0: i32, %arg1: i32) -> (i32, i32, i32) {
    %c0_i32 = arith.constant 0 : i32
    %c0_i32_0 = arith.constant 0 : i32
    %c0_i32_1 = arith.constant 0 : i32
    return %arg0, %c0_i32, %c0_i32_0 : i32, i32, i32
  }
  func.func @transform_2(%arg0: i32, %arg1: i32) -> (i32, i32, i32) {
    %c0_i32 = arith.constant 0 : i32
    %c0_i32_0 = arith.constant 0 : i32
    %c0_i32_1 = arith.constant 0 : i32
    return %arg0, %c0_i32, %c0_i32_0 : i32, i32, i32
  }
  func.func @transform_3(%arg0: i32, %arg1: i32) -> (i32, i32, i32) {
    %c0_i32 = arith.constant 0 : i32
    %c0_i32_0 = arith.constant 0 : i32
    %c0_i32_1 = arith.constant 0 : i32
    return %arg0, %c0_i32, %c0_i32_0 : i32, i32, i32
  }
  func.func @transform_4(%arg0: i32, %arg1: i32) -> (i32, i32, i32) {
    %c0_i32 = arith.constant 0 : i32
    %c0_i32_0 = arith.constant 0 : i32
    return %arg0, %arg1, %c0_i32 : i32, i32, i32
  }
}

module attributes {stable_mosaic.version = 11 : i64} {
  func.func @_fused_linear_kernel(%arg0: i32, %arg1: memref<16x32xbf16, #tpu.memory_space<vmem>>, %arg2: memref<32x32xbf16, #tpu.memory_space<vmem>>, %arg3: memref<1x32xf32, #tpu.memory_space<vmem>>, %arg4: memref<16x32xbf16, #tpu.memory_space<vmem>>, %arg5: memref<1x32xf32, #tpu.memory_space<vmem>>, %arg6: memref<1x32xf32, #tpu.memory_space<vmem>>, %arg7: memref<16x32xbf16, #tpu.memory_space<vmem>>) attributes {dimension_semantics = [#tpu.dimension_semantics<parallel>], iteration_bounds = array<i64: 1>, scalar_prefetch = 0 : i64, scratch_operands = 0 : i64, tpu.core_type = #tpu.core_type<tc>, window_params = [{transform_indices = @transform_0, window_bounds = array<i64: 16, 32>}, {pipeline_mode = #tpu.pipeline_mode<synchronous>, transform_indices = @transform_1, window_bounds = array<i64: 32, 32>}, {pipeline_mode = #tpu.pipeline_mode<synchronous>, transform_indices = @transform_2, window_bounds = array<i64: 1, 32>}, {transform_indices = @transform_3, window_bounds = array<i64: 16, 32>}, {pipeline_mode = #tpu.pipeline_mode<synchronous>, transform_indices = @transform_4, window_bounds = array<i64: 1, 32>}, {pipeline_mode = #tpu.pipeline_mode<synchronous>, transform_indices = @transform_5, window_bounds = array<i64: 1, 32>}, {transform_indices = @transform_6, window_bounds = array<i64: 16, 32>}]} {
    %c0 = arith.constant 0 : index
    %c0_0 = arith.constant 0 : index
    %0 = vector.load %arg1[%c0, %c0_0] : memref<16x32xbf16, #tpu.memory_space<vmem>>, vector<16x32xbf16>
    %c0_1 = arith.constant 0 : index
    %c0_2 = arith.constant 0 : index
    %1 = vector.load %arg2[%c0_1, %c0_2] : memref<32x32xbf16, #tpu.memory_space<vmem>>, vector<32x32xbf16>
    %c0_3 = arith.constant 0 : index
    %c0_4 = arith.constant 0 : index
    %2 = vector.load %arg3[%c0_3, %c0_4] : memref<1x32xf32, #tpu.memory_space<vmem>>, vector<1x32xf32>
    %cst = arith.constant dense<0.000000e+00> : vector<16x32xf32>
    %3 = tpu.matmul %0, %1, %cst {dimension_numbers = #tpu.dot_dimension_numbers<[1], [0], [0], [1], [0, 0, 1, 1], [], []>} : vector<16x32xbf16>, vector<32x32xbf16>, vector<16x32xf32> -> vector<16x32xf32>
    %4 = vector.broadcast %2 : vector<1x32xf32> to vector<16x32xf32>
    %5 = arith.addf %3, %4 : vector<16x32xf32>
    %c0_5 = arith.constant 0 : index
    %c0_6 = arith.constant 0 : index
    %6 = vector.load %arg4[%c0_5, %c0_6] : memref<16x32xbf16, #tpu.memory_space<vmem>>, vector<16x32xbf16>
    %7 = arith.extf %6 : vector<16x32xbf16> to vector<16x32xf32>
    %8 = arith.addf %5, %7 : vector<16x32xf32>
    %c0_7 = arith.constant 0 : index
    %c0_8 = arith.constant 0 : index
    %9 = vector.load %arg5[%c0_7, %c0_8] : memref<1x32xf32, #tpu.memory_space<vmem>>, vector<1x32xf32>
    %c0_9 = arith.constant 0 : index
    %c0_10 = arith.constant 0 : index
    %10 = vector.load %arg6[%c0_9, %c0_10] : memref<1x32xf32, #tpu.memory_space<vmem>>, vector<1x32xf32>
    %cst_11 = arith.constant dense<0.000000e+00> : vector<16xf32>
    %11 = vector.multi_reduction <add>, %8, %cst_11 [1] : vector<16x32xf32> to vector<16xf32>
    %12 = vector.shape_cast %11 : vector<16xf32> to vector<16x1xf32>
    %cst_12 = arith.constant 3.200000e+01 : f32
    %13 = vector.broadcast %cst_12 : f32 to vector<16x1xf32>
    %14 = arith.divf %12, %13 : vector<16x1xf32>
    %15 = vector.broadcast %14 : vector<16x1xf32> to vector<16x32xf32>
    %16 = arith.subf %8, %15 : vector<16x32xf32>
    %17 = arith.mulf %16, %16 : vector<16x32xf32>
    %cst_13 = arith.constant dense<0.000000e+00> : vector<16xf32>
    %18 = vector.multi_reduction <add>, %17, %cst_13 [1] : vector<16x32xf32> to vector<16xf32>
    %19 = vector.shape_cast %18 : vector<16xf32> to vector<16x1xf32>
    %cst_14 = arith.constant 3.200000e+01 : f32
    %20 = vector.broadcast %cst_14 : f32 to vector<16x1xf32>
    %21 = arith.divf %19, %20 : vector<16x1xf32>
    %22 = vector.broadcast %14 : vector<16x1xf32> to vector<16x32xf32>
    %23 = arith.subf %8, %22 : vector<16x32xf32>
    %cst_15 = arith.constant 9.99999974E-6 : f32
    %24 = vector.broadcast %cst_15 : f32 to vector<16x1xf32>
    %25 = arith.addf %21, %24 : vector<16x1xf32>
    %26 = math.rsqrt %25 : vector<16x1xf32>
    %27 = vector.broadcast %26 : vector<16x1xf32> to vector<16x32xf32>
    %28 = arith.mulf %23, %27 : vector<16x32xf32>
    %29 = vector.broadcast %9 : vector<1x32xf32> to vector<16x32xf32>
    %30 = arith.mulf %28, %29 : vector<16x32xf32>
    %31 = vector.broadcast %10 : vector<1x32xf32> to vector<16x32xf32>
    %32 = arith.addf %30, %31 : vector<16x32xf32>
    %33 = arith.truncf %32 : vector<16x32xf32> to vector<16x32xbf16>
    %c0_16 = arith.constant 0 : index
    %c0_17 = arith.constant 0 : index
    %34 = vector.load %arg7[%c0_16, %c0_17] : memref<16x32xbf16, #tpu.memory_space<vmem>>, vector<16x32xbf16>
    tpu.vector_store %arg7[%c0_16, %c0_17], %33 {strides = array<i32>} : memref<16x32xbf16, #tpu.memory_space<vmem>>, vector<16x32xbf16>,
    return
  }
  func.func @transform_0(%arg0: i32) -> (i32, i32) {
    %c0_i32 = arith.constant 0 : i32
    %c0_i32_0 = arith.constant 0 : i32
    return %arg0, %c0_i32 : i32, i32
  }
  func.func @transform_1(%arg0: i32) -> (i32, i32) {
    %c0_i32 = arith.constant 0 : i32
    %c0_i32_0 = arith.constant 0 : i32
    %c0_i32_1 = arith.constant 0 : i32
    return %c0_i32, %c0_i32_0 : i32, i32
  }
  func.func @transform_2(%arg0: i32) -> (i32, i32) {
    %c0_i32 = arith.constant 0 : i32
    %c0_i32_0 = arith.constant 0 : i32
    %c0_i32_1 = arith.constant 0 : i32
    return %c0_i32, %c0_i32_0 : i32, i32
  }
  func.func @transform_3(%arg0: i32) -> (i32, i32) {
    %c0_i32 = arith.constant 0 : i32
    %c0_i32_0 = arith.constant 0 : i32
    return %arg0, %c0_i32 : i32, i32
  }
  func.func @transform_4(%arg0: i32) -> (i32, i32) {
    %c0_i32 = arith.constant 0 : i32
    %c0_i32_0 = arith.constant 0 : i32
    %c0_i32_1 = arith.constant 0 : i32
    return %c0_i32, %c0_i32_0 : i32, i32
  }
  func.func @transform_5(%arg0: i32) -> (i32, i32) {
    %c0_i32 = arith.constant 0 : i32
    %c0_i32_0 = arith.constant 0 : i32
    %c0_i32_1 = arith.constant 0 : i32
    return %c0_i32, %c0_i32_0 : i32, i32
  }
  func.func @transform_6(%arg0: i32) -> (i32, i32) {
    %c0_i32 = arith.constant 0 : i32
    %c0_i32_0 = arith.constant 0 : i32
    return %arg0, %c0_i32 : i32, i32
  }
}

module attributes {stable_mosaic.version = 11 : i64} {
  func.func @_ffn_kernel(%arg0: i32, %arg1: memref<16x32xbf16, #tpu.memory_space<vmem>>, %arg2: memref<32x64xbf16, #tpu.memory_space<vmem>>, %arg3: memref<1x64xf32, #tpu.memory_space<vmem>>, %arg4: memref<64x32xbf16, #tpu.memory_space<vmem>>, %arg5: memref<1x32xf32, #tpu.memory_space<vmem>>, %arg6: memref<1x32xf32, #tpu.memory_space<vmem>>, %arg7: memref<1x32xf32, #tpu.memory_space<vmem>>, %arg8: memref<16x32xbf16, #tpu.memory_space<vmem>>) attributes {dimension_semantics = [#tpu.dimension_semantics<parallel>], iteration_bounds = array<i64: 1>, scalar_prefetch = 0 : i64, scratch_operands = 0 : i64, tpu.core_type = #tpu.core_type<tc>, window_params = [{transform_indices = @transform_0, window_bounds = array<i64: 16, 32>}, {pipeline_mode = #tpu.pipeline_mode<synchronous>, transform_indices = @transform_1, window_bounds = array<i64: 32, 64>}, {pipeline_mode = #tpu.pipeline_mode<synchronous>, transform_indices = @transform_2, window_bounds = array<i64: 1, 64>}, {pipeline_mode = #tpu.pipeline_mode<synchronous>, transform_indices = @transform_3, window_bounds = array<i64: 64, 32>}, {pipeline_mode = #tpu.pipeline_mode<synchronous>, transform_indices = @transform_4, window_bounds = array<i64: 1, 32>}, {pipeline_mode = #tpu.pipeline_mode<synchronous>, transform_indices = @transform_5, window_bounds = array<i64: 1, 32>}, {pipeline_mode = #tpu.pipeline_mode<synchronous>, transform_indices = @transform_6, window_bounds = array<i64: 1, 32>}, {transform_indices = @transform_7, window_bounds = array<i64: 16, 32>}]} {
    %c0 = arith.constant 0 : index
    %c0_0 = arith.constant 0 : index
    %0 = vector.load %arg1[%c0, %c0_0] : memref<16x32xbf16, #tpu.memory_space<vmem>>, vector<16x32xbf16>
    %c0_1 = arith.constant 0 : index
    %c0_2 = arith.constant 0 : index
    %1 = vector.load %arg2[%c0_1, %c0_2] : memref<32x64xbf16, #tpu.memory_space<vmem>>, vector<32x64xbf16>
    %cst = arith.constant dense<0.000000e+00> : vector<16x64xf32>
    %2 = tpu.matmul %0, %1, %cst {dimension_numbers = #tpu.dot_dimension_numbers<[1], [0], [0], [1], [0, 0, 1, 1], [], []>} : vector<16x32xbf16>, vector<32x64xbf16>, vector<16x64xf32> -> vector<16x64xf32>
    %c0_3 = arith.constant 0 : index
    %c0_4 = arith.constant 0 : index
    %3 = vector.load %arg3[%c0_3, %c0_4] : memref<1x64xf32, #tpu.memory_space<vmem>>, vector<1x64xf32>
    %4 = vector.broadcast %3 : vector<1x64xf32> to vector<16x64xf32>
    %5 = arith.addf %2, %4 : vector<16x64xf32>
    %cst_5 = arith.constant 0.000000e+00 : f32
    %6 = vector.broadcast %cst_5 : f32 to vector<16x64xf32>
    %7 = arith.maximumf %5, %6 : vector<16x64xf32>
    %8 = arith.truncf %7 : vector<16x64xf32> to vector<16x64xbf16>
    %c0_6 = arith.constant 0 : index
    %c0_7 = arith.constant 0 : index
    %9 = vector.load %arg4[%c0_6, %c0_7] : memref<64x32xbf16, #tpu.memory_space<vmem>>, vector<64x32xbf16>
    %cst_8 = arith.constant dense<0.000000e+00> : vector<16x32xf32>
    %10 = tpu.matmul %8, %9, %cst_8 {dimension_numbers = #tpu.dot_dimension_numbers<[1], [0], [0], [1], [0, 0, 1, 1], [], []>} : vector<16x64xbf16>, vector<64x32xbf16>, vector<16x32xf32> -> vector<16x32xf32>
    %c0_9 = arith.constant 0 : index
    %c0_10 = arith.constant 0 : index
    %11 = vector.load %arg5[%c0_9, %c0_10] : memref<1x32xf32, #tpu.memory_space<vmem>>, vector<1x32xf32>
    %12 = vector.broadcast %11 : vector<1x32xf32> to vector<16x32xf32>
    %13 = arith.addf %10, %12 : vector<16x32xf32>
    %14 = arith.extf %0 : vector<16x32xbf16> to vector<16x32xf32>
    %15 = arith.addf %13, %14 : vector<16x32xf32>
    %cst_11 = arith.constant dense<0.000000e+00> : vector<16xf32>
    %16 = vector.multi_reduction <add>, %15, %cst_11 [1] : vector<16x32xf32> to vector<16xf32>
    %17 = vector.shape_cast %16 : vector<16xf32> to vector<16x1xf32>
    %cst_12 = arith.constant 3.200000e+01 : f32
    %18 = vector.broadcast %cst_12 : f32 to vector<16x1xf32>
    %19 = arith.divf %17, %18 : vector<16x1xf32>
    %20 = vector.broadcast %19 : vector<16x1xf32> to vector<16x32xf32>
    %21 = arith.subf %15, %20 : vector<16x32xf32>
    %22 = arith.mulf %21, %21 : vector<16x32xf32>
    %cst_13 = arith.constant dense<0.000000e+00> : vector<16xf32>
    %23 = vector.multi_reduction <add>, %22, %cst_13 [1] : vector<16x32xf32> to vector<16xf32>
    %24 = vector.shape_cast %23 : vector<16xf32> to vector<16x1xf32>
    %cst_14 = arith.constant 3.200000e+01 : f32
    %25 = vector.broadcast %cst_14 : f32 to vector<16x1xf32>
    %26 = arith.divf %24, %25 : vector<16x1xf32>
    %27 = vector.broadcast %19 : vector<16x1xf32> to vector<16x32xf32>
    %28 = arith.subf %15, %27 : vector<16x32xf32>
    %cst_15 = arith.constant 9.99999974E-6 : f32
    %29 = vector.broadcast %cst_15 : f32 to vector<16x1xf32>
    %30 = arith.addf %26, %29 : vector<16x1xf32>
    %31 = math.rsqrt %30 : vector<16x1xf32>
    %32 = vector.broadcast %31 : vector<16x1xf32> to vector<16x32xf32>
    %33 = arith.mulf %28, %32 : vector<16x32xf32>
    %c0_16 = arith.constant 0 : index
    %c0_17 = arith.constant 0 : index
    %34 = vector.load %arg6[%c0_16, %c0_17] : memref<1x32xf32, #tpu.memory_space<vmem>>, vector<1x32xf32>
    %35 = vector.broadcast %34 : vector<1x32xf32> to vector<16x32xf32>
    %36 = arith.mulf %33, %35 : vector<16x32xf32>
    %c0_18 = arith.constant 0 : index
    %c0_19 = arith.constant 0 : index
    %37 = vector.load %arg7[%c0_18, %c0_19] : memref<1x32xf32, #tpu.memory_space<vmem>>, vector<1x32xf32>
    %38 = vector.broadcast %37 : vector<1x32xf32> to vector<16x32xf32>
    %39 = arith.addf %36, %38 : vector<16x32xf32>
    %40 = arith.truncf %39 : vector<16x32xf32> to vector<16x32xbf16>
    %c0_20 = arith.constant 0 : index
    %c0_21 = arith.constant 0 : index
    %41 = vector.load %arg8[%c0_20, %c0_21] : memref<16x32xbf16, #tpu.memory_space<vmem>>, vector<16x32xbf16>
    tpu.vector_store %arg8[%c0_20, %c0_21], %40 {strides = array<i32>} : memref<16x32xbf16, #tpu.memory_space<vmem>>, vector<16x32xbf16>,
    return
  }
  func.func @transform_0(%arg0: i32) -> (i32, i32) {
    %c0_i32 = arith.constant 0 : i32
    %c0_i32_0 = arith.constant 0 : i32
    return %arg0, %c0_i32 : i32, i32
  }
  func.func @transform_1(%arg0: i32) -> (i32, i32) {
    %c0_i32 = arith.constant 0 : i32
    %c0_i32_0 = arith.constant 0 : i32
    %c0_i32_1 = arith.constant 0 : i32
    return %c0_i32, %c0_i32_0 : i32, i32
  }
  func.func @transform_2(%arg0: i32) -> (i32, i32) {
    %c0_i32 = arith.constant 0 : i32
    %c0_i32_0 = arith.constant 0 : i32
    %c0_i32_1 = arith.constant 0 : i32
    return %c0_i32, %c0_i32_0 : i32, i32
  }
  func.func @transform_3(%arg0: i32) -> (i32, i32) {
    %c0_i32 = arith.constant 0 : i32
    %c0_i32_0 = arith.constant 0 : i32
    %c0_i32_1 = arith.constant 0 : i32
    return %c0_i32, %c0_i32_0 : i32, i32
  }
  func.func @transform_4(%arg0: i32) -> (i32, i32) {
    %c0_i32 = arith.constant 0 : i32
    %c0_i32_0 = arith.constant 0 : i32
    %c0_i32_1 = arith.constant 0 : i32
    return %c0_i32, %c0_i32_0 : i32, i32
  }
  func.func @transform_5(%arg0: i32) -> (i32, i32) {
    %c0_i32 = arith.constant 0 : i32
    %c0_i32_0 = arith.constant 0 : i32
    %c0_i32_1 = arith.constant 0 : i32
    return %c0_i32, %c0_i32_0 : i32, i32
  }
  func.func @transform_6(%arg0: i32) -> (i32, i32) {
    %c0_i32 = arith.constant 0 : i32
    %c0_i32_0 = arith.constant 0 : i32
    %c0_i32_1 = arith.constant 0 : i32
    return %c0_i32, %c0_i32_0 : i32, i32
  }
  func.func @transform_7(%arg0: i32) -> (i32, i32) {
    %c0_i32 = arith.constant 0 : i32
    %c0_i32_0 = arith.constant 0 : i32
    return %arg0, %c0_i32 : i32, i32
  }
}

module attributes {stable_mosaic.version = 11 : i64} {
  func.func @_qkv_kernel(%arg0: i32, %arg1: memref<16x32xbf16, #tpu.memory_space<vmem>>, %arg2: memref<16x32xbf16, #tpu.memory_space<vmem>>, %arg3: memref<32x64xbf16, #tpu.memory_space<vmem>>, %arg4: memref<1x64xf32, #tpu.memory_space<vmem>>, %arg5: memref<32x32xbf16, #tpu.memory_space<vmem>>, %arg6: memref<1x32xf32, #tpu.memory_space<vmem>>, %arg7: memref<16x32xbf16, #tpu.memory_space<vmem>>, %arg8: memref<16x32xbf16, #tpu.memory_space<vmem>>, %arg9: memref<16x32xbf16, #tpu.memory_space<vmem>>) attributes {dimension_semantics = [#tpu.dimension_semantics<parallel>], iteration_bounds = array<i64: 1>, scalar_prefetch = 0 : i64, scratch_operands = 0 : i64, tpu.core_type = #tpu.core_type<tc>, window_params = [{transform_indices = @transform_0, window_bounds = array<i64: 16, 32>}, {transform_indices = @transform_1, window_bounds = array<i64: 16, 32>}, {pipeline_mode = #tpu.pipeline_mode<synchronous>, transform_indices = @transform_2, window_bounds = array<i64: 32, 64>}, {pipeline_mode = #tpu.pipeline_mode<synchronous>, transform_indices = @transform_3, window_bounds = array<i64: 1, 64>}, {pipeline_mode = #tpu.pipeline_mode<synchronous>, transform_indices = @transform_4, window_bounds = array<i64: 32, 32>}, {pipeline_mode = #tpu.pipeline_mode<synchronous>, transform_indices = @transform_5, window_bounds = array<i64: 1, 32>}, {transform_indices = @transform_6, window_bounds = array<i64: 16, 32>}, {transform_indices = @transform_7, window_bounds = array<i64: 16, 32>}, {transform_indices = @transform_8, window_bounds = array<i64: 16, 32>}]} {
    %c0 = arith.constant 0 : index
    %c0_0 = arith.constant 0 : index
    %0 = vector.load %arg1[%c0, %c0_0] : memref<16x32xbf16, #tpu.memory_space<vmem>>, vector<16x32xbf16>
    %c0_1 = arith.constant 0 : index
    %c0_2 = arith.constant 0 : index
    %1 = vector.load %arg2[%c0_1, %c0_2] : memref<16x32xbf16, #tpu.memory_space<vmem>>, vector<16x32xbf16>
    %2 = arith.addf %0, %1 : vector<16x32xbf16>
    %c0_3 = arith.constant 0 : index
    %c0_4 = arith.constant 0 : index
    %3 = vector.load %arg3[%c0_3, %c0_4] : memref<32x64xbf16, #tpu.memory_space<vmem>>, vector<32x64xbf16>
    %cst = arith.constant dense<0.000000e+00> : vector<16x64xf32>
    %4 = tpu.matmul %2, %3, %cst {dimension_numbers = #tpu.dot_dimension_numbers<[1], [0], [0], [1], [0, 0, 1, 1], [], []>} : vector<16x32xbf16>, vector<32x64xbf16>, vector<16x64xf32> -> vector<16x64xf32>
    %c0_5 = arith.constant 0 : index
    %c0_6 = arith.constant 0 : index
    %5 = vector.load %arg4[%c0_5, %c0_6] : memref<1x64xf32, #tpu.memory_space<vmem>>, vector<1x64xf32>
    %6 = vector.broadcast %5 : vector<1x64xf32> to vector<16x64xf32>
    %7 = arith.addf %4, %6 : vector<16x64xf32>
    %c0_7 = arith.constant 0 : index
    %c0_8 = arith.constant 0 : index
    %8 = vector.load %arg5[%c0_7, %c0_8] : memref<32x32xbf16, #tpu.memory_space<vmem>>, vector<32x32xbf16>
    %cst_9 = arith.constant dense<0.000000e+00> : vector<16x32xf32>
    %9 = tpu.matmul %0, %8, %cst_9 {dimension_numbers = #tpu.dot_dimension_numbers<[1], [0], [0], [1], [0, 0, 1, 1], [], []>} : vector<16x32xbf16>, vector<32x32xbf16>, vector<16x32xf32> -> vector<16x32xf32>
    %c0_10 = arith.constant 0 : index
    %c0_11 = arith.constant 0 : index
    %10 = vector.load %arg6[%c0_10, %c0_11] : memref<1x32xf32, #tpu.memory_space<vmem>>, vector<1x32xf32>
    %11 = vector.broadcast %10 : vector<1x32xf32> to vector<16x32xf32>
    %12 = arith.addf %9, %11 : vector<16x32xf32>
    %13 = vector.extract_strided_slice %7 {offsets = [0, 0], sizes = [16, 32], strides = [1, 1]} : vector<16x64xf32> to vector<16x32xf32>
    %14 = arith.truncf %13 : vector<16x32xf32> to vector<16x32xbf16>
    %c0_12 = arith.constant 0 : index
    %c0_13 = arith.constant 0 : index
    %15 = vector.load %arg7[%c0_12, %c0_13] : memref<16x32xbf16, #tpu.memory_space<vmem>>, vector<16x32xbf16>
    tpu.vector_store %arg7[%c0_12, %c0_13], %14 {strides = array<i32>} : memref<16x32xbf16, #tpu.memory_space<vmem>>, vector<16x32xbf16>,
    %16 = vector.extract_strided_slice %7 {offsets = [0, 32], sizes = [16, 32], strides = [1, 1]} : vector<16x64xf32> to vector<16x32xf32>
    %17 = arith.truncf %16 : vector<16x32xf32> to vector<16x32xbf16>
    %c0_14 = arith.constant 0 : index
    %c0_15 = arith.constant 0 : index
    %18 = vector.load %arg8[%c0_14, %c0_15] : memref<16x32xbf16, #tpu.memory_space<vmem>>, vector<16x32xbf16>
    tpu.vector_store %arg8[%c0_14, %c0_15], %17 {strides = array<i32>} : memref<16x32xbf16, #tpu.memory_space<vmem>>, vector<16x32xbf16>,
    %19 = arith.truncf %12 : vector<16x32xf32> to vector<16x32xbf16>
    %c0_16 = arith.constant 0 : index
    %c0_17 = arith.constant 0 : index
    %20 = vector.load %arg9[%c0_16, %c0_17] : memref<16x32xbf16, #tpu.memory_space<vmem>>, vector<16x32xbf16>
    tpu.vector_store %arg9[%c0_16, %c0_17], %19 {strides = array<i32>} : memref<16x32xbf16, #tpu.memory_space<vmem>>, vector<16x32xbf16>,
    return
  }
  func.func @transform_0(%arg0: i32) -> (i32, i32) {
    %c0_i32 = arith.constant 0 : i32
    %c0_i32_0 = arith.constant 0 : i32
    return %arg0, %c0_i32 : i32, i32
  }
  func.func @transform_1(%arg0: i32) -> (i32, i32) {
    %c0_i32 = arith.constant 0 : i32
    %c0_i32_0 = arith.constant 0 : i32
    return %arg0, %c0_i32 : i32, i32
  }
  func.func @transform_2(%arg0: i32) -> (i32, i32) {
    %c0_i32 = arith.constant 0 : i32
    %c0_i32_0 = arith.constant 0 : i32
    %c0_i32_1 = arith.constant 0 : i32
    return %c0_i32, %c0_i32_0 : i32, i32
  }
  func.func @transform_3(%arg0: i32) -> (i32, i32) {
    %c0_i32 = arith.constant 0 : i32
    %c0_i32_0 = arith.constant 0 : i32
    %c0_i32_1 = arith.constant 0 : i32
    return %c0_i32, %c0_i32_0 : i32, i32
  }
  func.func @transform_4(%arg0: i32) -> (i32, i32) {
    %c0_i32 = arith.constant 0 : i32
    %c0_i32_0 = arith.constant 0 : i32
    %c0_i32_1 = arith.constant 0 : i32
    return %c0_i32, %c0_i32_0 : i32, i32
  }
  func.func @transform_5(%arg0: i32) -> (i32, i32) {
    %c0_i32 = arith.constant 0 : i32
    %c0_i32_0 = arith.constant 0 : i32
    %c0_i32_1 = arith.constant 0 : i32
    return %c0_i32, %c0_i32_0 : i32, i32
  }
  func.func @transform_6(%arg0: i32) -> (i32, i32) {
    %c0_i32 = arith.constant 0 : i32
    %c0_i32_0 = arith.constant 0 : i32
    return %arg0, %c0_i32 : i32, i32
  }
  func.func @transform_7(%arg0: i32) -> (i32, i32) {
    %c0_i32 = arith.constant 0 : i32
    %c0_i32_0 = arith.constant 0 : i32
    return %arg0, %c0_i32 : i32, i32
  }
  func.func @transform_8(%arg0: i32) -> (i32, i32) {
    %c0_i32 = arith.constant 0 : i32
    %c0_i32_0 = arith.constant 0 : i32
    return %arg0, %c0_i32 : i32, i32
  }
}

module attributes {stable_mosaic.version = 11 : i64} {
  func.func @_heads_kernel(%arg0: memref<16x32xbf16, #tpu.memory_space<vmem>>, %arg1: memref<1x32xf32, #tpu.memory_space<vmem>>, %arg2: memref<1x32xf32, #tpu.memory_space<vmem>>, %arg3: memref<32x128xbf16, #tpu.memory_space<vmem>>, %arg4: memref<1x128xf32, #tpu.memory_space<vmem>>, %arg5: memref<32x32xbf16, #tpu.memory_space<vmem>>, %arg6: memref<1x32xf32, #tpu.memory_space<vmem>>, %arg7: memref<32x32xbf16, #tpu.memory_space<vmem>>, %arg8: memref<1x32xf32, #tpu.memory_space<vmem>>, %arg9: memref<32x128xbf16, #tpu.memory_space<vmem>>, %arg10: memref<1x128xf32, #tpu.memory_space<vmem>>, %arg11: memref<16x128xf32, #tpu.memory_space<vmem>>, %arg12: memref<16x128xf32, #tpu.memory_space<vmem>>) attributes {dimension_semantics = [], scalar_prefetch = 0 : i64, scratch_operands = 0 : i64, tpu.core_type = #tpu.core_type<tc>} {
    %c0 = arith.constant 0 : index
    %c0_0 = arith.constant 0 : index
    %0 = vector.load %arg0[%c0, %c0_0] : memref<16x32xbf16, #tpu.memory_space<vmem>>, vector<16x32xbf16>
    %1 = arith.extf %0 : vector<16x32xbf16> to vector<16x32xf32>
    %cst = arith.constant dense<0.000000e+00> : vector<16xf32>
    %2 = vector.multi_reduction <add>, %1, %cst [1] : vector<16x32xf32> to vector<16xf32>
    %3 = vector.shape_cast %2 : vector<16xf32> to vector<16x1xf32>
    %cst_1 = arith.constant 3.200000e+01 : f32
    %4 = vector.broadcast %cst_1 : f32 to vector<16x1xf32>
    %5 = arith.divf %3, %4 : vector<16x1xf32>
    %6 = vector.broadcast %5 : vector<16x1xf32> to vector<16x32xf32>
    %7 = arith.subf %1, %6 : vector<16x32xf32>
    %8 = arith.mulf %7, %7 : vector<16x32xf32>
    %cst_2 = arith.constant dense<0.000000e+00> : vector<16xf32>
    %9 = vector.multi_reduction <add>, %8, %cst_2 [1] : vector<16x32xf32> to vector<16xf32>
    %10 = vector.shape_cast %9 : vector<16xf32> to vector<16x1xf32>
    %cst_3 = arith.constant 3.200000e+01 : f32
    %11 = vector.broadcast %cst_3 : f32 to vector<16x1xf32>
    %12 = arith.divf %10, %11 : vector<16x1xf32>
    %13 = vector.broadcast %5 : vector<16x1xf32> to vector<16x32xf32>
    %14 = arith.subf %1, %13 : vector<16x32xf32>
    %cst_4 = arith.constant 9.99999974E-6 : f32
    %15 = vector.broadcast %cst_4 : f32 to vector<16x1xf32>
    %16 = arith.addf %12, %15 : vector<16x1xf32>
    %17 = math.rsqrt %16 : vector<16x1xf32>
    %18 = vector.broadcast %17 : vector<16x1xf32> to vector<16x32xf32>
    %19 = arith.mulf %14, %18 : vector<16x32xf32>
    %c0_5 = arith.constant 0 : index
    %c0_6 = arith.constant 0 : index
    %20 = vector.load %arg1[%c0_5, %c0_6] : memref<1x32xf32, #tpu.memory_space<vmem>>, vector<1x32xf32>
    %21 = vector.broadcast %20 : vector<1x32xf32> to vector<16x32xf32>
    %22 = arith.mulf %19, %21 : vector<16x32xf32>
    %c0_7 = arith.constant 0 : index
    %c0_8 = arith.constant 0 : index
    %23 = vector.load %arg2[%c0_7, %c0_8] : memref<1x32xf32, #tpu.memory_space<vmem>>, vector<1x32xf32>
    %24 = vector.broadcast %23 : vector<1x32xf32> to vector<16x32xf32>
    %25 = arith.addf %22, %24 : vector<16x32xf32>
    %26 = arith.truncf %25 : vector<16x32xf32> to vector<16x32xbf16>
    %c0_9 = arith.constant 0 : index
    %c0_10 = arith.constant 0 : index
    %27 = vector.load %arg3[%c0_9, %c0_10] : memref<32x128xbf16, #tpu.memory_space<vmem>>, vector<32x128xbf16>
    %cst_11 = arith.constant dense<0.000000e+00> : vector<16x128xf32>
    %28 = tpu.matmul %26, %27, %cst_11 {dimension_numbers = #tpu.dot_dimension_numbers<[1], [0], [0], [1], [0, 0, 1, 1], [], []>} : vector<16x32xbf16>, vector<32x128xbf16>, vector<16x128xf32> -> vector<16x128xf32>
    %c0_12 = arith.constant 0 : index
    %c0_13 = arith.constant 0 : index
    %29 = vector.load %arg4[%c0_12, %c0_13] : memref<1x128xf32, #tpu.memory_space<vmem>>, vector<1x128xf32>
    %30 = vector.broadcast %29 : vector<1x128xf32> to vector<16x128xf32>
    %31 = arith.addf %28, %30 : vector<16x128xf32>
    %c0_14 = arith.constant 0 : index
    %c0_15 = arith.constant 0 : index
    %32 = vector.load %arg11[%c0_14, %c0_15] : memref<16x128xf32, #tpu.memory_space<vmem>>, vector<16x128xf32>
    tpu.vector_store %arg11[%c0_14, %c0_15], %31 {strides = array<i32>} : memref<16x128xf32, #tpu.memory_space<vmem>>, vector<16x128xf32>,
    %c0_16 = arith.constant 0 : index
    %c0_17 = arith.constant 0 : index
    %33 = vector.load %arg5[%c0_16, %c0_17] : memref<32x32xbf16, #tpu.memory_space<vmem>>, vector<32x32xbf16>
    %cst_18 = arith.constant dense<0.000000e+00> : vector<16x32xf32>
    %34 = tpu.matmul %26, %33, %cst_18 {dimension_numbers = #tpu.dot_dimension_numbers<[1], [0], [0], [1], [0, 0, 1, 1], [], []>} : vector<16x32xbf16>, vector<32x32xbf16>, vector<16x32xf32> -> vector<16x32xf32>
    %c0_19 = arith.constant 0 : index
    %c0_20 = arith.constant 0 : index
    %35 = vector.load %arg6[%c0_19, %c0_20] : memref<1x32xf32, #tpu.memory_space<vmem>>, vector<1x32xf32>
    %36 = vector.broadcast %35 : vector<1x32xf32> to vector<16x32xf32>
    %37 = arith.addf %34, %36 : vector<16x32xf32>
    %cst_21 = arith.constant 0.000000e+00 : f32
    %38 = vector.broadcast %cst_21 : f32 to vector<16x32xf32>
    %39 = arith.maximumf %37, %38 : vector<16x32xf32>
    %40 = arith.truncf %39 : vector<16x32xf32> to vector<16x32xbf16>
    %c0_22 = arith.constant 0 : index
    %c0_23 = arith.constant 0 : index
    %41 = vector.load %arg7[%c0_22, %c0_23] : memref<32x32xbf16, #tpu.memory_space<vmem>>, vector<32x32xbf16>
    %cst_24 = arith.constant dense<0.000000e+00> : vector<16x32xf32>
    %42 = tpu.matmul %40, %41, %cst_24 {dimension_numbers = #tpu.dot_dimension_numbers<[1], [0], [0], [1], [0, 0, 1, 1], [], []>} : vector<16x32xbf16>, vector<32x32xbf16>, vector<16x32xf32> -> vector<16x32xf32>
    %c0_25 = arith.constant 0 : index
    %c0_26 = arith.constant 0 : index
    %43 = vector.load %arg8[%c0_25, %c0_26] : memref<1x32xf32, #tpu.memory_space<vmem>>, vector<1x32xf32>
    %44 = vector.broadcast %43 : vector<1x32xf32> to vector<16x32xf32>
    %45 = arith.addf %42, %44 : vector<16x32xf32>
    %cst_27 = arith.constant 0.000000e+00 : f32
    %46 = vector.broadcast %cst_27 : f32 to vector<16x32xf32>
    %47 = arith.maximumf %45, %46 : vector<16x32xf32>
    %48 = arith.truncf %47 : vector<16x32xf32> to vector<16x32xbf16>
    %c0_28 = arith.constant 0 : index
    %c0_29 = arith.constant 0 : index
    %49 = vector.load %arg9[%c0_28, %c0_29] : memref<32x128xbf16, #tpu.memory_space<vmem>>, vector<32x128xbf16>
    %cst_30 = arith.constant dense<0.000000e+00> : vector<16x128xf32>
    %50 = tpu.matmul %48, %49, %cst_30 {dimension_numbers = #tpu.dot_dimension_numbers<[1], [0], [0], [1], [0, 0, 1, 1], [], []>} : vector<16x32xbf16>, vector<32x128xbf16>, vector<16x128xf32> -> vector<16x128xf32>
    %c0_31 = arith.constant 0 : index
    %c0_32 = arith.constant 0 : index
    %51 = vector.load %arg10[%c0_31, %c0_32] : memref<1x128xf32, #tpu.memory_space<vmem>>, vector<1x128xf32>
    %52 = vector.broadcast %51 : vector<1x128xf32> to vector<16x128xf32>
    %53 = arith.addf %50, %52 : vector<16x128xf32>
    %54 = arith.negf %53 : vector<16x128xf32>
    %55 = math.exp %54 : vector<16x128xf32>
    %cst_33 = arith.constant 1.000000e+00 : f32
    %56 = vector.broadcast %cst_33 : f32 to vector<16x128xf32>
    %57 = arith.addf %56, %55 : vector<16x128xf32>
    %58 = arith.divf %56, %57 : vector<16x128xf32>
    %c0_34 = arith.constant 0 : index
    %c0_35 = arith.constant 0 : index
    %59 = vector.load %arg12[%c0_34, %c0_35] : memref<16x128xf32, #tpu.memory_space<vmem>>, vector<16x128xf32>
    tpu.vector_store %arg12[%c0_34, %c0_35], %58 {strides = array<i32>} : memref<16x128xf32, #tpu.memory_space<vmem>>, vector<16x128xf32>,
    return
  }
}

</mosaic_0001>

<bundles_post_ra>
// kernel: _lambda_.27
= control target key start
LH: loop header
LB: loop body
LE: loop exit
PB: predicated region body
PF: predicated region fallthrough
CT: control target
= control target key end

     0   :  { %vm57_vm0 = vcmask 392192   ;;  %vm91_vm1 = vcmask 60416   ;;  %s181_s1 = inlined_call_operand.vmem [shape: bf16[48,8], index: 1, kind: input, shape index: {}]   ;;  %s182_s2 = inlined_call_operand.vmem [shape: f32[1,8], index: 2, kind: input, shape index: {}]   ;;  %s183_s0 = inlined_call_operand.vmem [shape: bf16[32,48], index: 0, kind: input, shape index: {}]   ;;  %s184_s3 = inlined_call_operand.vmem [shape: bf16[32,8], index: 3, kind: output, shape index: {}]  }
   0x1   :  { %v126_v0 = vld [vmem:[%s181_s1 + $0x10] sm:$0xff]  ;;  %v125_v1 = vld [vmem:[%s181_s1 + $0x8] sm:$0xff]  ;;  %v124_v2 = vld [vmem:[%s181_s1] sm:$0xff] }
   0x2   :  { %69 = vmatpush.bf16.msra.mxu0 %v126_v0  ;;  %127 = vmatpush.bf16.msra.mxu1 %v126_v0  ;;  %v122_v3 = vld [vmem:[%s183_s0] sm:$0xff]  ;;  %v123_v4 = vld [vmem:[%s183_s0 + $0x8] sm:$0xff] }
   0x3   :  { %v130_v5 = vld [vmem:[%s182_s2] ss:$0 sm:$0xff] }
   0x6   :  { %70 = vmatpush.bf16.msra.mxu0 %v125_v1  ;;  %128 = vmatpush.bf16.msra.mxu1 %v125_v1 }
   0xa   :  { %71 = vmatpush.bf16.msra.mxu0 %v124_v2  ;;  %129 = vmatpush.bf16.msra.mxu1 %v124_v2 }
   0xd   :  { %120 = vmatmul.msk.bf16.vlgmr.msra.gmra.mxu0 %vm57_vm0, %v122_v3  ;;  %121 = vmatmul.msk.bf16.vlgmr.msra.gmra.mxu1 %vm57_vm0, %v123_v4 }
  0x8a   :  { %v73_v6 = vpop.f32.mrf.mxu0  ;;  %v78_v7 = vpop.f32.mrf.mxu1 }
  0x8b   :  { %v74_v8 = vadd.f32 %v130_v5, %v73_v6  ;;  %v79_v9 = vadd.f32 %v130_v5, %v78_v7 }
  0x8d   :  { %v83_v10 = vmax.f32 %v74_v8, 0.0  ;;  %v85_v11 = vmax.f32 %v79_v9, 0.0 }
  0x8f   :  { %v87_v12 = vpack.c.bf16 %v83_v10, %v83_v10  ;;  %v89_v13 = vpack.c.bf16 %v85_v11, %v85_v11 }
  0x91   :  { %92 = vst.msk [vmem:[%s184_s3] sm:$0xf] %vm91_vm1, %v87_v12 }
  0x92   :  { %94 = vst.msk [vmem:[%s184_s3 + $0x8] sm:$0xf] %vm91_vm1, %v89_v13  ;;  %v75_v14 = vpop.f32.mrf.mxu0  ;;  %v80_v15 = vpop.f32.mrf.mxu1 }
  0x93   :  { %v76_v16 = vadd.f32 %v130_v5, %v75_v14  ;;  %v81_v17 = vadd.f32 %v130_v5, %v80_v15 }
  0x95   :  { %v84_v18 = vmax.f32 %v76_v16, 0.0  ;;  %v86_v19 = vmax.f32 %v81_v17, 0.0 }
  0x97   :  { %v88_v20 = vpack.c.bf16 %v84_v18, %v84_v18  ;;  %v90_v21 = vpack.c.bf16 %v86_v19, %v86_v19 }
  0x99   :  { %93 = vst.msk [vmem:[%s184_s3 + $0x4] sm:$0xf] %vm91_vm1, %v88_v20 }
  0x9a   :  { %95 = vst.msk [vmem:[%s184_s3 + $0xc] sm:$0xf] %vm91_vm1, %v90_v21 }

// kernel: _lambda_.28
= control target key start
LH: loop header
LB: loop body
LE: loop exit
PB: predicated region body
PF: predicated region fallthrough
CT: control target
= control target key end

     0   :  { %vm41_vm0 = vcmask 1043456   ;;  %vm34_vm1 = vcmask 64512   ;;  %vm68_vm2 = vcmask 257024   ;;  %s135_s1 = inlined_call_operand.vmem [shape: bf16[8,32], index: 1, kind: input, shape index: {}]   ;;  %s136_s0 = inlined_call_operand.vmem [shape: bf16[32,8], index: 0, kind: input, shape index: {}]   ;;  %s137_s2 = inlined_call_operand.vmem [shape: f32[1,32], index: 2, kind: input, shape index: {}]   ;;  %s138_s3 = inlined_call_operand.vmem [shape: bf16[32,32], index: 3, kind: output, shape index: {}]  }
   0x1   :  { %v19_v0 = vld [vmem:[%s135_s1] sm:$0xf]  ;;  %v88_v3 = vld [vmem:[%s136_s0 + $0x8] sm:$0xff] }
   0x2   :  { %v43_v1 = vsel %vm41_vm0, %v19_v0, 0  ;;  %v87_v2 = vld [vmem:[%s136_s0] sm:$0xff] }
   0x3   :  { %52 = vmatpush.bf16.msra.mxu0 %v43_v1  ;;  %89 = vmatpush.bf16.msra.mxu1 %v43_v1  ;;  %v90_v4 = vld [vmem:[%s137_s2] ss:$0 sm:$0xff] }
   0x6   :  { %85 = vmatmul.msk.bf16.vlgmr.msra.gmra.mxu0 %vm34_vm1, %v87_v2  ;;  %86 = vmatmul.msk.bf16.vlgmr.msra.gmra.mxu1 %vm34_vm1, %v88_v3 }
  0x83   :  { %v54_v5 = vpop.f32.mrf.mxu0  ;;  %v59_v6 = vpop.f32.mrf.mxu1 }
  0x84   :  { %v55_v7 = vadd.f32 %v90_v4, %v54_v5  ;;  %v60_v8 = vadd.f32 %v90_v4, %v59_v6 }
  0x86   :  { %v64_v9 = vpack.c.bf16 %v55_v7, %v55_v7  ;;  %v66_v10 = vpack.c.bf16 %v60_v8, %v60_v8 }
  0x88   :  { %69 = vst.msk [vmem:[%s138_s3] sm:$0xf] %vm68_vm2, %v64_v9 }
  0x89   :  { %71 = vst.msk [vmem:[%s138_s3 + $0x8] sm:$0xf] %vm68_vm2, %v66_v10 }
  0x8b   :  { %v56_v11 = vpop.f32.mrf.mxu0  ;;  %v61_v12 = vpop.f32.mrf.mxu1 }
  0x8c   :  { %v57_v13 = vadd.f32 %v90_v4, %v56_v11  ;;  %v62_v14 = vadd.f32 %v90_v4, %v61_v12 }
  0x8e   :  { %v65_v15 = vpack.c.bf16 %v57_v13, %v57_v13  ;;  %v67_v16 = vpack.c.bf16 %v62_v14, %v62_v14 }
  0x90   :  { %70 = vst.msk [vmem:[%s138_s3 + $0x4] sm:$0xf] %vm68_vm2, %v65_v15 }
  0x91   :  { %72 = vst.msk [vmem:[%s138_s3 + $0xc] sm:$0xf] %vm68_vm2, %v67_v16 }

// kernel: _lambda_.29
= control target key start
LH: loop header
LB: loop body
LE: loop exit
PB: predicated region body
PF: predicated region fallthrough
CT: control target
= control target key end

     0   :  { %vm69_vm0 = vcmask 261120   ;;  %vm154_vm1 = vcmask 257024   ;;  %s249_s27 = smov 96   ;;  %s379_s2 = inlined_call_operand.vmem [shape: bf16[32,64], index: 2, kind: input, shape index: {}]   ;;  %s380_s0 = inlined_call_operand.vmem [shape: bf16[32,32], index: 0, kind: input, shape index: {}]   ;;  %s381_s1 = inlined_call_operand.vmem [shape: bf16[32,32], index: 1, kind: input, shape index: {}]   ;;  %s382_s4 = inlined_call_operand.vmem [shape: bf16[32,32], index: 4, kind: input, shape index: {}]   ;;  %s383_s3 = inlined_call_operand.vmem [shape: f32[1,64], index: 3, kind: input, shape index: {}]   ;;  %s384_s5 = inlined_call_operand.vmem [shape: f32[1,32], index: 5, kind: input, shape index: {}]   ;;  %s385_s6 = inlined_call_operand.vmem [shape: bf16[32,32], index: 6, kind: output, shape index: {0}]   ;;  %s386_s8 = inlined_call_operand.vmem [shape: bf16[32,32], index: 8, kind: output, shape index: {2}]   ;;  %s387_s7 = inlined_call_operand.vmem [shape: bf16[32,32], index: 7, kind: output, shape index: {1}]  }
   0x1   :  { %v230_v0 = vld [vmem:[%s379_s2 + $0x8] sm:$0xff]  ;;  %v27_v1 = vld [vmem:[%s380_s0] sm:$0xff]  }
   0x2   :  { %v234_v2 = vld [vmem:[%s381_s1] sm:$0xff]   ;;  %v35_v3 = vunpack.c.l.bf16 %v27_v1  ;;  %v36_v4 = vunpack.c.h.bf16 %v27_v1  ;;  %v29_v5 = vld [vmem:[%s380_s0 + $0x8] sm:$0xff]   ;;  %82 = vmatpush.bf16.msra.mxu0 %v230_v0  ;;  %242 = vmatpush.bf16.msra.mxu2 %v230_v0 }
   0x3   :  { %v241_v6 = vld [vmem:[%s381_s1 + $0x8] sm:$0xff]   ;;  %v229_v7 = vld [vmem:[%s379_s2] sm:$0xff]  ;;  %v235_v8 = vunpack.c.l.bf16 %v234_v2  ;;  %v236_v9 = vunpack.c.h.bf16 %v234_v2  ;;  %v37_v13 = vunpack.c.l.bf16 %v29_v5  ;;  %v38_v14 = vunpack.c.h.bf16 %v29_v5 }
   0x4   :  { %v239_v10 = vunpack.c.l.bf16 %v241_v6  ;;  %v240_v11 = vunpack.c.h.bf16 %v241_v6  ;;  %v232_v12 = vld [vmem:[%s382_s4 + $0x8] sm:$0xff]  ;;  %v231_v17 = vld [vmem:[%s382_s4] sm:$0xff] }
   0x5   :  { %v43_v15 = vadd.f32 %v235_v8, %v35_v3  ;;  %v44_v16 = vadd.f32 %v236_v9, %v36_v4  ;;  %244 = vmatpush.bf16.msra.mxu3 %v232_v12  ;;  %137 = vmatpush.bf16.msra.mxu1 %v232_v12  ;;  %v228_v22 = vld [vmem:[%s380_s0 + $0x8] sm:$0xff]  ;;  %v227_v23 = vld [vmem:[%s380_s0] sm:$0xff] }
   0x6   :  { %v45_v18 = vadd.f32 %v239_v10, %v37_v13  ;;  %v46_v19 = vadd.f32 %v240_v11, %v38_v14  ;;  %83 = vmatpush.bf16.msra.mxu0 %v229_v7  ;;  %243 = vmatpush.bf16.msra.mxu2 %v229_v7  ;;  %v247_v24 = vld [vmem:[%s383_s3] ss:$0 sm:$0xff] }
   0x7   :  { %v47_v20 = vpack.c.bf16 %v44_v16, %v43_v15  ;;  %v248_v25 = vld [vmem:[%s384_s5] ss:$0 sm:$0xff] }
   0x8   :  { %v48_v21 = vpack.c.bf16 %v46_v19, %v45_v18 }
   0x9   :  { %245 = vmatpush.bf16.msra.mxu3 %v231_v17  ;;  %138 = vmatpush.bf16.msra.mxu1 %v231_v17 }
   0xa   :  { %207 = vmatmul.msk.bf16.vlgmr.msra.gmra.mxu0 %vm69_vm0, %v47_v20  ;;  %208 = vmatmul.msk.bf16.vlgmr.msra.gmra.mxu2 %vm69_vm0, %v48_v21 }
   0xc   :  { %226 = vmatmul.msk.bf16.vlgmr.msra.gmra.mxu3 %vm69_vm0, %v228_v22  ;;  %225 = vmatmul.msk.bf16.vlgmr.msra.gmra.mxu1 %vm69_vm0, %v227_v23 }
  0x87   :  { %v85_v26 = vpop.f32.mrf.mxu0 }
  0x88   :  { %v86_v27 = vadd.f32 %v247_v24, %v85_v26 }
  0x89   :  { %v140_v28 = vpop.f32.mrf.mxu1 }
  0x8a   :  { %v150_v29 = vpack.c.bf16 %v86_v27, %v86_v27  ;;  %v141_v30 = vadd.f32 %v248_v25, %v140_v28 }
  0x8c   :  { %155 = vst.msk [vmem:[%s385_s6] sm:$0xf] %vm154_vm1, %v150_v29  ;;  %163 = vrot.lane.b32.xlu0 %v150_v29, %s249_s27  ;;  %v179_v31 = vpack.c.bf16 %v141_v30, %v141_v30 }
  0x8d   :  { %v90_v32 = vpop.f32.mrf.mxu2 }
  0x8e   :  { %v91_v33 = vadd.f32 %v247_v24, %v90_v32  ;;  %183 = vst.msk [vmem:[%s386_s8] sm:$0xf] %vm154_vm1, %v179_v31 }
  0x8f   :  { %v87_v34 = vpop.f32.mrf.mxu0  ;;  %v145_v35 = vpop.f32.mrf.mxu3 }
  0x90   :  { %v152_v36 = vpack.c.bf16 %v91_v33, %v91_v33  ;;  %v88_v37 = vadd.f32 %v247_v24, %v87_v34  ;;  %v146_v38 = vadd.f32 %v248_v25, %v145_v35 }
  0x91   :  { %v142_v44 = vpop.f32.mrf.mxu1 }
  0x92   :  { %157 = vst.msk [vmem:[%s385_s6 + $0x8] sm:$0xf] %vm154_vm1, %v152_v36  ;;  %v151_v39 = vpack.c.bf16 %v88_v37, %v88_v37  ;;  %167 = vrot.lane.b32.xlu1 %v152_v36, %s249_s27  ;;  %v181_v40 = vpack.c.bf16 %v146_v38, %v146_v38  ;;  %v143_v46 = vadd.f32 %v248_v25, %v142_v44 }
  0x94   :  { %156 = vst.msk [vmem:[%s385_s6 + $0x4] sm:$0xf] %vm154_vm1, %v151_v39  ;;  %165 = vrot.lane.b32.xlu0 %v151_v39, %s249_s27  ;;  %v180_v48 = vpack.c.bf16 %v143_v46, %v143_v46 }
  0x95   :  { %v92_v41 = vpop.f32.mrf.mxu2  ;;  %185 = vst.msk [vmem:[%s386_s8 + $0x8] sm:$0xf] %vm154_vm1, %v181_v40 }
  0x96   :  { %v93_v42 = vadd.f32 %v247_v24, %v92_v41  ;;  %184 = vst.msk [vmem:[%s386_s8 + $0x4] sm:$0xf] %vm154_vm1, %v180_v48 }
  0x97   :  { %v147_v45 = vpop.f32.mrf.mxu3 }
  0x98   :  { %v153_v43 = vpack.c.bf16 %v93_v42, %v93_v42  ;;  %v148_v47 = vadd.f32 %v248_v25, %v147_v45 }
  0x9a   :  { %158 = vst.msk [vmem:[%s385_s6 + $0xc] sm:$0xf] %vm154_vm1, %v153_v43  ;;  %169 = vrot.lane.b32.xlu1 %v153_v43, %s249_s27  ;;  %v182_v49 = vpack.c.bf16 %v148_v47, %v148_v47 }
  0x9c   :  { %186 = vst.msk [vmem:[%s386_s8 + $0xc] sm:$0xf] %vm154_vm1, %v182_v49 }
  0xfe   :  { %v164_v50 = vpop.permute.xlu0 %163 }
  0xff   :  { %175 = vst.msk [vmem:[%s387_s7] sm:$0xf] %vm154_vm1, %v164_v50 }
 0x104   :  { %v168_v51 = vpop.permute.xlu1 %167 }
 0x105   :  { %177 = vst.msk [vmem:[%s387_s7 + $0x8] sm:$0xf] %vm154_vm1, %v168_v51 }
 0x106   :  { %v166_v52 = vpop.permute.xlu0 %165 }
 0x107   :  { %176 = vst.msk [vmem:[%s387_s7 + $0x4] sm:$0xf] %vm154_vm1, %v166_v52 }
 0x10c   :  { %v170_v53 = vpop.permute.xlu1 %169 }
 0x10d   :  { %178 = vst.msk [vmem:[%s387_s7 + $0xc] sm:$0xf] %vm154_vm1, %v170_v53 }

// kernel: _lambda_.31
= control target key start
LH: loop header
LB: loop body
LE: loop exit
PB: predicated region body
PF: predicated region fallthrough
CT: control target
= control target key end

     0   :  { %vm58_vm0 = vcmask 261120   ;;  %v267_v27 = vmov 32.0   ;;  %vm211_vm10 = vcmask 257024   ;;  %s371_s1 = inlined_call_operand.vmem [shape: bf16[32,32], index: 1, kind: input, shape index: {}]   ;;  %s372_s2 = inlined_call_operand.vmem [shape: f32[1,32], index: 2, kind: input, shape index: {}]   ;;  %s373_s0 = inlined_call_operand.vmem [shape: bf16[32,32], index: 0, kind: input, shape index: {}]   ;;  %s374_s3 = inlined_call_operand.vmem [shape: bf16[32,32], index: 3, kind: input, shape index: {}]   ;;  %s375_s4 = inlined_call_operand.vmem [shape: f32[1,32], index: 4, kind: input, shape index: {}]   ;;  %s376_s5 = inlined_call_operand.vmem [shape: f32[1,32], index: 5, kind: input, shape index: {}]   ;;  %s377_s6 = inlined_call_operand.vmem [shape: bf16[32,32], index: 6, kind: output, shape index: {}]  }
   0x1   :  { %v241_v0 = vld [vmem:[%s371_s1 + $0x8] sm:$0xff]  ;;  %v240_v1 = vld [vmem:[%s371_s1] sm:$0xff]  ;;  %257 = vrcp.f32 %v267_v27 }
   0x2   :  { %71 = vmatpush.bf16.msra.mxu0 %v241_v0  ;;  %251 = vmatpush.bf16.msra.mxu1 %v241_v0  ;;  %v238_v2 = vld [vmem:[%s373_s0] sm:$0xff]  ;;  %v239_v3 = vld [vmem:[%s373_s0 + $0x8] sm:$0xff] }
   0x3   :  { %v250_v4 = vld [vmem:[%s374_s3 + $0x8] sm:$0xff]   ;;  %v243_v5 = vld [vmem:[%s374_s3] sm:$0xff]  }
   0x4   :  { %v254_v6 = vld [vmem:[%s372_s2] ss:$0 sm:$0xff]  ;;  %v248_v7 = vunpack.c.l.bf16 %v250_v4  ;;  %v244_v8 = vunpack.c.l.bf16 %v243_v5  ;;  %v249_v17 = vunpack.c.h.bf16 %v250_v4  ;;  %v245_v18 = vunpack.c.h.bf16 %v243_v5 }
   0x6   :  { %72 = vmatpush.bf16.msra.mxu0 %v240_v1  ;;  %252 = vmatpush.bf16.msra.mxu1 %v240_v1 }
   0x7   :  { %v258_v28 = vpop.eup %257 }
   0x8   :  { %v111_v29 = vmul.f32 32.0, %v258_v28  ;;  %vm115_vm1 = vweird.f32 %v258_v28 }
   0x9   :  { %236 = vmatmul.msk.bf16.vlgmr.msra.gmra.mxu0 %vm58_vm0, %v238_v2  ;;  %237 = vmatmul.msk.bf16.vlgmr.msra.gmra.mxu1 %vm58_vm0, %v239_v3 }
   0xa   :  { %v112_v30 = vsub.f32 1.0, %v111_v29 }
   0xc   :  { %v113_v31 = vmul.f32 %v258_v28, %v112_v30 }
   0xe   :  { %v114_v32 = vadd.f32 %v258_v28, %v113_v31 }
  0x10   :  { %v116_v33 = vsel %vm115_vm1, %v258_v28, %v114_v32 }
  0x86   :  { %v74_v9 = vpop.f32.mrf.mxu0  ;;  %v79_v10 = vpop.f32.mrf.mxu1 }
  0x87   :  { %v75_v11 = vadd.f32 %v254_v6, %v74_v9  ;;  %v80_v12 = vadd.f32 %v254_v6, %v79_v10 }
  0x89   :  { %v94_v13 = vadd.f32 %v248_v7, %v80_v12  ;;  %v92_v14 = vadd.f32 %v244_v8, %v75_v11 }
  0x8b   :  { %v104_v15 = vsel %vm58_vm0, %v94_v13, 0.0  ;;  %v98_v16 = vsel %vm58_vm0, %v92_v14, 0.0 }
  0x8c   :  { %105 = vadd.xlane.f32.xlu1 %v104_v15  ;;  %99 = vadd.xlane.f32.xlu0 %v98_v16  ;;  %v255_v16 = vld [vmem:[%s375_s4] ss:$0 sm:$0xff] }
  0x8e   :  { %v76_v19 = vpop.f32.mrf.mxu0  ;;  %v81_v20 = vpop.f32.mrf.mxu1 }
  0x8f   :  { %v77_v21 = vadd.f32 %v254_v6, %v76_v19  ;;  %v82_v22 = vadd.f32 %v254_v6, %v81_v20 }
  0x91   :  { %v95_v23 = vadd.f32 %v249_v17, %v82_v22  ;;  %v93_v24 = vadd.f32 %v245_v18, %v77_v21  ;;  %v256_v21 = vld [vmem:[%s376_s5] ss:$0 sm:$0xff] }
  0x93   :  { %v107_v25 = vsel %vm58_vm0, %v95_v23, 0.0  ;;  %v101_v26 = vsel %vm58_vm0, %v93_v24, 0.0 }
  0x94   :  { %108 = vadd.xlane.f32.xlu1 %v107_v25  ;;  %102 = vadd.xlane.f32.xlu0 %v101_v26 }
  0xff   :  { %v106_v34 = vpop.xlane.xlu1 %105  ;;  %v100_v35 = vpop.xlane.xlu0 %99 }
 0x100   :  { %v119_v36 = vmul.f32 %v116_v33, %v106_v34  ;;  %v117_v37 = vmul.f32 %v116_v33, %v100_v35 }
 0x102   :  { %v330_v38 = vsub.f32 %v94_v13, %v119_v36  ;;  %v121_v39 = vsub.f32 %v92_v14, %v117_v37 }
 0x104   :  { %v127_v40 = vmul.f32 %v330_v38, %v330_v38  ;;  %v125_v41 = vmul.f32 %v121_v39, %v121_v39 }
 0x106   :  { %v135_v42 = vsel %vm58_vm0, %v127_v40, 0.0  ;;  %v129_v43 = vsel %vm58_vm0, %v125_v41, 0.0 }
 0x107   :  { %v109_v44 = vpop.xlane.xlu1 %108  ;;  %136 = vadd.xlane.f32.xlu0 %v135_v42  ;;  %130 = vadd.xlane.f32.xlu2 %v129_v43  ;;  %v103_v45 = vpop.xlane.xlu0 %102 }
 0x108   :  { %v120_v46 = vmul.f32 %v116_v33, %v109_v44  ;;  %v118_v47 = vmul.f32 %v116_v33, %v103_v45 }
 0x10a   :  { %v336_v48 = vsub.f32 %v95_v23, %v120_v46  ;;  %v338_v49 = vsub.f32 %v93_v24, %v118_v47 }
 0x10c   :  { %v128_v50 = vmul.f32 %v336_v48, %v336_v48  ;;  %v126_v51 = vmul.f32 %v338_v49, %v338_v49 }
 0x10e   :  { %v138_v52 = vsel %vm58_vm0, %v128_v50, 0.0  ;;  %v132_v53 = vsel %vm58_vm0, %v126_v51, 0.0 }
 0x10f   :  { %139 = vadd.xlane.f32.xlu1 %v138_v52  ;;  %133 = vadd.xlane.f32.xlu2 %v132_v53 }
 0x17a   :  { %v131_v54 = vpop.xlane.xlu2 %130  ;;  %v137_v55 = vpop.xlane.xlu0 %136 }
 0x17b   :  { %v141_v56 = vmul.f32 %v131_v54, %v116_v33  ;;  %v143_v57 = vmul.f32 %v137_v55, %v116_v33 }
 0x17d   :  { %v145_v58 = vadd.f32 1e-05, %v141_v56  ;;  %v147_v59 = vadd.f32 1e-05, %v143_v57 }
 0x17f   :  { %259 = vrsqrt.f32 %v145_v58  ;;  %vm155_vm4 = vweird.f32 %v145_v58  ;;  %vm175_vm6 = vweird.f32 %v147_v59 }
 0x180   :  { %261 = vrsqrt.f32 %v147_v59 }
 0x182   :  { %v140_v60 = vpop.xlane.xlu1 %139  ;;  %v134_v61 = vpop.xlane.xlu2 %133 }
 0x183   :  { %v144_v62 = vmul.f32 %v140_v60, %v116_v33  ;;  %v142_v63 = vmul.f32 %v134_v61, %v116_v33 }
 0x185   :  { %v260_v0 = vpop.eup %259  ;;  %v148_v1 = vadd.f32 1e-05, %v144_v62  ;;  %v146_v2 = vadd.f32 1e-05, %v142_v63 }
 0x186   :  { %v262_v3 = vpop.eup %261  ;;  %v150_v4 = vmul.f32 %v260_v0, %v145_v58  ;;  %vm156_vm2 = vweird.f32 %v260_v0 }
 0x187   :  { %v170_v5 = vmul.f32 %v262_v3, %v147_v59  ;;  %263 = vrsqrt.f32 %v148_v1  ;;  %vm176_vm3 = vweird.f32 %v262_v3  ;;  %vm157_vm5 = vmor %vm155_vm4, %vm156_vm2  ;;  %vm185_vm11 = vweird.f32 %v148_v1 }
 0x188   :  { %v151_v6 = vmul.f32 %v260_v0, %v150_v4  ;;  %265 = vrsqrt.f32 %v146_v2  ;;  %vm177_vm7 = vmor %vm175_vm6, %vm176_vm3  ;;  %vm165_vm13 = vweird.f32 %v146_v2 }
 0x189   :  { %v171_v7 = vmul.f32 %v262_v3, %v170_v5 }
 0x18a   :  { %v152_v8 = vmul.f32 0.5, %v151_v6 }
 0x18b   :  { %v172_v9 = vmul.f32 0.5, %v171_v7 }
 0x18c   :  { %v153_v10 = vsub.f32 1.5, %v152_v8 }
 0x18d   :  { %v264_v11 = vpop.eup %263  ;;  %v173_v12 = vsub.f32 1.5, %v172_v9 }
 0x18e   :  { %v266_v13 = vpop.eup %265  ;;  %v154_v14 = vmul.f32 %v260_v0, %v153_v10  ;;  %v180_v15 = vmul.f32 %v264_v11, %v148_v1  ;;  %vm186_vm8 = vweird.f32 %v264_v11 }
 0x18f   :  { %v174_v17 = vmul.f32 %v262_v3, %v173_v12  ;;  %v160_v18 = vmul.f32 %v266_v13, %v146_v2  ;;  %vm166_vm9 = vweird.f32 %v266_v13  ;;  %vm187_vm12 = vmor %vm185_vm11, %vm186_vm8 }
 0x190   :  { %v158_v19 = vsel %vm157_vm5, %v260_v0, %v154_v14  ;;  %v181_v20 = vmul.f32 %v264_v11, %v180_v15  ;;  %vm167_vm14 = vmor %vm165_vm13, %vm166_vm9 }
 0x191   :  { %v189_v22 = vmul.f32 %v158_v19, %v121_v39  ;;  %v178_v23 = vsel %vm177_vm7, %v262_v3, %v174_v17  ;;  %v161_v24 = vmul.f32 %v266_v13, %v160_v18 }
 0x192   :  { %v191_v25 = vmul.f32 %v178_v23, %v330_v38  ;;  %v182_v26 = vmul.f32 0.5, %v181_v20 }
 0x193   :  { %v196_v27 = vmul.f32 %v255_v16, %v189_v22  ;;  %v162_v28 = vmul.f32 0.5, %v161_v24 }
 0x194   :  { %v198_v29 = vmul.f32 %v255_v16, %v191_v25  ;;  %v183_v30 = vsub.f32 1.5, %v182_v26 }
 0x195   :  { %v203_v31 = vadd.f32 %v256_v21, %v196_v27  ;;  %v163_v32 = vsub.f32 1.5, %v162_v28 }
 0x196   :  { %v205_v33 = vadd.f32 %v256_v21, %v198_v29  ;;  %v184_v34 = vmul.f32 %v264_v11, %v183_v30 }
 0x197   :  { %v207_v35 = vpack.c.bf16 %v203_v31, %v203_v31  ;;  %v164_v36 = vmul.f32 %v266_v13, %v163_v32 }
 0x198   :  { %v209_v37 = vpack.c.bf16 %v205_v33, %v205_v33  ;;  %v188_v39 = vsel %vm187_vm12, %v264_v11, %v184_v34 }
 0x199   :  { %212 = vst.msk [vmem:[%s377_s6] sm:$0xf] %vm211_vm10, %v207_v35  ;;  %v192_v38 = vmul.f32 %v188_v39, %v336_v48  ;;  %v168_v40 = vsel %vm167_vm14, %v266_v13, %v164_v36 }
 0x19a   :  { %214 = vst.msk [vmem:[%s377_s6 + $0x8] sm:$0xf] %vm211_vm10, %v209_v37  ;;  %v190_v41 = vmul.f32 %v168_v40, %v338_v49 }
 0x19b   :  { %v199_v42 = vmul.f32 %v255_v16, %v192_v38 }
 0x19c   :  { %v197_v43 = vmul.f32 %v255_v16, %v190_v41 }
 0x19d   :  { %v206_v44 = vadd.f32 %v256_v21, %v199_v42 }
 0x19e   :  { %v204_v45 = vadd.f32 %v256_v21, %v197_v43 }
 0x19f   :  { %v210_v46 = vpack.c.bf16 %v206_v44, %v206_v44 }
 0x1a0   :  { %v208_v47 = vpack.c.bf16 %v204_v45, %v204_v45 }
 0x1a1   :  { %215 = vst.msk [vmem:[%s377_s6 + $0xc] sm:$0xf] %vm211_vm10, %v210_v46 }
 0x1a2   :  { %213 = vst.msk [vmem:[%s377_s6 + $0x4] sm:$0xf] %vm211_vm10, %v208_v47 }

// kernel: _lambda_.30
= control target key start
LH: loop header
LB: loop body
LE: loop exit
PB: predicated region body
PF: predicated region fallthrough
CT: control target
= control target key end

     0   :  { %s913_s15 = smov 0   ;;  %s915_s16 = smov 0   ;;  %s1031_s0 = inlined_call_operand.vmem [shape: bf16[2,16,32], index: 0, kind: input, shape index: {}]   ;;  %s1032_s1 = inlined_call_operand.vmem [shape: bf16[2,16,32], index: 1, kind: input, shape index: {}]   ;;  %s1033_s2 = inlined_call_operand.vmem [shape: bf16[2,16,32], index: 2, kind: input, shape index: {}]   ;;  %s1034_s3 = inlined_call_operand.vmem [shape: f32[2,1,16], index: 3, kind: input, shape index: {}]   ;;  %s1035_s4 = inlined_call_operand.vmem [shape: bf16[2,16,32], index: 4, kind: output, shape index: {}]  }
   0x1   :  { %s917_s17 = smov 0  }
   0x2 LB: > { %s26_s18 = sadd.s32 1, %s876_s16  ;;  %p758_p0 = scmp.ge.s32.totalorder %s880_s17, 1  ;;  %s880_s17 = sphi %s917_s17, %s14_s17   ;;  %s876_s16 = sphi %s915_s16, %s1037_s16   ;;  %s872_s15 = sphi %s913_s15, %s1036_s15  }
   0x3   : > { %p28_p1 = scmp.ge.s32.totalorder %s26_s18, 2  ;;  %p211_p2 = scmp.lt.s32.totalorder %s880_s17, 3 }
   0x5   : > { %s1039_s18 = smov (%p28_p1, %s26_s18), 0  ;;  %p212_p3 = pnand %p758_p0, %p211_p2 }
   0x6   : > { %p259_p4 = scmp.lt.s32.totalorder (!%p212_p3), %s872_s15, 1  ;;  %s882_s29 = smov (!%p212_p3), 120  }
   0x7   : > { %215 = sbr.rel (%p212_p3) target bundleno = 819 (0x333), region = 36  ;;  %s883_s30 = smov (!%p212_p3), 112  }
   0x8   : > { %s884_s5 = smov (!%p212_p3), 104   ;;  %s885_s11 = smov (!%p212_p3), 8  }
   0x9   : > { %s886_s12 = smov (!%p212_p3), 24   ;;  %s887_s13 = smov (!%p212_p3), 16  }
   0xc   : > { %s1041_s15 = smov (!%p259_p4, %s872_s15), 1  ;;  %vm312_vm0 = vcmask 64512   ;;  %vm333_vm1 = vcmask 130048   ;;  %vm621_vm2 = vcmask 195584   ;;  %vm631_vm3 = vcmask 257024  }
   0xd   : > { %s934_s19 = sshll.u32 %s1041_s15, 3  ;;  %s280_s22 = scalar_lea.vmem %s1034_s3, %s1041_s15 }
   0xe   : > { %s272_s25 = scalar_lea.vmem %s1032_s1, %s934_s19  ;;  %s266_s28 = scalar_lea.vmem %s1031_s0, %s934_s19  ;;  %v963_v14 = vld [vmem:[%s280_s22] ss:$0 sm:$0xff] }
   0xf   : > { %v789_v0 = vld [vmem:[%s272_s25] sm:$0xff]  ;;  %s277_s10 = scalar_lea.vmem %s1033_s2, %s934_s19  ;;  %s289_s20 = scalar_lea.vmem %s1035_s4, %s934_s19 }
  0x10   : > { %v792_v1 = vld [vmem:[%s266_s28] sm:$0xff]   ;;  %385 = vrot.lane.b32.xlu1 %v789_v0, %s882_s29  ;;  %v317_v4 = vsel %vm312_vm0, %v789_v0, 0  ;;  %454 = vrot.lane.b32.xlu2 %v789_v0, %s883_s30 }
  0x11   : > { %v793_v2 = vunpack.c.l.bf16 %v792_v1  ;;  %v794_v3 = vunpack.c.h.bf16 %v792_v1  ;;  %326 = vmatpush.bf16.xpose.msra.mxu0 %v317_v4  ;;  %v970_v17 = vld [vmem:[%s277_s10] sm:$0xff] }
  0x12   : > { %371 = vmatpush.bf16.msra.mxu1 %v970_v17 }
  0x13   : > { %v301_v5 = vmul.f32 0.35351563, %v793_v2  ;;  %v302_v6 = vmul.f32 0.35351563, %v794_v3 }
  0x15   : > { %v303_v7 = vpack.c.bf16 %v302_v6, %v301_v5 }
  0x18   : > { %383 = vrot.lane.b32.xlu1 %v303_v7, %s882_s29  ;;  %771 = vmatmul.msk.bf16.vlgmr.msra.gmra.mxu0 %vm312_vm0, %v303_v7 }
  0x19   : > { %523 = vrot.lane.b32.xlu2 %v789_v0, %s884_s5 }
  0x20   : > { %521 = vrot.lane.b32.xlu1 %v303_v7, %s884_s5 }
  0x6a   : > { %v455_v8 = vpop.permute.xlu2 %454 }
  0x6b   : > { %v460_v18 = vsel %vm312_vm0, %v455_v8, 0 }
  0x6c   : > { %469 = vmatpush.bf16.xpose.msrb.mxu1 %v460_v18 }
  0x73   : > { %v524_v9 = vpop.permute.xlu2 %523 }
  0x74   : > { %v529_v10 = vsel %vm312_vm0, %v524_v9, 0 }
  0x75   : > { %538 = vmatpush.bf16.xpose.msrb.mxu0 %v529_v10 }
  0x82   : > { %v386_v11 = vpop.permute.xlu1 %385 }
  0x83   : > { %v391_v12 = vsel %vm312_vm0, %v386_v11, 0 }
  0x84   : > { %400 = vmatpush.bf16.xpose.msra.mxu2 %v391_v12 }
  0x8a   : > { %v384_v13 = vpop.permute.xlu1 %383 }
  0x8b   : > { %777 = vmatmul.msk.bf16.vlgmr.msra.gmra.mxu2 %vm312_vm0, %v384_v13 }
  0x92   : > { %v522_v15 = vpop.permute.xlu1 %521 }
  0x93   : > { %781 = vmatmul.msk.bf16.vlgmr.msrb.gmra.mxu0 %vm312_vm0, %v522_v15 }
  0x95   : > { %v328_v16 = vpop.f32.mrf.mxu0 }
  0x96   : > { %v329_v19 = vadd.f32 %v963_v14, %v328_v16 }
  0x98   : > { %v334_v20 = vsel %vm333_vm1, %v329_v19, -inf }
  0x99   : > { %335 = vmax.xlane.f32.xlu0 %v334_v20 }
  0x9d   : > { %v330_v21 = vpop.f32.mrf.mxu0 }
  0x9e   : > { %v331_v22 = vadd.f32 %v963_v14, %v330_v21 }
  0xa0   : > { %v337_v23 = vsel %vm333_vm1, %v331_v22, -inf }
  0xa1   : > { %338 = vmax.xlane.f32.xlu0 %v337_v23 }
  0xb5   : > { %452 = vrot.lane.b32.xlu0 %v303_v7, %s883_s30 }
  0xbd   : > { %428 = vrot.lane.b32.xlu0 %v970_v17, %s882_s29 }
 0x10c   : > { %v336_v24 = vpop.xlane.xlu0 %335 }
 0x10d   : > { %v340_v27 = vsub.f32 %v329_v19, %v336_v24 }
 0x10e   : > { %v402_v25 = vpop.f32.mrf.mxu2 }
 0x10f   : > { %v403_v26 = vadd.f32 %v963_v14, %v402_v25  ;;  %v342_v31 = vmul.f32 1.442695, %v340_v27 }
 0x110   : > { %v540_v28 = vpop.f32.mrf.mxu0 }
 0x111   : > { %v407_v29 = vsel %vm333_vm1, %v403_v26, -inf  ;;  %v541_v30 = vadd.f32 %v963_v14, %v540_v28  ;;  %826 = vpow2.f32 %v342_v31 }
 0x112   : > { %408 = vmax.xlane.f32.xlu2 %v407_v29 }
 0x113   : > { %v545_v37 = vsel %vm333_vm1, %v541_v30, -inf }
 0x114   : > { %v339_v32 = vpop.xlane.xlu0 %338 }
 0x115   : > { %v341_v33 = vsub.f32 %v331_v22, %v339_v32 }
 0x116   : > { %v404_v34 = vpop.f32.mrf.mxu2 }
 0x117   : > { %v344_v35 = vmul.f32 1.442695, %v341_v33  ;;  %v405_v36 = vadd.f32 %v963_v14, %v404_v34  ;;  %v827_v41 = vpop.eup %826 }
 0x118   : > { %v542_v38 = vpop.f32.mrf.mxu0 }
 0x119   : > { %828 = vpow2.f32 %v344_v35  ;;  %v410_v39 = vsel %vm333_vm1, %v405_v36, -inf  ;;  %v543_v40 = vadd.f32 %v963_v14, %v542_v38 }
 0x11a   : > { %411 = vmax.xlane.f32.xlu1 %v410_v39  ;;  %546 = vmax.xlane.f32.xlu2 %v545_v37 }
 0x11b   : > { %v548_v43 = vsel %vm333_vm1, %v543_v40, -inf }
 0x11f   : > { %v829_v42 = vpop.eup %828 }
 0x120   : > { %v354_v44 = vpack.c.bf16 %v829_v42, %v827_v41  ;;  %v349_v15 = vsel %vm333_vm1, %v829_v42, 0.0 }
 0x122   : > { %549 = vmax.xlane.f32.xlu1 %v548_v43  ;;  %776 = vmatmul.msk.bf16.vlgmr.msra.gmra.mxu1 %vm333_vm1, %v354_v44 }
 0x127   : > { %v453_v45 = vpop.permute.xlu0 %452 }
 0x12f   : > { %v429_v46 = vpop.permute.xlu0 %428 }
 0x130   : > { %441 = vmatpush.bf16.msra.mxu3 %v429_v46 }
 0x132   : > { %779 = vmatmul.msk.bf16.vlgmr.msrb.gmra.mxu1 %vm312_vm0, %v453_v45 }
 0x13b   : > { %566 = vrot.lane.b32.xlu1 %v970_v17, %s884_s5 }
 0x185   : > { %v409_v47 = vpop.xlane.xlu2 %408 }
 0x186   : > { %v413_v48 = vsub.f32 %v403_v26, %v409_v47 }
 0x188   : > { %v415_v49 = vmul.f32 1.442695, %v413_v48 }
 0x18a   : > { %830 = vpow2.f32 %v415_v49 }
 0x18d   : > { %v412_v50 = vpop.xlane.xlu1 %411  ;;  %v547_v57 = vpop.xlane.xlu2 %546 }
 0x18e   : > { %v414_v51 = vsub.f32 %v405_v36, %v412_v50  ;;  %v551_v60 = vsub.f32 %v541_v30, %v547_v57 }
 0x190   : > { %v417_v52 = vmul.f32 1.442695, %v414_v51  ;;  %v831_v53 = vpop.eup %830  ;;  %v553_v62 = vmul.f32 1.442695, %v551_v60 }
 0x191   : > { %v419_v10 = vsel %vm333_vm1, %v831_v53, 0.0 }
 0x192   : > { %832 = vpow2.f32 %v417_v52 }
 0x195   : > { %v550_v56 = vpop.xlane.xlu1 %549 }
 0x196   : > { %v552_v58 = vsub.f32 %v543_v40, %v550_v56 }
 0x198   : > { %v833_v54 = vpop.eup %832  ;;  %v555_v61 = vmul.f32 1.442695, %v552_v58 }
 0x199   : > { %v427_v55 = vpack.c.bf16 %v833_v54, %v831_v53  ;;  %v422_v11 = vsel %vm333_vm1, %v833_v54, 0.0 }
 0x19a   : > { %834 = vpow2.f32 %v555_v61 }
 0x19b   : > { %778 = vmatmul.msk.bf16.vlgmr.msra.gmra.mxu3 %vm333_vm1, %v427_v55  ;;  %836 = vpow2.f32 %v553_v62 }
 0x19f   : > { %v994_v59 = vpop.f32.mrf.mxu1 }
 0x1a0   : > { %v835_v0 = vpop.eup %834 }
 0x1a1   : > { %v837_v2 = vpop.eup %836  ;;  %v560_v13 = vsel %vm333_vm1, %v835_v0, 0.0 }
 0x1a2   : > { %v565_v4 = vpack.c.bf16 %v835_v0, %v837_v2  ;;  %v557_v12 = vsel %vm333_vm1, %v837_v2, 0.0 }
 0x1a7   : > { %v996_v63 = vpop.f32.mrf.mxu1 }
 0x1ad   : > { %v567_v1 = vpop.permute.xlu1 %566 }
 0x1ae   : > { %579 = vmatpush.bf16.msrb.mxu2 %v567_v1 }
 0x1af   : > { %v471_v3 = vpop.f32.mrf.mxu1 }
 0x1b0   : > { %v472_v5 = vadd.f32 %v963_v14, %v471_v3 }
 0x1b1   : > { %782 = vmatmul.msk.bf16.vlgmr.msrb.gmra.mxu2 %vm333_vm1, %v565_v4 }
 0x1b2   : > { %v476_v6 = vsel %vm333_vm1, %v472_v5, -inf }
 0x1b3   : > { %477 = vmax.xlane.f32.xlu0 %v476_v6 }
 0x1b7   : > { %v473_v7 = vpop.f32.mrf.mxu1 }
 0x1b8   : > { %v474_v8 = vadd.f32 %v963_v14, %v473_v7  ;;  %v346_v14 = vsel %vm333_vm1, %v827_v41, 0.0 }
 0x1ba   : > { %v479_v9 = vsel %vm333_vm1, %v474_v8, -inf }
 0x1bb   : > { %480 = vmax.xlane.f32.xlu2 %v479_v9  ;;  %420 = vadd.xlane.f32.xlu0 %v419_v10 }
 0x1c3   : > { %423 = vadd.xlane.f32.xlu0 %v422_v11 }
 0x1cb   : > { %558 = vadd.xlane.f32.xlu0 %v557_v12 }
 0x1d3   : > { %561 = vadd.xlane.f32.xlu0 %v560_v13  ;;  %497 = vrot.lane.b32.xlu2 %v970_v17, %s883_s30 }
 0x1db   : > { %347 = vadd.xlane.f32.xlu0 %v346_v14 }
 0x1e3   : > { %350 = vadd.xlane.f32.xlu0 %v349_v15 }
 0x21e   : > { %v443_v26 = vpop.f32.mrf.mxu3 }
 0x226   : > { %v478_v16 = vpop.xlane.xlu0 %477  ;;  %v445_v34 = vpop.f32.mrf.mxu3 }
 0x227   : > { %v482_v18 = vsub.f32 %v472_v5, %v478_v16 }
 0x229   : > { %v484_v19 = vmul.f32 1.442695, %v482_v18 }
 0x22b   : > { %838 = vpow2.f32 %v484_v19 }
 0x22e   : > { %v481_v20 = vpop.xlane.xlu2 %480  ;;  %v421_v21 = vpop.xlane.xlu0 %420 }
 0x22f   : > { %v483_v22 = vsub.f32 %v474_v8, %v481_v20  ;;  %840 = vrcp.f32 %v421_v21 }
 0x231   : > { %v839_v23 = vpop.eup %838  ;;  %v486_v24 = vmul.f32 1.442695, %v483_v22 }
 0x232   : > { %v488_v25 = vsel %vm333_vm1, %v839_v23, 0.0 }
 0x233   : > { %842 = vpow2.f32 %v486_v24  ;;  %489 = vadd.xlane.f32.xlu2 %v488_v25 }
 0x234   : > { %v581_v41 = vpop.f32.mrf.mxu2 }
 0x235   : > { %v841_v28 = vpop.eup %840 }
 0x236   : > { %v498_v17 = vpop.permute.xlu2 %497  ;;  %v424_v27 = vpop.xlane.xlu0 %423  ;;  %v448_v32 = vmul.f32 %v841_v28, %v443_v26 }
 0x237   : > { %844 = vrcp.f32 %v424_v27  ;;  %510 = vmatpush.bf16.msrb.mxu3 %v498_v17 }
 0x238   : > { %v450_v37 = vpack.c.bf16 %v448_v32, %v448_v32 }
 0x239   : > { %v843_v29 = vpop.eup %842 }
 0x23a   : > { %v491_v30 = vsel %vm333_vm1, %v843_v29, 0.0  ;;  %v496_v31 = vpack.c.bf16 %v843_v29, %v839_v23  ;;  %v597_v39 = vunpack.c.l.b16 %v450_v37 }
 0x23b   : > { %492 = vadd.xlane.f32.xlu1 %v491_v30 }
 0x23c   : > { %780 = vmatmul.msk.bf16.vlgmr.msrb.gmra.mxu3 %vm333_vm1, %v496_v31  ;;  %v583_v47 = vpop.f32.mrf.mxu2 }
 0x23d   : > { %v845_v33 = vpop.eup %844 }
 0x23e   : > { %v559_v35 = vpop.xlane.xlu0 %558  ;;  %v449_v36 = vmul.f32 %v845_v33, %v445_v34 }
 0x23f   : > { %846 = vrcp.f32 %v559_v35 }
 0x240   : > { %v451_v38 = vpack.c.bf16 %v449_v36, %v449_v36 }
 0x242   : > { %v598_v40 = vunpack.c.l.b16 %v451_v38 }
 0x244   : > { %v599_v42 = vpack.c.b16 %v598_v40, %v597_v39 }
 0x245   : > { %v847_v44 = vpop.eup %846 }
 0x246   : > { %600 = vrot.lane.b32.xlu0 %v599_v42, %s885_s11  ;;  %v562_v43 = vpop.xlane.xlu0 %561  ;;  %v586_v45 = vmul.f32 %v847_v44, %v581_v41 }
 0x247   : > { %848 = vrcp.f32 %v562_v43 }
 0x248   : > { %v588_v49 = vpack.c.bf16 %v586_v45, %v586_v45 }
 0x24a   : > { %v611_v51 = vunpack.c.l.b16 %v588_v49 }
 0x24d   : > { %v849_v46 = vpop.eup %848 }
 0x24e   : > { %v587_v48 = vmul.f32 %v849_v46, %v583_v47  ;;  %v348_v5 = vpop.xlane.xlu0 %347 }
 0x250   : > { %v589_v50 = vpack.c.bf16 %v587_v48, %v587_v48 }
 0x252   : > { %v612_v52 = vunpack.c.l.b16 %v589_v50 }
 0x254   : > { %v613_v53 = vpack.c.b16 %v612_v52, %v611_v51 }
 0x256   : > { %614 = vrot.lane.b32.xlu1 %v613_v53, %s886_s12  ;;  %v351_v6 = vpop.xlane.xlu0 %350 }
 0x2a6   : > { %v490_v54 = vpop.xlane.xlu2 %489 }
 0x2a7   : > { %850 = vrcp.f32 %v490_v54 }
 0x2ad   : > { %v851_v57 = vpop.eup %850 }
 0x2ae   : > { %v493_v55 = vpop.xlane.xlu1 %492 }
 0x2af   : > { %852 = vrcp.f32 %v493_v55 }
 0x2b0   : > { %854 = vrcp.f32 %v351_v6 }
 0x2b1   : > { %856 = vrcp.f32 %v348_v5 }
 0x2b5   : > { %v853_v60 = vpop.eup %852 }
 0x2b6   : > { %v855_v7 = vpop.eup %854 }
 0x2b7   : > { %v857_v8 = vpop.eup %856  ;;  %v379_v9 = vmul.f32 %v855_v7, %v996_v63 }
 0x2b8   : > { %v378_v10 = vmul.f32 %v857_v8, %v994_v59  ;;  %v601_v15 = vpop.permute.xlu0 %600 }
 0x2b9   : > { %v381_v11 = vpack.c.bf16 %v379_v9, %v379_v9 }
 0x2ba   : > { %v380_v12 = vpack.c.bf16 %v378_v10, %v378_v10 }
 0x2bb   : > { %v593_v13 = vunpack.c.l.b16 %v381_v11 }
 0x2bc   : > { %v592_v14 = vunpack.c.l.b16 %v380_v12 }
 0x2be   : > { %v594_v16 = vpack.c.b16 %v593_v13, %v592_v14 }
 0x2bf   : > { %v512_v56 = vpop.f32.mrf.mxu3 }
 0x2c0   : > { %v517_v58 = vmul.f32 %v851_v57, %v512_v56  ;;  %v618_v18 = vsel %vm312_vm0, %v594_v16, %v601_v15 }
 0x2c2   : > { %v519_v62 = vpack.c.bf16 %v517_v58, %v517_v58 }
 0x2c4   : > { %v604_v2 = vunpack.c.l.b16 %v519_v62 }
 0x2c7   : > { %v514_v61 = vpop.f32.mrf.mxu3 }
 0x2c8   : > { %v518_v0 = vmul.f32 %v853_v60, %v514_v61  ;;  %v615_v20 = vpop.permute.xlu1 %614 }
 0x2ca   : > { %v520_v1 = vpack.c.bf16 %v518_v0, %v518_v0 }
 0x2cc   : > { %v605_v3 = vunpack.c.l.b16 %v520_v1 }
 0x2ce   : > { %v606_v4 = vpack.c.b16 %v605_v3, %v604_v2 }
 0x2d0   : > { %607 = vrot.lane.b32.xlu2 %v606_v4, %s887_s13 }
 0x32a   : > { %v608_v19 = vpop.permute.xlu2 %607 }
 0x32b   : > { %v620_v21 = vsel %vm333_vm1, %v618_v18, %v608_v19 }
 0x32c   : > { %v623_v22 = vsel %vm621_vm2, %v620_v21, %v615_v20 }
 0x32d   : > { %v625_v23 = vunpack.c.l.b16 %v623_v22  ;;  %v626_v24 = vunpack.c.h.b16 %v623_v22 }
 0x32f   : > { %v627_v59 = vpack.c.b16 %v625_v23, %v625_v23  ;;  %v628_v63 = vpack.c.b16 %v626_v24, %v626_v24 }
 0x331   : > { %632 = vst.msk [vmem:[%s289_s20] sm:$0xf] %vm631_vm3, %v627_v59 }
 0x332   : > { %633 = vst.msk [vmem:[%s289_s20 + $0x4] sm:$0xf] %vm631_vm3, %v628_v63 }
 0x333 PF: > { %s14_s17 = sadd.s32 1, %s880_s17   ;;  %s1036_s15 = smov %s876_s16 }
 0x334   : > { %p11_p5 = scmp.ge.s32.totalorder %s14_s17, 4   ;;  %s1037_s16 = smov %s1039_s18 }
 0x336   :  { %13 = sbr.rel (!%p11_p5) target bundleno = 2 (0x2), region = 75 }

// kernel: _lambda_.32
= control target key start
LH: loop header
LB: loop body
LE: loop exit
PB: predicated region body
PF: predicated region fallthrough
CT: control target
= control target key end

     0   :  { %vm61_vm0 = vcmask 261120   ;;  %vm129_vm1 = vcmask 523264   ;;  %v352_v46 = vmov 32.0   ;;  %vm278_vm7 = vcmask 257024   ;;  %s476_s1 = inlined_call_operand.vmem [shape: bf16[32,64], index: 1, kind: input, shape index: {}]   ;;  %s477_s2 = inlined_call_operand.vmem [shape: f32[1,64], index: 2, kind: input, shape index: {}]   ;;  %s478_s0 = inlined_call_operand.vmem [shape: bf16[32,32], index: 0, kind: input, shape index: {}]   ;;  %s479_s4 = inlined_call_operand.vmem [shape: f32[1,32], index: 4, kind: input, shape index: {}]   ;;  %s480_s3 = inlined_call_operand.vmem [shape: bf16[64,32], index: 3, kind: input, shape index: {}]   ;;  %s481_s5 = inlined_call_operand.vmem [shape: f32[1,32], index: 5, kind: input, shape index: {}]   ;;  %s482_s6 = inlined_call_operand.vmem [shape: f32[1,32], index: 6, kind: input, shape index: {}]   ;;  %s483_s7 = inlined_call_operand.vmem [shape: bf16[32,32], index: 7, kind: output, shape index: {}]  }
   0x1   :  { %v326_v0 = vld [vmem:[%s476_s1 + $0x8] sm:$0xff]  ;;  %v325_v1 = vld [vmem:[%s476_s1] sm:$0xff]  ;;  %v330_v4 = vld [vmem:[%s480_s3 + $0x18] sm:$0xff]  ;;  %342 = vrcp.f32 %v352_v46 }
   0x2   :  { %74 = vmatpush.bf16.msra.mxu0 %v326_v0  ;;  %331 = vmatpush.bf16.msra.mxu3 %v326_v0  ;;  %v323_v2 = vld [vmem:[%s478_s0] sm:$0xff]  ;;  %v324_v3 = vld [vmem:[%s478_s0 + $0x8] sm:$0xff]  ;;  %v329_v5 = vld [vmem:[%s480_s3 + $0x10] sm:$0xff] }
   0x3   :  { %140 = vmatpush.bf16.msra.mxu1 %v330_v4  ;;  %333 = vmatpush.bf16.msra.mxu2 %v330_v4  ;;  %v328_v6 = vld [vmem:[%s480_s3 + $0x8] sm:$0xff]  ;;  %v327_v7 = vld [vmem:[%s480_s3] sm:$0xff] }
   0x4   :  { %v338_v9 = vld [vmem:[%s477_s2] ss:$0 sm:$0xff]  ;;  %v29_v32 = vld [vmem:[%s478_s0 + $0x8] sm:$0xff]  }
   0x5   :  { %v27_v23 = vld [vmem:[%s478_s0] sm:$0xff]   ;;  %v157_v35 = vunpack.c.l.bf16 %v29_v32  ;;  %v158_v41 = vunpack.c.h.bf16 %v29_v32 }
   0x6   :  { %75 = vmatpush.bf16.msra.mxu0 %v325_v1  ;;  %332 = vmatpush.bf16.msra.mxu3 %v325_v1  ;;  %v339_v24 = vld [vmem:[%s479_s4] ss:$0 sm:$0xff]  ;;  %v155_v25 = vunpack.c.l.bf16 %v27_v23  ;;  %v156_v30 = vunpack.c.h.bf16 %v27_v23 }
   0x7   :  { %141 = vmatpush.bf16.msra.mxu1 %v329_v5  ;;  %334 = vmatpush.bf16.msra.mxu2 %v329_v5  ;;  %v343_v47 = vpop.eup %342  ;;  %v341_v32 = vld [vmem:[%s482_s6] ss:$0 sm:$0xff] }
   0x8   :  { %v176_v48 = vmul.f32 32.0, %v343_v47  ;;  %vm180_vm2 = vweird.f32 %v343_v47 }
   0x9   :  { %303 = vmatmul.msk.bf16.vlgmr.msra.gmra.mxu0 %vm61_vm0, %v323_v2  ;;  %304 = vmatmul.msk.bf16.vlgmr.msra.gmra.mxu3 %vm61_vm0, %v324_v3 }
   0xa   :  { %v177_v49 = vsub.f32 1.0, %v176_v48 }
   0xb   :  { %142 = vmatpush.bf16.msra.mxu1 %v328_v6  ;;  %335 = vmatpush.bf16.msra.mxu2 %v328_v6 }
   0xc   :  { %v178_v50 = vmul.f32 %v343_v47, %v177_v49 }
   0xe   :  { %v179_v51 = vadd.f32 %v343_v47, %v178_v50 }
   0xf   :  { %143 = vmatpush.bf16.msra.mxu1 %v327_v7  ;;  %336 = vmatpush.bf16.msra.mxu2 %v327_v7 }
  0x10   :  { %v181_v52 = vsel %vm180_vm2, %v343_v47, %v179_v51 }
  0x86   :  { %v77_v8 = vpop.f32.mrf.mxu0 }
  0x87   :  { %v78_v10 = vadd.f32 %v338_v9, %v77_v8 }
  0x89   :  { %v87_v13 = vmax.f32 %v78_v10, 0.0 }
  0x8c   :  { %v82_v11 = vpop.f32.mrf.mxu3 }
  0x8d   :  { %v83_v16 = vadd.f32 %v338_v9, %v82_v11 }
  0x8e   :  { %v79_v12 = vpop.f32.mrf.mxu0 }
  0x8f   :  { %v80_v14 = vadd.f32 %v338_v9, %v79_v12  ;;  %v89_v20 = vmax.f32 %v83_v16, 0.0 }
  0x91   :  { %v88_v15 = vmax.f32 %v80_v14, 0.0 }
  0x93   :  { %v91_v17 = vpack.c.bf16 %v88_v15, %v87_v13 }
  0x94   :  { %v84_v18 = vpop.f32.mrf.mxu3 }
  0x95   :  { %v85_v19 = vadd.f32 %v338_v9, %v84_v18  ;;  %321 = vmatmul.msk.bf16.vlgmr.msra.gmra.mxu1 %vm129_vm1, %v91_v17 }
  0x97   :  { %v90_v21 = vmax.f32 %v85_v19, 0.0 }
  0x99   :  { %v92_v22 = vpack.c.bf16 %v90_v21, %v89_v20 }
  0x9b   :  { %322 = vmatmul.msk.bf16.vlgmr.msra.gmra.mxu2 %vm129_vm1, %v92_v22 }
 0x112   :  { %v145_v26 = vpop.f32.mrf.mxu1 }
 0x113   :  { %v146_v27 = vadd.f32 %v339_v24, %v145_v26 }
 0x115   :  { %v159_v28 = vadd.f32 %v155_v25, %v146_v27  ;;  %v340_v27 = vld [vmem:[%s481_s5] ss:$0 sm:$0xff] }
 0x117   :  { %v163_v29 = vsel %vm61_vm0, %v159_v28, 0.0 }
 0x118   :  { %164 = vadd.xlane.f32.xlu0 %v163_v29 }
 0x11a   :  { %v147_v31 = vpop.f32.mrf.mxu1 }
 0x11b   :  { %v148_v33 = vadd.f32 %v339_v24, %v147_v31 }
 0x11d   :  { %v160_v34 = vadd.f32 %v156_v30, %v148_v33 }
 0x11e   :  { %v150_v36 = vpop.f32.mrf.mxu2 }
 0x11f   :  { %v151_v37 = vadd.f32 %v339_v24, %v150_v36  ;;  %v166_v38 = vsel %vm61_vm0, %v160_v34, 0.0 }
 0x120   :  { %167 = vadd.xlane.f32.xlu0 %v166_v38 }
 0x121   :  { %v161_v39 = vadd.f32 %v157_v35, %v151_v37 }
 0x123   :  { %v169_v40 = vsel %vm61_vm0, %v161_v39, 0.0 }
 0x124   :  { %170 = vadd.xlane.f32.xlu1 %v169_v40 }
 0x126   :  { %v152_v42 = vpop.f32.mrf.mxu2 }
 0x127   :  { %v153_v43 = vadd.f32 %v339_v24, %v152_v42 }
 0x129   :  { %v162_v44 = vadd.f32 %v158_v41, %v153_v43 }
 0x12b   :  { %v172_v45 = vsel %vm61_vm0, %v162_v44, 0.0 }
 0x12c   :  { %173 = vadd.xlane.f32.xlu1 %v172_v45 }
 0x18b   :  { %v165_v53 = vpop.xlane.xlu0 %164 }
 0x18c   :  { %v182_v54 = vmul.f32 %v181_v52, %v165_v53 }
 0x18e   :  { %v186_v55 = vsub.f32 %v159_v28, %v182_v54 }
 0x190   :  { %v190_v56 = vmul.f32 %v186_v55, %v186_v55 }
 0x192   :  { %v194_v57 = vsel %vm61_vm0, %v190_v56, 0.0 }
 0x193   :  { %195 = vadd.xlane.f32.xlu2 %v194_v57  ;;  %v168_v58 = vpop.xlane.xlu0 %167 }
 0x194   :  { %v183_v59 = vmul.f32 %v181_v52, %v168_v58 }
 0x196   :  { %v436_v60 = vsub.f32 %v160_v34, %v183_v59 }
 0x197   :  { %v171_v61 = vpop.xlane.xlu1 %170 }
 0x198   :  { %v184_v62 = vmul.f32 %v181_v52, %v171_v61  ;;  %v191_v63 = vmul.f32 %v436_v60, %v436_v60 }
 0x19a   :  { %v440_v0 = vsub.f32 %v161_v39, %v184_v62  ;;  %v197_v1 = vsel %vm61_vm0, %v191_v63, 0.0 }
 0x19b   :  { %198 = vadd.xlane.f32.xlu2 %v197_v1 }
 0x19c   :  { %v192_v2 = vmul.f32 %v440_v0, %v440_v0 }
 0x19e   :  { %v200_v3 = vsel %vm61_vm0, %v192_v2, 0.0 }
 0x19f   :  { %v174_v4 = vpop.xlane.xlu1 %173  ;;  %201 = vadd.xlane.f32.xlu0 %v200_v3 }
 0x1a0   :  { %v185_v5 = vmul.f32 %v181_v52, %v174_v4 }
 0x1a2   :  { %v446_v6 = vsub.f32 %v162_v44, %v185_v5 }
 0x1a4   :  { %v193_v7 = vmul.f32 %v446_v6, %v446_v6 }
 0x1a6   :  { %v203_v8 = vsel %vm61_vm0, %v193_v7, 0.0 }
 0x1a7   :  { %204 = vadd.xlane.f32.xlu1 %v203_v8 }
 0x206   :  { %v196_v9 = vpop.xlane.xlu2 %195 }
 0x207   :  { %v206_v10 = vmul.f32 %v196_v9, %v181_v52 }
 0x209   :  { %v210_v11 = vadd.f32 1e-05, %v206_v10 }
 0x20b   :  { %344 = vrsqrt.f32 %v210_v11  ;;  %vm220_vm4 = vweird.f32 %v210_v11 }
 0x20e   :  { %v199_v12 = vpop.xlane.xlu2 %198 }
 0x20f   :  { %v207_v13 = vmul.f32 %v199_v12, %v181_v52 }
 0x211   :  { %v345_v14 = vpop.eup %344  ;;  %v211_v15 = vadd.f32 1e-05, %v207_v13 }
 0x212   :  { %v215_v16 = vmul.f32 %v345_v14, %v210_v11  ;;  %v202_v17 = vpop.xlane.xlu0 %201  ;;  %vm221_vm3 = vweird.f32 %v345_v14 }
 0x213   :  { %346 = vrsqrt.f32 %v211_v15  ;;  %v208_v18 = vmul.f32 %v202_v17, %v181_v52  ;;  %vm222_vm5 = vmor %vm220_vm4, %vm221_vm3  ;;  %vm230_vm8 = vweird.f32 %v211_v15 }
 0x214   :  { %v216_v19 = vmul.f32 %v345_v14, %v215_v16 }
 0x215   :  { %v212_v20 = vadd.f32 1e-05, %v208_v18 }
 0x216   :  { %v217_v21 = vmul.f32 0.5, %v216_v19 }
 0x217   :  { %348 = vrsqrt.f32 %v212_v20  ;;  %vm240_vm11 = vweird.f32 %v212_v20 }
 0x218   :  { %v218_v22 = vsub.f32 1.5, %v217_v21 }
 0x219   :  { %v347_v23 = vpop.eup %346 }
 0x21a   :  { %v219_v24 = vmul.f32 %v345_v14, %v218_v22  ;;  %v225_v25 = vmul.f32 %v347_v23, %v211_v15  ;;  %v205_v26 = vpop.xlane.xlu1 %204  ;;  %vm231_vm6 = vweird.f32 %v347_v23 }
 0x21b   :  { %v209_v28 = vmul.f32 %v205_v26, %v181_v52  ;;  %vm232_vm9 = vmor %vm230_vm8, %vm231_vm6 }
 0x21c   :  { %v223_v29 = vsel %vm222_vm5, %v345_v14, %v219_v24  ;;  %v226_v30 = vmul.f32 %v347_v23, %v225_v25 }
 0x21d   :  { %v349_v31 = vpop.eup %348  ;;  %v254_v33 = vmul.f32 %v223_v29, %v186_v55  ;;  %v213_v34 = vadd.f32 1e-05, %v209_v28 }
 0x21e   :  { %v227_v35 = vmul.f32 0.5, %v226_v30  ;;  %v235_v36 = vmul.f32 %v349_v31, %v212_v20  ;;  %vm241_vm10 = vweird.f32 %v349_v31 }
 0x21f   :  { %v262_v37 = vmul.f32 %v340_v27, %v254_v33  ;;  %350 = vrsqrt.f32 %v213_v34  ;;  %vm242_vm12 = vmor %vm240_vm11, %vm241_vm10  ;;  %vm250_vm14 = vweird.f32 %v213_v34 }
 0x220   :  { %v228_v38 = vsub.f32 1.5, %v227_v35  ;;  %v236_v39 = vmul.f32 %v349_v31, %v235_v36 }
 0x221   :  { %v270_v40 = vadd.f32 %v341_v32, %v262_v37 }
 0x222   :  { %v229_v41 = vmul.f32 %v347_v23, %v228_v38  ;;  %v237_v42 = vmul.f32 0.5, %v236_v39 }
 0x223   :  { %v274_v43 = vpack.c.bf16 %v270_v40, %v270_v40 }
 0x224   :  { %v233_v44 = vsel %vm232_vm9, %v347_v23, %v229_v41  ;;  %v238_v45 = vsub.f32 1.5, %v237_v42 }
 0x225   :  { %v351_v46 = vpop.eup %350  ;;  %279 = vst.msk [vmem:[%s483_s7] sm:$0xf] %vm278_vm7, %v274_v43  ;;  %v255_v47 = vmul.f32 %v233_v44, %v436_v60 }
 0x226   :  { %v239_v48 = vmul.f32 %v349_v31, %v238_v45  ;;  %v245_v49 = vmul.f32 %v351_v46, %v213_v34  ;;  %vm251_vm13 = vweird.f32 %v351_v46 }
 0x227   :  { %v263_v50 = vmul.f32 %v340_v27, %v255_v47  ;;  %vm252_vm15 = vmor %vm250_vm14, %vm251_vm13 }
 0x228   :  { %v243_v51 = vsel %vm242_vm12, %v349_v31, %v239_v48  ;;  %v246_v52 = vmul.f32 %v351_v46, %v245_v49 }
 0x229   :  { %v271_v53 = vadd.f32 %v341_v32, %v263_v50  ;;  %v256_v54 = vmul.f32 %v243_v51, %v440_v0 }
 0x22a   :  { %v247_v55 = vmul.f32 0.5, %v246_v52 }
 0x22b   :  { %v275_v56 = vpack.c.bf16 %v271_v53, %v271_v53  ;;  %v264_v57 = vmul.f32 %v340_v27, %v256_v54 }
 0x22c   :  { %v248_v58 = vsub.f32 1.5, %v247_v55 }
 0x22d   :  { %280 = vst.msk [vmem:[%s483_s7 + $0x4] sm:$0xf] %vm278_vm7, %v275_v56  ;;  %v272_v59 = vadd.f32 %v341_v32, %v264_v57 }
 0x22e   :  { %v249_v60 = vmul.f32 %v351_v46, %v248_v58 }
 0x22f   :  { %v276_v61 = vpack.c.bf16 %v272_v59, %v272_v59 }
 0x230   :  { %v253_v62 = vsel %vm252_vm15, %v351_v46, %v249_v60 }
 0x231   :  { %281 = vst.msk [vmem:[%s483_s7 + $0x8] sm:$0xf] %vm278_vm7, %v276_v61  ;;  %v257_v63 = vmul.f32 %v253_v62, %v446_v6 }
 0x233   :  { %v265_v0 = vmul.f32 %v340_v27, %v257_v63 }
 0x235   :  { %v273_v1 = vadd.f32 %v341_v32, %v265_v0 }
 0x237   :  { %v277_v2 = vpack.c.bf16 %v273_v1, %v273_v1 }
 0x239   :  { %282 = vst.msk [vmem:[%s483_s7 + $0xc] sm:$0xf] %vm278_vm7, %v277_v2 }

// kernel: _lambda_.36
= control target key start
LH: loop header
LB: loop body
LE: loop exit
PB: predicated region body
PF: predicated region fallthrough
CT: control target
= control target key end

     0   :  { %12 = vsyncpa [#allocation3], 0  ;;  %s394_s27 = smov [#allocation2]   ;;  %s519_s0 = inlined_call_operand.vmem [shape: bf16[32,32], index: 0, kind: input, shape index: {}]   ;;  %s520_s1 = inlined_call_operand.vmem [shape: bf16[32,64], index: 1, kind: input, shape index: {}]   ;;  %s521_s2 = inlined_call_operand.vmem [shape: f32[1,64], index: 2, kind: input, shape index: {}]   ;;  %s522_s3 = inlined_call_operand.vmem [shape: bf16[64,32], index: 3, kind: input, shape index: {}]   ;;  %s523_s4 = inlined_call_operand.vmem [shape: f32[1,32], index: 4, kind: input, shape index: {}]   ;;  %s524_s5 = inlined_call_operand.vmem [shape: f32[1,32], index: 5, kind: input, shape index: {}]   ;;  %s525_s6 = inlined_call_operand.hbm [shape: f32[1,32], index: 6, kind: input, shape index: {}]   ;;  %s526_s7 = inlined_call_operand.vmem [shape: bf16[32,32], index: 7, kind: output, shape index: {}]  }
   0x1   :  { %s30_s26 = sshll.u32 %s525_s6, 4  ;;  %s32_s28 = sshll.u32 %s394_s27, 4  ;;  %s31_s26 = int_to_ptr.hbm [resolvable:$true] %s30_s26  ;;  %s33_s28 = int_to_ptr.vmem [resolvable:$true] %s32_s28 }
   0x2   :  { %35 = dma.hbm_to_vmem [thread:$0]  %s31_s26, 16, %s33_s28, [#allocation3]  }
   0x3   :  { %392 = dma.done.wait [#allocation3], 16  }
   0x4   :  { %393 = vsyncadd [#allocation3], 4294967280  ;;  %v341_v0 = vld [vmem:[%s520_s1 + $0x8] sm:$0xff]  ;;  %v340_v1 = vld [vmem:[%s520_s1] sm:$0xff]  ;;  %vm75_vm0 = vcmask 261120   ;;  %vm143_vm1 = vcmask 523264  }
   0x5   :  { %88 = vmatpush.bf16.msra.mxu0 %v341_v0  ;;  %346 = vmatpush.bf16.msra.mxu3 %v341_v0  ;;  %v338_v2 = vld [vmem:[%s519_s0] sm:$0xff]  ;;  %v339_v3 = vld [vmem:[%s519_s0 + $0x8] sm:$0xff]  ;;  %v345_v4 = vld [vmem:[%s522_s3 + $0x18] sm:$0xff]  ;;  %v395_v46 = vmov 32.0   ;;  %vm292_vm7 = vcmask 257024  }
   0x6   :  { %154 = vmatpush.bf16.msra.mxu1 %v345_v4  ;;  %348 = vmatpush.bf16.msra.mxu2 %v345_v4  ;;  %v344_v5 = vld [vmem:[%s522_s3 + $0x10] sm:$0xff]  ;;  %v343_v6 = vld [vmem:[%s522_s3 + $0x8] sm:$0xff]  ;;  %v342_v7 = vld [vmem:[%s522_s3] sm:$0xff]  ;;  %358 = vrcp.f32 %v395_v46 }
   0x7   :  { %v354_v9 = vld [vmem:[%s521_s2] ss:$0 sm:$0xff]  ;;  %v43_v32 = vld [vmem:[%s519_s0 + $0x8] sm:$0xff]  }
   0x8   :  { %v41_v23 = vld [vmem:[%s519_s0] sm:$0xff]   ;;  %v171_v35 = vunpack.c.l.bf16 %v43_v32  ;;  %v172_v41 = vunpack.c.h.bf16 %v43_v32 }
   0x9   :  { %89 = vmatpush.bf16.msra.mxu0 %v340_v1  ;;  %347 = vmatpush.bf16.msra.mxu3 %v340_v1  ;;  %v355_v24 = vld [vmem:[%s523_s4] ss:$0 sm:$0xff]  ;;  %v169_v25 = vunpack.c.l.bf16 %v41_v23  ;;  %v170_v30 = vunpack.c.h.bf16 %v41_v23 }
   0xa   :  { %155 = vmatpush.bf16.msra.mxu1 %v344_v5  ;;  %349 = vmatpush.bf16.msra.mxu2 %v344_v5  ;;  %v357_v32 = vld [vmem:[#allocation2] ss:$0 sm:$0xff] }
   0xc   :  { %318 = vmatmul.msk.bf16.vlgmr.msra.gmra.mxu0 %vm75_vm0, %v338_v2  ;;  %319 = vmatmul.msk.bf16.vlgmr.msra.gmra.mxu3 %vm75_vm0, %v339_v3  ;;  %v359_v47 = vpop.eup %358 }
   0xd   :  { %v190_v48 = vmul.f32 32.0, %v359_v47  ;;  %vm194_vm2 = vweird.f32 %v359_v47 }
   0xe   :  { %156 = vmatpush.bf16.msra.mxu1 %v343_v6  ;;  %350 = vmatpush.bf16.msra.mxu2 %v343_v6 }
   0xf   :  { %v191_v49 = vsub.f32 1.0, %v190_v48 }
  0x11   :  { %v192_v50 = vmul.f32 %v359_v47, %v191_v49 }
  0x12   :  { %157 = vmatpush.bf16.msra.mxu1 %v342_v7  ;;  %351 = vmatpush.bf16.msra.mxu2 %v342_v7 }
  0x13   :  { %v193_v51 = vadd.f32 %v359_v47, %v192_v50 }
  0x15   :  { %v195_v52 = vsel %vm194_vm2, %v359_v47, %v193_v51 }
  0x89   :  { %v91_v8 = vpop.f32.mrf.mxu0 }
  0x8a   :  { %v92_v10 = vadd.f32 %v354_v9, %v91_v8 }
  0x8c   :  { %v101_v13 = vmax.f32 %v92_v10, 0.0 }
  0x8f   :  { %v96_v11 = vpop.f32.mrf.mxu3 }
  0x90   :  { %v97_v16 = vadd.f32 %v354_v9, %v96_v11 }
  0x91   :  { %v93_v12 = vpop.f32.mrf.mxu0 }
  0x92   :  { %v94_v14 = vadd.f32 %v354_v9, %v93_v12  ;;  %v103_v20 = vmax.f32 %v97_v16, 0.0 }
  0x94   :  { %v102_v15 = vmax.f32 %v94_v14, 0.0 }
  0x96   :  { %v105_v17 = vpack.c.bf16 %v102_v15, %v101_v13 }
  0x97   :  { %v98_v18 = vpop.f32.mrf.mxu3 }
  0x98   :  { %v99_v19 = vadd.f32 %v354_v9, %v98_v18  ;;  %336 = vmatmul.msk.bf16.vlgmr.msra.gmra.mxu1 %vm143_vm1, %v105_v17 }
  0x9a   :  { %v104_v21 = vmax.f32 %v99_v19, 0.0 }
  0x9c   :  { %v106_v22 = vpack.c.bf16 %v104_v21, %v103_v20 }
  0x9e   :  { %337 = vmatmul.msk.bf16.vlgmr.msra.gmra.mxu2 %vm143_vm1, %v106_v22 }
 0x115   :  { %v159_v26 = vpop.f32.mrf.mxu1 }
 0x116   :  { %v160_v27 = vadd.f32 %v355_v24, %v159_v26 }
 0x118   :  { %v173_v28 = vadd.f32 %v169_v25, %v160_v27  ;;  %v356_v27 = vld [vmem:[%s524_s5] ss:$0 sm:$0xff] }
 0x11a   :  { %v177_v29 = vsel %vm75_vm0, %v173_v28, 0.0 }
 0x11b   :  { %178 = vadd.xlane.f32.xlu0 %v177_v29 }
 0x11d   :  { %v161_v31 = vpop.f32.mrf.mxu1 }
 0x11e   :  { %v162_v33 = vadd.f32 %v355_v24, %v161_v31 }
 0x120   :  { %v174_v34 = vadd.f32 %v170_v30, %v162_v33 }
 0x121   :  { %v164_v36 = vpop.f32.mrf.mxu2 }
 0x122   :  { %v165_v37 = vadd.f32 %v355_v24, %v164_v36  ;;  %v180_v38 = vsel %vm75_vm0, %v174_v34, 0.0 }
 0x123   :  { %181 = vadd.xlane.f32.xlu0 %v180_v38 }
 0x124   :  { %v175_v39 = vadd.f32 %v171_v35, %v165_v37 }
 0x126   :  { %v183_v40 = vsel %vm75_vm0, %v175_v39, 0.0 }
 0x127   :  { %184 = vadd.xlane.f32.xlu1 %v183_v40 }
 0x129   :  { %v166_v42 = vpop.f32.mrf.mxu2 }
 0x12a   :  { %v167_v43 = vadd.f32 %v355_v24, %v166_v42 }
 0x12c   :  { %v176_v44 = vadd.f32 %v172_v41, %v167_v43 }
 0x12e   :  { %v186_v45 = vsel %vm75_vm0, %v176_v44, 0.0 }
 0x12f   :  { %187 = vadd.xlane.f32.xlu1 %v186_v45 }
 0x18e   :  { %v179_v53 = vpop.xlane.xlu0 %178 }
 0x18f   :  { %v196_v54 = vmul.f32 %v195_v52, %v179_v53 }
 0x191   :  { %v200_v55 = vsub.f32 %v173_v28, %v196_v54 }
 0x193   :  { %v204_v56 = vmul.f32 %v200_v55, %v200_v55 }
 0x195   :  { %v208_v57 = vsel %vm75_vm0, %v204_v56, 0.0 }
 0x196   :  { %209 = vadd.xlane.f32.xlu2 %v208_v57  ;;  %v182_v58 = vpop.xlane.xlu0 %181 }
 0x197   :  { %v197_v59 = vmul.f32 %v195_v52, %v182_v58 }
 0x199   :  { %v482_v60 = vsub.f32 %v174_v34, %v197_v59 }
 0x19a   :  { %v185_v61 = vpop.xlane.xlu1 %184 }
 0x19b   :  { %v198_v62 = vmul.f32 %v195_v52, %v185_v61  ;;  %v205_v63 = vmul.f32 %v482_v60, %v482_v60 }
 0x19d   :  { %v486_v0 = vsub.f32 %v175_v39, %v198_v62  ;;  %v211_v1 = vsel %vm75_vm0, %v205_v63, 0.0 }
 0x19e   :  { %212 = vadd.xlane.f32.xlu2 %v211_v1 }
 0x19f   :  { %v206_v2 = vmul.f32 %v486_v0, %v486_v0 }
 0x1a1   :  { %v214_v3 = vsel %vm75_vm0, %v206_v2, 0.0 }
 0x1a2   :  { %v188_v4 = vpop.xlane.xlu1 %187  ;;  %215 = vadd.xlane.f32.xlu0 %v214_v3 }
 0x1a3   :  { %v199_v5 = vmul.f32 %v195_v52, %v188_v4 }
 0x1a5   :  { %v492_v6 = vsub.f32 %v176_v44, %v199_v5 }
 0x1a7   :  { %v207_v7 = vmul.f32 %v492_v6, %v492_v6 }
 0x1a9   :  { %v217_v8 = vsel %vm75_vm0, %v207_v7, 0.0 }
 0x1aa   :  { %218 = vadd.xlane.f32.xlu1 %v217_v8 }
 0x209   :  { %v210_v9 = vpop.xlane.xlu2 %209 }
 0x20a   :  { %v220_v10 = vmul.f32 %v210_v9, %v195_v52 }
 0x20c   :  { %v224_v11 = vadd.f32 1e-05, %v220_v10 }
 0x20e   :  { %360 = vrsqrt.f32 %v224_v11  ;;  %vm234_vm4 = vweird.f32 %v224_v11 }
 0x211   :  { %v213_v12 = vpop.xlane.xlu2 %212 }
 0x212   :  { %v221_v13 = vmul.f32 %v213_v12, %v195_v52 }
 0x214   :  { %v361_v14 = vpop.eup %360  ;;  %v225_v15 = vadd.f32 1e-05, %v221_v13 }
 0x215   :  { %v229_v16 = vmul.f32 %v361_v14, %v224_v11  ;;  %v216_v17 = vpop.xlane.xlu0 %215  ;;  %vm235_vm3 = vweird.f32 %v361_v14 }
 0x216   :  { %362 = vrsqrt.f32 %v225_v15  ;;  %v222_v18 = vmul.f32 %v216_v17, %v195_v52  ;;  %vm236_vm5 = vmor %vm234_vm4, %vm235_vm3  ;;  %vm244_vm8 = vweird.f32 %v225_v15 }
 0x217   :  { %v230_v19 = vmul.f32 %v361_v14, %v229_v16 }
 0x218   :  { %v226_v20 = vadd.f32 1e-05, %v222_v18 }
 0x219   :  { %v231_v21 = vmul.f32 0.5, %v230_v19 }
 0x21a   :  { %364 = vrsqrt.f32 %v226_v20  ;;  %vm254_vm11 = vweird.f32 %v226_v20 }
 0x21b   :  { %v232_v22 = vsub.f32 1.5, %v231_v21 }
 0x21c   :  { %v363_v23 = vpop.eup %362 }
 0x21d   :  { %v233_v24 = vmul.f32 %v361_v14, %v232_v22  ;;  %v239_v25 = vmul.f32 %v363_v23, %v225_v15  ;;  %v219_v26 = vpop.xlane.xlu1 %218  ;;  %vm245_vm6 = vweird.f32 %v363_v23 }
 0x21e   :  { %v223_v28 = vmul.f32 %v219_v26, %v195_v52  ;;  %vm246_vm9 = vmor %vm244_vm8, %vm245_vm6 }
 0x21f   :  { %v237_v29 = vsel %vm236_vm5, %v361_v14, %v233_v24  ;;  %v240_v30 = vmul.f32 %v363_v23, %v239_v25 }
 0x220   :  { %v365_v31 = vpop.eup %364  ;;  %v268_v33 = vmul.f32 %v237_v29, %v200_v55  ;;  %v227_v34 = vadd.f32 1e-05, %v223_v28 }
 0x221   :  { %v241_v35 = vmul.f32 0.5, %v240_v30  ;;  %v249_v36 = vmul.f32 %v365_v31, %v226_v20  ;;  %vm255_vm10 = vweird.f32 %v365_v31 }
 0x222   :  { %v276_v37 = vmul.f32 %v356_v27, %v268_v33  ;;  %366 = vrsqrt.f32 %v227_v34  ;;  %vm256_vm12 = vmor %vm254_vm11, %vm255_vm10  ;;  %vm264_vm14 = vweird.f32 %v227_v34 }
 0x223   :  { %v242_v38 = vsub.f32 1.5, %v241_v35  ;;  %v250_v39 = vmul.f32 %v365_v31, %v249_v36 }
 0x224   :  { %v284_v40 = vadd.f32 %v357_v32, %v276_v37 }
 0x225   :  { %v243_v41 = vmul.f32 %v363_v23, %v242_v38  ;;  %v251_v42 = vmul.f32 0.5, %v250_v39 }
 0x226   :  { %v288_v43 = vpack.c.bf16 %v284_v40, %v284_v40 }
 0x227   :  { %v247_v44 = vsel %vm246_vm9, %v363_v23, %v243_v41  ;;  %v252_v45 = vsub.f32 1.5, %v251_v42 }
 0x228   :  { %v367_v46 = vpop.eup %366  ;;  %293 = vst.msk [vmem:[%s526_s7] sm:$0xf] %vm292_vm7, %v288_v43  ;;  %v269_v47 = vmul.f32 %v247_v44, %v482_v60 }
 0x229   :  { %v253_v48 = vmul.f32 %v365_v31, %v252_v45  ;;  %v259_v49 = vmul.f32 %v367_v46, %v227_v34  ;;  %vm265_vm13 = vweird.f32 %v367_v46 }
 0x22a   :  { %v277_v50 = vmul.f32 %v356_v27, %v269_v47  ;;  %vm266_vm15 = vmor %vm264_vm14, %vm265_vm13 }
 0x22b   :  { %v257_v51 = vsel %vm256_vm12, %v365_v31, %v253_v48  ;;  %v260_v52 = vmul.f32 %v367_v46, %v259_v49 }
 0x22c   :  { %v285_v53 = vadd.f32 %v357_v32, %v277_v50  ;;  %v270_v54 = vmul.f32 %v257_v51, %v486_v0 }
 0x22d   :  { %v261_v55 = vmul.f32 0.5, %v260_v52 }
 0x22e   :  { %v289_v56 = vpack.c.bf16 %v285_v53, %v285_v53  ;;  %v278_v57 = vmul.f32 %v356_v27, %v270_v54 }
 0x22f   :  { %v262_v58 = vsub.f32 1.5, %v261_v55 }
 0x230   :  { %294 = vst.msk [vmem:[%s526_s7 + $0x4] sm:$0xf] %vm292_vm7, %v289_v56  ;;  %v286_v59 = vadd.f32 %v357_v32, %v278_v57 }
 0x231   :  { %v263_v60 = vmul.f32 %v367_v46, %v262_v58 }
 0x232   :  { %v290_v61 = vpack.c.bf16 %v286_v59, %v286_v59 }
 0x233   :  { %v267_v62 = vsel %vm266_vm15, %v367_v46, %v263_v60 }
 0x234   :  { %295 = vst.msk [vmem:[%s526_s7 + $0x8] sm:$0xf] %vm292_vm7, %v290_v61  ;;  %v271_v63 = vmul.f32 %v267_v62, %v492_v6 }
 0x236   :  { %v279_v0 = vmul.f32 %v356_v27, %v271_v63 }
 0x238   :  { %v287_v1 = vadd.f32 %v357_v32, %v279_v0 }
 0x23a   :  { %v291_v2 = vpack.c.bf16 %v287_v1, %v287_v1 }
 0x23c   :  { %296 = vst.msk [vmem:[%s526_s7 + $0xc] sm:$0xf] %vm292_vm7, %v291_v2 }
 0x23d   :  { %301 = vsyncpa [#allocation3], 1 }

// kernel: _lambda_.49
= control target key start
LH: loop header
LB: loop body
LE: loop exit
PB: predicated region body
PF: predicated region fallthrough
CT: control target
= control target key end

     0   :  { %vm68_vm0 = vcmask 261120   ;;  %vm153_vm1 = vcmask 257024   ;;  %s331_s2 = inlined_call_operand.vmem [shape: bf16[32,32], index: 2, kind: input, shape index: {}]   ;;  %s332_s4 = inlined_call_operand.vmem [shape: bf16[32,32], index: 4, kind: input, shape index: {}]   ;;  %s333_s0 = inlined_call_operand.vmem [shape: bf16[32,32], index: 0, kind: input, shape index: {}]   ;;  %s334_s1 = inlined_call_operand.vmem [shape: bf16[32,32], index: 1, kind: input, shape index: {}]   ;;  %s335_s3 = inlined_call_operand.vmem [shape: f32[1,32], index: 3, kind: input, shape index: {}]   ;;  %s336_s5 = inlined_call_operand.vmem [shape: f32[1,32], index: 5, kind: input, shape index: {}]   ;;  %s337_s6 = inlined_call_operand.vmem [shape: bf16[32,32], index: 6, kind: output, shape index: {0}]   ;;  %s338_s7 = inlined_call_operand.vmem [shape: bf16[32,32], index: 7, kind: output, shape index: {1}]  }
   0x1   :  { %v205_v0 = vld [vmem:[%s331_s2 + $0x8] sm:$0xff]  ;;  %v26_v2 = vld [vmem:[%s333_s0] sm:$0xff]  }
   0x2   :  { %v207_v1 = vld [vmem:[%s332_s4 + $0x8] sm:$0xff]  ;;  %v209_v3 = vld [vmem:[%s334_s1] sm:$0xff]   ;;  %81 = vmatpush.bf16.msra.mxu0 %v205_v0  ;;  %217 = vmatpush.bf16.msra.mxu2 %v205_v0  ;;  %v34_v7 = vunpack.c.l.bf16 %v26_v2  ;;  %v35_v8 = vunpack.c.h.bf16 %v26_v2 }
   0x3   :  { %v204_v4 = vld [vmem:[%s331_s2] sm:$0xff]  ;;  %v210_v5 = vunpack.c.l.bf16 %v209_v3  ;;  %v211_v6 = vunpack.c.h.bf16 %v209_v3  ;;  %v28_v9 = vld [vmem:[%s333_s0 + $0x8] sm:$0xff]   ;;  %136 = vmatpush.bf16.msra.mxu1 %v207_v1  ;;  %219 = vmatpush.bf16.msra.mxu3 %v207_v1 }
   0x4   :  { %v216_v10 = vld [vmem:[%s334_s1 + $0x8] sm:$0xff]   ;;  %v206_v11 = vld [vmem:[%s332_s4] sm:$0xff]  ;;  %v36_v14 = vunpack.c.l.bf16 %v28_v9  ;;  %v37_v15 = vunpack.c.h.bf16 %v28_v9 }
   0x5   :  { %v214_v12 = vunpack.c.l.bf16 %v216_v10  ;;  %v215_v13 = vunpack.c.h.bf16 %v216_v10  ;;  %v42_v16 = vadd.f32 %v210_v5, %v34_v7  ;;  %v43_v17 = vadd.f32 %v211_v6, %v35_v8  ;;  %v202_v21 = vld [vmem:[%s333_s0] sm:$0xff]  ;;  %v203_v22 = vld [vmem:[%s333_s0 + $0x8] sm:$0xff] }
   0x6   :  { %82 = vmatpush.bf16.msra.mxu0 %v204_v4  ;;  %218 = vmatpush.bf16.msra.mxu2 %v204_v4  ;;  %v221_v24 = vld [vmem:[%s335_s3] ss:$0 sm:$0xff] }
   0x7   :  { %v44_v18 = vadd.f32 %v214_v12, %v36_v14  ;;  %v45_v19 = vadd.f32 %v215_v13, %v37_v15  ;;  %v46_v20 = vpack.c.bf16 %v43_v17, %v42_v16  ;;  %137 = vmatpush.bf16.msra.mxu1 %v206_v11  ;;  %220 = vmatpush.bf16.msra.mxu3 %v206_v11  ;;  %v222_v25 = vld [vmem:[%s336_s5] ss:$0 sm:$0xff] }
   0x9   :  { %v47_v23 = vpack.c.bf16 %v45_v19, %v44_v18  ;;  %182 = vmatmul.msk.bf16.vlgmr.msra.gmra.mxu0 %vm68_vm0, %v46_v20 }
   0xa   :  { %200 = vmatmul.msk.bf16.vlgmr.msra.gmra.mxu1 %vm68_vm0, %v202_v21  ;;  %201 = vmatmul.msk.bf16.vlgmr.msra.gmra.mxu3 %vm68_vm0, %v203_v22 }
   0xb   :  { %183 = vmatmul.msk.bf16.vlgmr.msra.gmra.mxu2 %vm68_vm0, %v47_v23 }
  0x86   :  { %v84_v26 = vpop.f32.mrf.mxu0 }
  0x87   :  { %v85_v27 = vadd.f32 %v221_v24, %v84_v26  ;;  %v139_v28 = vpop.f32.mrf.mxu1 }
  0x88   :  { %v140_v29 = vadd.f32 %v222_v25, %v139_v28 }
  0x89   :  { %v149_v30 = vpack.c.bf16 %v85_v27, %v85_v27 }
  0x8a   :  { %v158_v31 = vpack.c.bf16 %v140_v29, %v140_v29 }
  0x8b   :  { %154 = vst.msk [vmem:[%s337_s6] sm:$0xf] %vm153_vm1, %v149_v30 }
  0x8c   :  { %162 = vst.msk [vmem:[%s338_s7] sm:$0xf] %vm153_vm1, %v158_v31 }
  0x8d   :  { %v144_v34 = vpop.f32.mrf.mxu3 }
  0x8e   :  { %v89_v32 = vpop.f32.mrf.mxu2  ;;  %v145_v35 = vadd.f32 %v222_v25, %v144_v34  ;;  %v86_v36 = vpop.f32.mrf.mxu0 }
  0x8f   :  { %v90_v33 = vadd.f32 %v221_v24, %v89_v32  ;;  %v87_v38 = vadd.f32 %v221_v24, %v86_v36  ;;  %v141_v39 = vpop.f32.mrf.mxu1 }
  0x90   :  { %v160_v40 = vpack.c.bf16 %v145_v35, %v145_v35  ;;  %v142_v41 = vadd.f32 %v222_v25, %v141_v39 }
  0x91   :  { %v151_v37 = vpack.c.bf16 %v90_v33, %v90_v33  ;;  %v150_v42 = vpack.c.bf16 %v87_v38, %v87_v38 }
  0x92   :  { %164 = vst.msk [vmem:[%s338_s7 + $0x8] sm:$0xf] %vm153_vm1, %v160_v40  ;;  %v159_v43 = vpack.c.bf16 %v142_v41, %v142_v41 }
  0x93   :  { %156 = vst.msk [vmem:[%s337_s6 + $0x8] sm:$0xf] %vm153_vm1, %v151_v37 }
  0x94   :  { %155 = vst.msk [vmem:[%s337_s6 + $0x4] sm:$0xf] %vm153_vm1, %v150_v42 }
  0x95   :  { %163 = vst.msk [vmem:[%s338_s7 + $0x4] sm:$0xf] %vm153_vm1, %v159_v43  ;;  %v146_v46 = vpop.f32.mrf.mxu3 }
  0x96   :  { %v91_v44 = vpop.f32.mrf.mxu2  ;;  %v147_v47 = vadd.f32 %v222_v25, %v146_v46 }
  0x97   :  { %v92_v45 = vadd.f32 %v221_v24, %v91_v44 }
  0x98   :  { %v161_v49 = vpack.c.bf16 %v147_v47, %v147_v47 }
  0x99   :  { %v152_v48 = vpack.c.bf16 %v92_v45, %v92_v45 }
  0x9a   :  { %165 = vst.msk [vmem:[%s338_s7 + $0xc] sm:$0xf] %vm153_vm1, %v161_v49 }
  0x9b   :  { %157 = vst.msk [vmem:[%s337_s6 + $0xc] sm:$0xf] %vm153_vm1, %v152_v48 }

// kernel: _lambda_.37
= control target key start
LH: loop header
LB: loop body
LE: loop exit
PB: predicated region body
PF: predicated region fallthrough
CT: control target
= control target key end

     0   :  { %vm58_vm0 = vcmask 261120   ;;  %vm120_vm1 = vcmask 257024   ;;  %s183_s21 = smov 96   ;;  %s280_s2 = inlined_call_operand.vmem [shape: bf16[32,64], index: 2, kind: input, shape index: {}]   ;;  %s281_s0 = inlined_call_operand.vmem [shape: bf16[16,32], index: 0, kind: input, shape index: {}]   ;;  %s282_s1 = inlined_call_operand.vmem [shape: bf16[16,32], index: 1, kind: input, shape index: {}]   ;;  %s283_s4 = inlined_call_operand.vmem [shape: bf16[32,32], index: 4, kind: input, shape index: {}]   ;;  %s284_s3 = inlined_call_operand.vmem [shape: f32[1,64], index: 3, kind: input, shape index: {}]   ;;  %s285_s5 = inlined_call_operand.vmem [shape: f32[1,32], index: 5, kind: input, shape index: {}]   ;;  %s286_s6 = inlined_call_operand.vmem [shape: bf16[16,32], index: 6, kind: output, shape index: {0}]   ;;  %s287_s8 = inlined_call_operand.vmem [shape: bf16[16,32], index: 8, kind: output, shape index: {2}]   ;;  %s288_s7 = inlined_call_operand.vmem [shape: bf16[16,32], index: 7, kind: output, shape index: {1}]  }
   0x1   :  { %v173_v0 = vld [vmem:[%s280_s2 + $0x8] sm:$0xff]  ;;  %v27_v1 = vld [vmem:[%s281_s0] sm:$0xff]  }
   0x2   :  { %v177_v2 = vld [vmem:[%s282_s1] sm:$0xff]   ;;  %v31_v3 = vunpack.c.l.bf16 %v27_v1  ;;  %v32_v4 = vunpack.c.h.bf16 %v27_v1  ;;  %v175_v5 = vld [vmem:[%s283_s4 + $0x8] sm:$0xff]  ;;  %68 = vmatpush.bf16.msra.mxu0 %v173_v0 }
   0x3   :  { %v172_v6 = vld [vmem:[%s280_s2] sm:$0xff]  ;;  %v178_v7 = vunpack.c.l.bf16 %v177_v2  ;;  %v179_v8 = vunpack.c.h.bf16 %v177_v2  ;;  %110 = vmatpush.bf16.msra.mxu1 %v175_v5 }
   0x4   :  { %v174_v9 = vld [vmem:[%s283_s4] sm:$0xff] }
   0x5   :  { %v35_v10 = vadd.f32 %v178_v7, %v31_v3  ;;  %v36_v11 = vadd.f32 %v179_v8, %v32_v4  ;;  %v171_v13 = vld [vmem:[%s281_s0] sm:$0xff] }
   0x6   :  { %69 = vmatpush.bf16.msra.mxu0 %v172_v6  ;;  %v181_v14 = vld [vmem:[%s284_s3] ss:$0 sm:$0xff] }
   0x7   :  { %v37_v12 = vpack.c.bf16 %v36_v11, %v35_v10  ;;  %111 = vmatpush.bf16.msra.mxu1 %v174_v9  ;;  %v182_v15 = vld [vmem:[%s285_s5] ss:$0 sm:$0xff] }
   0x9   :  { %157 = vmatmul.msk.bf16.vlgmr.msra.gmra.mxu0 %vm58_vm0, %v37_v12 }
   0xa   :  { %170 = vmatmul.msk.bf16.vlgmr.msra.gmra.mxu1 %vm58_vm0, %v171_v13 }
  0x86   :  { %v71_v16 = vpop.f32.mrf.mxu0 }
  0x87   :  { %v72_v17 = vadd.f32 %v181_v14, %v71_v16  ;;  %v113_v18 = vpop.f32.mrf.mxu1 }
  0x88   :  { %v114_v19 = vadd.f32 %v182_v15, %v113_v18 }
  0x89   :  { %v118_v20 = vpack.c.bf16 %v72_v17, %v72_v17 }
  0x8a   :  { %v133_v21 = vpack.c.bf16 %v114_v19, %v114_v19 }
  0x8b   :  { %121 = vst.msk [vmem:[%s286_s6] sm:$0xf] %vm120_vm1, %v118_v20  ;;  %125 = vrot.lane.b32.xlu0 %v118_v20, %s183_s21 }
  0x8c   :  { %135 = vst.msk [vmem:[%s287_s8] sm:$0xf] %vm120_vm1, %v133_v21 }
  0x8e   :  { %v73_v22 = vpop.f32.mrf.mxu0 }
  0x8f   :  { %v74_v23 = vadd.f32 %v181_v14, %v73_v22  ;;  %v115_v24 = vpop.f32.mrf.mxu1 }
  0x90   :  { %v116_v25 = vadd.f32 %v182_v15, %v115_v24 }
  0x91   :  { %v119_v26 = vpack.c.bf16 %v74_v23, %v74_v23 }
  0x92   :  { %v134_v27 = vpack.c.bf16 %v116_v25, %v116_v25 }
  0x93   :  { %122 = vst.msk [vmem:[%s286_s6 + $0x4] sm:$0xf] %vm120_vm1, %v119_v26  ;;  %127 = vrot.lane.b32.xlu0 %v119_v26, %s183_s21 }
  0x94   :  { %136 = vst.msk [vmem:[%s287_s8 + $0x4] sm:$0xf] %vm120_vm1, %v134_v27 }
  0xfd   :  { %v126_v28 = vpop.permute.xlu0 %125 }
  0xfe   :  { %131 = vst.msk [vmem:[%s288_s7] sm:$0xf] %vm120_vm1, %v126_v28 }
 0x105   :  { %v128_v29 = vpop.permute.xlu0 %127 }
 0x106   :  { %132 = vst.msk [vmem:[%s288_s7 + $0x4] sm:$0xf] %vm120_vm1, %v128_v29 }

// kernel: _lambda_.38
= control target key start
LH: loop header
LB: loop body
LE: loop exit
PB: predicated region body
PF: predicated region fallthrough
CT: control target
= control target key end

     0   :  { %s769_s15 = smov 0   ;;  %s771_s16 = smov 0   ;;  %s851_s0 = inlined_call_operand.vmem [shape: bf16[2,8,32], index: 0, kind: input, shape index: {}]   ;;  %s852_s1 = inlined_call_operand.vmem [shape: bf16[2,8,32], index: 1, kind: input, shape index: {}]   ;;  %s853_s2 = inlined_call_operand.vmem [shape: bf16[2,8,32], index: 2, kind: input, shape index: {}]   ;;  %s854_s3 = inlined_call_operand.vmem [shape: f32[2,1,8], index: 3, kind: input, shape index: {}]   ;;  %s855_s4 = inlined_call_operand.vmem [shape: bf16[2,8,32], index: 4, kind: output, shape index: {}]  }
   0x1   :  { %s773_s17 = smov 0  }
   0x2 LB: > { %s26_s18 = sadd.s32 1, %s732_s16  ;;  %p652_p0 = scmp.ge.s32.totalorder %s736_s17, 1  ;;  %s736_s17 = sphi %s773_s17, %s14_s17   ;;  %s732_s16 = sphi %s771_s16, %s857_s16   ;;  %s728_s15 = sphi %s769_s15, %s856_s15  }
   0x3   : > { %p28_p1 = scmp.ge.s32.totalorder %s26_s18, 2  ;;  %p206_p2 = scmp.lt.s32.totalorder %s736_s17, 3 }
   0x5   : > { %s859_s18 = smov (%p28_p1, %s26_s18), 0  ;;  %p207_p3 = pnand %p652_p0, %p206_p2 }
   0x6   : > { %p247_p4 = scmp.lt.s32.totalorder (!%p207_p3), %s728_s15, 1  ;;  %s738_s29 = smov (!%p207_p3), 104  }
   0x7   : > { %210 = sbr.rel (%p207_p3) target bundleno = 834 (0x342), region = 36  ;;  %s739_s30 = smov (!%p207_p3), 120  }
   0x8   : > { %s740_s5 = smov (!%p207_p3), 112   ;;  %s741_s9 = smov (!%p207_p3), 8  }
   0x9   : > { %s742_s10 = smov (!%p207_p3), 24   ;;  %s743_s11 = smov (!%p207_p3), 16  }
   0xc   : > { %s861_s15 = smov (!%p247_p4, %s728_s15), 1  ;;  %vm283_vm0 = vcmask 64512   ;;  %vm317_vm1 = vcmask 1043456   ;;  %vm532_vm2 = vcmask 130048   ;;  %vm535_vm3 = vcmask 195584  }
   0xd   : > { %s787_s19 = sshll.u32 %s861_s15, 2  ;;  %s264_s22 = scalar_lea.vmem %s854_s3, %s861_s15  ;;  %vm539_vm4 = vcmask 257024  }
   0xe   : > { %s257_s25 = scalar_lea.vmem %s852_s1, %s787_s19  ;;  %s253_s28 = scalar_lea.vmem %s851_s0, %s787_s19  ;;  %v697_v11 = vld [vmem:[%s264_s22] ss:$0 sm:$0xff] }
   0xf   : > { %v274_v0 = vld [vmem:[%s257_s25] sm:$0xf]  ;;  %s261_s8 = scalar_lea.vmem %s853_s2, %s787_s19  ;;  %s271_s14 = scalar_lea.vmem %s855_s4, %s787_s19 }
  0x10   : > { %v273_v1 = vld [vmem:[%s253_s28] sm:$0xf]  ;;  %v288_v2 = vsel %vm283_vm0, %v274_v0, 0  ;;  %v340_v3 = vunpack.c.l.b16 %v274_v0 }
  0x11   : > { %v277_v4 = vunpack.c.l.bf16 %v273_v1  ;;  %297 = vmatpush.bf16.xpose.msra.mxu0 %v288_v2  ;;  %v275_v18 = vld [vmem:[%s261_s8] sm:$0xf] }
  0x12   : > { %v341_v5 = vpack.c.b16 %v340_v3, %v340_v3  ;;  %v319_v19 = vsel %vm317_vm1, %v275_v18, 0  ;;  %v375_v20 = vunpack.c.l.b16 %v275_v18 }
  0x13   : > { %v278_v6 = vmul.f32 0.35351563, %v277_v4  ;;  %328 = vmatpush.bf16.msra.mxu1 %v319_v19 }
  0x14   : > { %459 = vrot.lane.b32.xlu2 %v341_v5, %s738_s29  ;;  %v376_v21 = vpack.c.b16 %v375_v20, %v375_v20 }
  0x15   : > { %v279_v7 = vpack.c.bf16 %v278_v6, %v278_v6 }
  0x17   : > { %337 = vrot.lane.b32.xlu1 %v279_v7, %s739_s30 }
  0x18   : > { %657 = vmatmul.msk.bf16.vlgmr.msra.gmra.mxu0 %vm283_vm0, %v279_v7 }
  0x1c   : > { %400 = vrot.lane.b32.xlu2 %v279_v7, %s740_s5 }
  0x1f   : > { %402 = vrot.lane.b32.xlu1 %v341_v5, %s740_s5 }
  0x27   : > { %457 = vrot.lane.b32.xlu1 %v279_v7, %s738_s29 }
  0x2f   : > { %377 = vrot.lane.b32.xlu1 %v376_v21, %s739_s30 }
  0x6e   : > { %v460_v9 = vpop.permute.xlu2 %459 }
  0x6f   : > { %v465_v10 = vsel %vm283_vm0, %v460_v9, 0 }
  0x70   : > { %474 = vmatpush.bf16.xpose.msrb.mxu0 %v465_v10 }
  0x76   : > { %v401_v34 = vpop.permute.xlu2 %400 }
  0x89   : > { %v338_v8 = vpop.permute.xlu1 %337 }
  0x91   : > { %v403_v13 = vpop.permute.xlu1 %402 }
  0x92   : > { %v408_v22 = vsel %vm283_vm0, %v403_v13, 0 }
  0x93   : > { %417 = vmatpush.bf16.xpose.msrb.mxu1 %v408_v22 }
  0x95   : > { %v299_v12 = vpop.f32.mrf.mxu0 }
  0x96   : > { %v300_v14 = vadd.f32 %v697_v11, %v299_v12 }
  0x98   : > { %v303_v15 = vsel %vm283_vm0, %v300_v14, -inf }
  0x99   : > { %304 = vmax.xlane.f32.xlu0 %v303_v15  ;;  %v458_v17 = vpop.permute.xlu1 %457 }
  0x9a   : > { %663 = vmatmul.msk.bf16.vlgmr.msrb.gmra.mxu0 %vm283_vm0, %v458_v17 }
  0x9d   : > { %v301_v16 = vpop.f32.mrf.mxu0 }
  0xa1   : > { %v378_v46 = vpop.permute.xlu1 %377 }
  0xa2   : > { %v383_v47 = vsel %vm317_vm1, %v378_v46, 0 }
  0xa3   : > { %392 = vmatpush.bf16.msra.mxu3 %v383_v47 }
  0xad   : > { %342 = vrot.lane.b32.xlu0 %v341_v5, %s739_s30 }
 0x10c   : > { %v305_v23 = vpop.xlane.xlu0 %304 }
 0x10d   : > { %v306_v24 = vsub.f32 %v300_v14, %v305_v23 }
 0x10f   : > { %v307_v25 = vmul.f32 1.442695, %v306_v24 }
 0x111   : > { %698 = vpow2.f32 %v307_v25 }
 0x117   : > { %v699_v26 = vpop.eup %698  ;;  %v476_v28 = vpop.f32.mrf.mxu0 }
 0x118   : > { %v313_v27 = vpack.c.bf16 %v699_v26, %v699_v26  ;;  %v477_v29 = vadd.f32 %v697_v11, %v476_v28  ;;  %v309_v45 = vsel %vm283_vm0, %v699_v26, 0.0 }
 0x11a   : > { %658 = vmatmul.msk.bf16.vlgmr.msra.gmra.mxu1 %vm283_vm0, %v313_v27  ;;  %v480_v30 = vsel %vm283_vm0, %v477_v29, -inf }
 0x11b   : > { %481 = vmax.xlane.f32.xlu1 %v480_v30 }
 0x11f   : > { %v343_v31 = vpop.permute.xlu0 %342  ;;  %v478_v33 = vpop.f32.mrf.mxu0 }
 0x120   : > { %v348_v32 = vsel %vm283_vm0, %v343_v31, 0 }
 0x121   : > { %357 = vmatpush.bf16.xpose.msra.mxu2 %v348_v32 }
 0x128   : > { %659 = vmatmul.msk.bf16.vlgmr.msra.gmra.mxu2 %vm283_vm0, %v338_v8 }
 0x12a   : > { %661 = vmatmul.msk.bf16.vlgmr.msrb.gmra.mxu1 %vm283_vm0, %v401_v34 }
 0x18e   : > { %v482_v50 = vpop.xlane.xlu1 %481 }
 0x18f   : > { %v483_v53 = vsub.f32 %v477_v29, %v482_v50 }
 0x191   : > { %v484_v56 = vmul.f32 1.442695, %v483_v53 }
 0x197   : > { %v820_v35 = vpop.f32.mrf.mxu1 }
 0x19f   : > { %v332_v36 = vpop.f32.mrf.mxu1 }
 0x1a7   : > { %v419_v37 = vpop.f32.mrf.mxu1 }
 0x1a8   : > { %v420_v38 = vadd.f32 %v697_v11, %v419_v37 }
 0x1aa   : > { %v423_v39 = vsel %vm283_vm0, %v420_v38, -inf }
 0x1ab   : > { %424 = vmax.xlane.f32.xlu0 %v423_v39  ;;  %v359_v40 = vpop.f32.mrf.mxu2 }
 0x1ac   : > { %v360_v41 = vadd.f32 %v697_v11, %v359_v40 }
 0x1ae   : > { %v363_v42 = vsel %vm283_vm0, %v360_v41, -inf }
 0x1af   : > { %364 = vmax.xlane.f32.xlu2 %v363_v42  ;;  %v421_v43 = vpop.f32.mrf.mxu1 }
 0x1b3   : > { %v361_v44 = vpop.f32.mrf.mxu2 }
 0x1bf   : > { %491 = vrot.lane.b32.xlu0 %v376_v21, %s738_s29 }
 0x1c7   : > { %434 = vrot.lane.b32.xlu2 %v376_v21, %s740_s5 }
 0x1e9   : > { %310 = vadd.xlane.f32.xlu0 %v309_v45 }
 0x21e   : > { %v425_v48 = vpop.xlane.xlu0 %424 }
 0x21f   : > { %v426_v49 = vsub.f32 %v420_v38, %v425_v48 }
 0x221   : > { %v427_v51 = vmul.f32 1.442695, %v426_v49 }
 0x222   : > { %v365_v52 = vpop.xlane.xlu2 %364 }
 0x223   : > { %700 = vpow2.f32 %v427_v51  ;;  %v366_v54 = vsub.f32 %v360_v41, %v365_v52 }
 0x225   : > { %v367_v55 = vmul.f32 1.442695, %v366_v54 }
 0x227   : > { %702 = vpow2.f32 %v367_v55 }
 0x228   : > { %704 = vpow2.f32 %v484_v56 }
 0x229   : > { %v701_v57 = vpop.eup %700 }
 0x22a   : > { %v429_v58 = vsel %vm283_vm0, %v701_v57, 0.0  ;;  %v435_v59 = vpop.permute.xlu2 %434  ;;  %v433_v5 = vpack.c.bf16 %v701_v57, %v701_v57 }
 0x22b   : > { %430 = vadd.xlane.f32.xlu2 %v429_v58  ;;  %v440_v60 = vsel %vm317_vm1, %v435_v59, 0 }
 0x22c   : > { %449 = vmatpush.bf16.msrb.mxu3 %v440_v60 }
 0x22d   : > { %v703_v61 = vpop.eup %702 }
 0x22e   : > { %v369_v62 = vsel %vm283_vm0, %v703_v61, 0.0  ;;  %v373_v63 = vpack.c.bf16 %v703_v61, %v703_v61  ;;  %v705_v0 = vpop.eup %704 }
 0x22f   : > { %370 = vadd.xlane.f32.xlu1 %v369_v62  ;;  %v490_v3 = vpack.c.bf16 %v705_v0, %v705_v0  ;;  %v486_v4 = vsel %vm283_vm0, %v705_v0, 0.0 }
 0x230   : > { %660 = vmatmul.msk.bf16.vlgmr.msra.gmra.mxu3 %vm283_vm0, %v373_v63 }
 0x231   : > { %v492_v1 = vpop.permute.xlu0 %491 }
 0x232   : > { %v497_v2 = vsel %vm317_vm1, %v492_v1, 0 }
 0x233   : > { %506 = vmatpush.bf16.msrb.mxu2 %v497_v2 }
 0x236   : > { %664 = vmatmul.msk.bf16.vlgmr.msrb.gmra.mxu2 %vm283_vm0, %v490_v3 }
 0x237   : > { %487 = vadd.xlane.f32.xlu1 %v486_v4 }
 0x240   : > { %662 = vmatmul.msk.bf16.vlgmr.msrb.gmra.mxu3 %vm283_vm0, %v433_v5 }
 0x25c   : > { %v311_v30 = vpop.xlane.xlu0 %310 }
 0x29e   : > { %v431_v15 = vpop.xlane.xlu2 %430 }
 0x2a2   : > { %v371_v6 = vpop.xlane.xlu1 %370 }
 0x2a3   : > { %706 = vrcp.f32 %v371_v6 }
 0x2a9   : > { %v707_v8 = vpop.eup %706 }
 0x2aa   : > { %v488_v7 = vpop.xlane.xlu1 %487 }
 0x2ab   : > { %708 = vrcp.f32 %v488_v7 }
 0x2ac   : > { %710 = vrcp.f32 %v431_v15 }
 0x2ad   : > { %712 = vrcp.f32 %v311_v30 }
 0x2b1   : > { %v709_v13 = vpop.eup %708 }
 0x2b2   : > { %v711_v23 = vpop.eup %710 }
 0x2b3   : > { %v394_v9 = vpop.f32.mrf.mxu3  ;;  %v713_v31 = vpop.eup %712 }
 0x2b4   : > { %v398_v10 = vmul.f32 %v707_v8, %v394_v9  ;;  %v334_v33 = vmul.f32 %v713_v31, %v820_v35 }
 0x2b6   : > { %v399_v11 = vpack.c.bf16 %v398_v10, %v398_v10  ;;  %v335_v34 = vpack.c.bf16 %v334_v33, %v334_v33 }
 0x2b8   : > { %v515_v12 = vunpack.c.l.b16 %v399_v11 }
 0x2b9   : > { %v508_v14 = vpop.f32.mrf.mxu2 }
 0x2ba   : > { %v516_v16 = vpack.c.b16 %v515_v12, %v515_v12  ;;  %v512_v17 = vmul.f32 %v709_v13, %v508_v14 }
 0x2bb   : > { %v396_v18 = vpop.f32.mrf.mxu3 }
 0x2bc   : > { %v513_v19 = vpack.c.bf16 %v512_v17, %v512_v17  ;;  %517 = vrot.lane.b32.xlu1 %v516_v16, %s741_s9 }
 0x2be   : > { %v525_v20 = vunpack.c.l.b16 %v513_v19 }
 0x2c0   : > { %v526_v21 = vpack.c.b16 %v525_v20, %v525_v20 }
 0x2c1   : > { %v510_v22 = vpop.f32.mrf.mxu2 }
 0x2c2   : > { %527 = vrot.lane.b32.xlu2 %v526_v21, %s742_s10 }
 0x2c3   : > { %v451_v24 = vpop.f32.mrf.mxu3 }
 0x2c4   : > { %v455_v25 = vmul.f32 %v711_v23, %v451_v24 }
 0x2c6   : > { %v456_v26 = vpack.c.bf16 %v455_v25, %v455_v25 }
 0x2c8   : > { %v520_v27 = vunpack.c.l.b16 %v456_v26 }
 0x2ca   : > { %v521_v28 = vpack.c.b16 %v520_v27, %v520_v27 }
 0x2cb   : > { %v453_v29 = vpop.f32.mrf.mxu3 }
 0x2cc   : > { %522 = vrot.lane.b32.xlu1 %v521_v28, %s743_s11 }
 0x31c   : > { %v528_v38 = vpop.permute.xlu2 %527 }
 0x32e   : > { %v518_v32 = vpop.permute.xlu1 %517 }
 0x32f   : > { %v531_v36 = vsel %vm283_vm0, %v335_v34, %v518_v32 }
 0x33e   : > { %v523_v37 = vpop.permute.xlu1 %522 }
 0x33f   : > { %v534_v39 = vsel %vm532_vm2, %v531_v36, %v523_v37 }
 0x340   : > { %v537_v40 = vsel %vm535_vm3, %v534_v39, %v528_v38 }
 0x341   : > { %540 = vst.msk [vmem:[%s271_s14] sm:$0xf] %vm539_vm4, %v537_v40 }
 0x342 PF: > { %s14_s17 = sadd.s32 1, %s736_s17   ;;  %s856_s15 = smov %s732_s16 }
 0x343   : > { %p11_p5 = scmp.ge.s32.totalorder %s14_s17, 4   ;;  %s857_s16 = smov %s859_s18 }
 0x345   :  { %13 = sbr.rel (!%p11_p5) target bundleno = 2 (0x2), region = 75 }

// kernel: _lambda_.39
= control target key start
LH: loop header
LB: loop body
LE: loop exit
PB: predicated region body
PF: predicated region fallthrough
CT: control target
= control target key end

     0   :  { %11 = vsyncpa [#allocation3], 0  ;;  %s219_s24 = smov [#allocation2]   ;;  %s288_s0 = inlined_call_operand.vmem [shape: bf16[16,32], index: 0, kind: input, shape index: {}]   ;;  %s289_s1 = inlined_call_operand.vmem [shape: bf16[32,32], index: 1, kind: input, shape index: {}]   ;;  %s290_s2 = inlined_call_operand.vmem [shape: f32[1,32], index: 2, kind: input, shape index: {}]   ;;  %s291_s3 = inlined_call_operand.vmem [shape: bf16[16,32], index: 3, kind: input, shape index: {}]   ;;  %s292_s4 = inlined_call_operand.vmem [shape: f32[1,32], index: 4, kind: input, shape index: {}]   ;;  %s293_s5 = inlined_call_operand.hbm [shape: f32[1,32], index: 5, kind: input, shape index: {}]   ;;  %s294_s6 = inlined_call_operand.vmem [shape: bf16[16,32], index: 6, kind: output, shape index: {}]  }
   0x1   :  { %s27_s23 = sshll.u32 %s293_s5, 4  ;;  %s29_s25 = sshll.u32 %s219_s24, 4  ;;  %s28_s23 = int_to_ptr.hbm [resolvable:$true] %s27_s23  ;;  %s30_s25 = int_to_ptr.vmem [resolvable:$true] %s29_s25 }
   0x2   :  { %32 = dma.hbm_to_vmem [thread:$0]  %s28_s23, 16, %s30_s25, [#allocation3]  }
   0x3   :  { %217 = dma.done.wait [#allocation3], 16  }
   0x4   :  { %218 = vsyncadd [#allocation3], 4294967280  ;;  %v177_v0 = vld [vmem:[%s289_s1 + $0x8] sm:$0xff]  ;;  %v176_v1 = vld [vmem:[%s289_s1] sm:$0xff]  ;;  %vm65_vm0 = vcmask 261120   ;;  %v220_v15 = vmov 32.0  }
   0x5   :  { %75 = vmatpush.bf16.msra.mxu0 %v177_v0  ;;  %v175_v2 = vld [vmem:[%s288_s0] sm:$0xff]  ;;  %187 = vrcp.f32 %v220_v15  ;;  %vm154_vm6 = vcmask 257024  }
   0x6   :  { %v179_v3 = vld [vmem:[%s291_s3] sm:$0xff]  }
   0x7   :  { %v184_v4 = vld [vmem:[%s290_s2] ss:$0 sm:$0xff]  ;;  %v180_v5 = vunpack.c.l.bf16 %v179_v3  ;;  %v181_v10 = vunpack.c.h.bf16 %v179_v3 }
   0x8   :  { %v185_v46 = vld [vmem:[%s292_s4] ss:$0 sm:$0xff] }
   0x9   :  { %76 = vmatpush.bf16.msra.mxu0 %v176_v1  ;;  %v186_v49 = vld [vmem:[#allocation2] ss:$0 sm:$0xff] }
   0xb   :  { %v188_v16 = vpop.eup %187 }
   0xc   :  { %174 = vmatmul.msk.bf16.vlgmr.msra.gmra.mxu0 %vm65_vm0, %v175_v2  ;;  %v98_v17 = vmul.f32 32.0, %v188_v16  ;;  %vm102_vm1 = vweird.f32 %v188_v16 }
   0xe   :  { %v99_v18 = vsub.f32 1.0, %v98_v17 }
  0x10   :  { %v100_v19 = vmul.f32 %v188_v16, %v99_v18 }
  0x12   :  { %v101_v20 = vadd.f32 %v188_v16, %v100_v19 }
  0x14   :  { %v103_v21 = vsel %vm102_vm1, %v188_v16, %v101_v20 }
  0x89   :  { %v78_v6 = vpop.f32.mrf.mxu0 }
  0x8a   :  { %v79_v7 = vadd.f32 %v184_v4, %v78_v6 }
  0x8c   :  { %v87_v8 = vadd.f32 %v180_v5, %v79_v7 }
  0x8e   :  { %v91_v9 = vsel %vm65_vm0, %v87_v8, 0.0 }
  0x8f   :  { %92 = vadd.xlane.f32.xlu0 %v91_v9 }
  0x91   :  { %v80_v11 = vpop.f32.mrf.mxu0 }
  0x92   :  { %v81_v12 = vadd.f32 %v184_v4, %v80_v11 }
  0x94   :  { %v88_v13 = vadd.f32 %v181_v10, %v81_v12 }
  0x96   :  { %v94_v14 = vsel %vm65_vm0, %v88_v13, 0.0 }
  0x97   :  { %95 = vadd.xlane.f32.xlu0 %v94_v14 }
 0x102   :  { %v93_v22 = vpop.xlane.xlu0 %92 }
 0x103   :  { %v104_v23 = vmul.f32 %v103_v21, %v93_v22 }
 0x105   :  { %v106_v24 = vsub.f32 %v87_v8, %v104_v23 }
 0x107   :  { %v108_v25 = vmul.f32 %v106_v24, %v106_v24 }
 0x109   :  { %v110_v26 = vsel %vm65_vm0, %v108_v25, 0.0 }
 0x10a   :  { %111 = vadd.xlane.f32.xlu1 %v110_v26  ;;  %v96_v27 = vpop.xlane.xlu0 %95 }
 0x10b   :  { %v105_v28 = vmul.f32 %v103_v21, %v96_v27 }
 0x10d   :  { %v107_v29 = vsub.f32 %v88_v13, %v105_v28 }
 0x10f   :  { %v109_v30 = vmul.f32 %v107_v29, %v107_v29 }
 0x111   :  { %v113_v31 = vsel %vm65_vm0, %v109_v30, 0.0 }
 0x112   :  { %114 = vadd.xlane.f32.xlu1 %v113_v31 }
 0x17d   :  { %v112_v32 = vpop.xlane.xlu1 %111 }
 0x17e   :  { %v116_v33 = vmul.f32 %v112_v32, %v103_v21 }
 0x180   :  { %v118_v34 = vadd.f32 1e-05, %v116_v33 }
 0x182   :  { %189 = vrsqrt.f32 %v118_v34  ;;  %vm126_vm3 = vweird.f32 %v118_v34 }
 0x185   :  { %v115_v35 = vpop.xlane.xlu1 %114 }
 0x186   :  { %v117_v36 = vmul.f32 %v115_v35, %v103_v21 }
 0x188   :  { %v190_v37 = vpop.eup %189  ;;  %v119_v38 = vadd.f32 1e-05, %v117_v36 }
 0x189   :  { %v121_v39 = vmul.f32 %v190_v37, %v118_v34  ;;  %vm127_vm2 = vweird.f32 %v190_v37 }
 0x18a   :  { %191 = vrsqrt.f32 %v119_v38  ;;  %vm128_vm4 = vmor %vm126_vm3, %vm127_vm2  ;;  %vm136_vm7 = vweird.f32 %v119_v38 }
 0x18b   :  { %v122_v40 = vmul.f32 %v190_v37, %v121_v39 }
 0x18d   :  { %v123_v41 = vmul.f32 0.5, %v122_v40 }
 0x18f   :  { %v124_v42 = vsub.f32 1.5, %v123_v41 }
 0x190   :  { %v192_v43 = vpop.eup %191 }
 0x191   :  { %v125_v44 = vmul.f32 %v190_v37, %v124_v42  ;;  %v131_v45 = vmul.f32 %v192_v43, %v119_v38  ;;  %vm137_vm5 = vweird.f32 %v192_v43 }
 0x192   :  { %vm138_vm8 = vmor %vm136_vm7, %vm137_vm5 }
 0x193   :  { %v129_v47 = vsel %vm128_vm4, %v190_v37, %v125_v44  ;;  %v132_v48 = vmul.f32 %v192_v43, %v131_v45 }
 0x194   :  { %v140_v50 = vmul.f32 %v129_v47, %v106_v24 }
 0x195   :  { %v133_v51 = vmul.f32 0.5, %v132_v48 }
 0x196   :  { %v145_v52 = vmul.f32 %v185_v46, %v140_v50 }
 0x197   :  { %v134_v53 = vsub.f32 1.5, %v133_v51 }
 0x198   :  { %v150_v54 = vadd.f32 %v186_v49, %v145_v52 }
 0x199   :  { %v135_v55 = vmul.f32 %v192_v43, %v134_v53 }
 0x19a   :  { %v152_v56 = vpack.c.bf16 %v150_v54, %v150_v54 }
 0x19b   :  { %v139_v57 = vsel %vm138_vm8, %v192_v43, %v135_v55 }
 0x19c   :  { %155 = vst.msk [vmem:[%s294_s6] sm:$0xf] %vm154_vm6, %v152_v56  ;;  %v141_v58 = vmul.f32 %v139_v57, %v107_v29 }
 0x19e   :  { %v146_v59 = vmul.f32 %v185_v46, %v141_v58 }
 0x1a0   :  { %v151_v60 = vadd.f32 %v186_v49, %v146_v59 }
 0x1a2   :  { %v153_v61 = vpack.c.bf16 %v151_v60, %v151_v60 }
 0x1a4   :  { %156 = vst.msk [vmem:[%s294_s6 + $0x4] sm:$0xf] %vm154_vm6, %v153_v61 }
 0x1a5   :  { %161 = vsyncpa [#allocation3], 1 }

// kernel: _lambda_.40
= control target key start
LH: loop header
LB: loop body
LE: loop exit
PB: predicated region body
PF: predicated region fallthrough
CT: control target
= control target key end

     0   :  { %9 = vsyncpa [#allocation3], 0  ;;  %s138_s18 = smov [#allocation2]   ;;  %s185_s0 = inlined_call_operand.vmem [shape: bf16[16,32], index: 0, kind: input, shape index: {}]   ;;  %s186_s1 = inlined_call_operand.vmem [shape: bf16[16,32], index: 1, kind: input, shape index: {}]   ;;  %s187_s2 = inlined_call_operand.vmem [shape: bf16[32,32], index: 2, kind: input, shape index: {}]   ;;  %s188_s3 = inlined_call_operand.hbm [shape: f32[1,32], index: 3, kind: input, shape index: {}]   ;;  %s189_s4 = inlined_call_operand.vmem [shape: bf16[16,32], index: 4, kind: output, shape index: {}]  }
   0x1   :  { %s21_s17 = sshll.u32 %s188_s3, 4  ;;  %s23_s19 = sshll.u32 %s138_s18, 4  ;;  %s22_s17 = int_to_ptr.hbm [resolvable:$true] %s21_s17  ;;  %s24_s19 = int_to_ptr.vmem [resolvable:$true] %s23_s19 }
   0x2   :  { %26 = dma.hbm_to_vmem [thread:$0]  %s22_s17, 16, %s24_s19, [#allocation3]  }
   0x3   :  { %136 = dma.done.wait [#allocation3], 16  }
   0x4   :  { %137 = vsyncadd [#allocation3], 4294967280  ;;  %v101_v0 = vld [vmem:[%s187_s2 + $0x8] sm:$0xff]  ;;  %v103_v1 = vld [vmem:[%s185_s0] sm:$0xff]   ;;  %vm63_vm0 = vcmask 261120   ;;  %vm83_vm1 = vcmask 257024  }
   0x5   :  { %v104_v2 = vunpack.c.l.bf16 %v103_v1  ;;  %v105_v3 = vunpack.c.h.bf16 %v103_v1  ;;  %v107_v4 = vld [vmem:[%s186_s1] sm:$0xff]   ;;  %73 = vmatpush.bf16.msra.mxu0 %v101_v0 }
   0x6   :  { %v100_v5 = vld [vmem:[%s187_s2] sm:$0xff]  ;;  %v108_v6 = vunpack.c.l.bf16 %v107_v4  ;;  %v109_v7 = vunpack.c.h.bf16 %v107_v4 }
   0x7   :  { %v111_v11 = vld [vmem:[#allocation2] ss:$0 sm:$0xff] }
   0x8   :  { %v40_v8 = vadd.f32 %v108_v6, %v104_v2  ;;  %v41_v9 = vadd.f32 %v109_v7, %v105_v3 }
   0x9   :  { %74 = vmatpush.bf16.msra.mxu0 %v100_v5 }
   0xa   :  { %v42_v10 = vpack.c.bf16 %v41_v9, %v40_v8 }
   0xc   :  { %99 = vmatmul.msk.bf16.vlgmr.msra.gmra.mxu0 %vm63_vm0, %v42_v10 }
  0x89   :  { %v76_v12 = vpop.f32.mrf.mxu0 }
  0x8a   :  { %v77_v13 = vadd.f32 %v111_v11, %v76_v12 }
  0x8c   :  { %v81_v14 = vpack.c.bf16 %v77_v13, %v77_v13 }
  0x8e   :  { %84 = vst.msk [vmem:[%s189_s4] sm:$0xf] %vm83_vm1, %v81_v14 }
  0x91   :  { %v78_v15 = vpop.f32.mrf.mxu0 }
  0x92   :  { %v79_v16 = vadd.f32 %v111_v11, %v78_v15 }
  0x94   :  { %v82_v17 = vpack.c.bf16 %v79_v16, %v79_v16 }
  0x96   :  { %85 = vst.msk [vmem:[%s189_s4 + $0x4] sm:$0xf] %vm83_vm1, %v82_v17 }
  0x97   :  { %90 = vsyncpa [#allocation3], 1 }

// kernel: _lambda_.42
= control target key start
LH: loop header
LB: loop body
LE: loop exit
PB: predicated region body
PF: predicated region fallthrough
CT: control target
= control target key end

     0   :  { %s786_s15 = smov 0   ;;  %s788_s16 = smov 0   ;;  %s872_s0 = inlined_call_operand.vmem [shape: bf16[2,8,32], index: 0, kind: input, shape index: {}]   ;;  %s873_s1 = inlined_call_operand.vmem [shape: bf16[2,16,32], index: 1, kind: input, shape index: {}]   ;;  %s874_s2 = inlined_call_operand.vmem [shape: bf16[2,16,32], index: 2, kind: input, shape index: {}]   ;;  %s875_s3 = inlined_call_operand.vmem [shape: f32[2,1,16], index: 3, kind: input, shape index: {}]   ;;  %s876_s4 = inlined_call_operand.vmem [shape: bf16[2,8,32], index: 4, kind: output, shape index: {}]  }
   0x1   :  { %s790_s17 = smov 0  }
   0x2 LB: > { %s26_s18 = sadd.s32 1, %s749_s16  ;;  %p655_p0 = scmp.ge.s32.totalorder %s753_s17, 1  ;;  %s753_s17 = sphi %s790_s17, %s14_s17   ;;  %s749_s16 = sphi %s788_s16, %s878_s16   ;;  %s745_s15 = sphi %s786_s15, %s877_s15  }
   0x3   : > { %p28_p1 = scmp.ge.s32.totalorder %s26_s18, 2  ;;  %p208_p2 = scmp.lt.s32.totalorder %s753_s17, 3 }
   0x5   : > { %s880_s18 = smov (%p28_p1, %s26_s18), 0  ;;  %p209_p3 = pnand %p655_p0, %p208_p2 }
   0x6   : > { %p251_p4 = scmp.lt.s32.totalorder (!%p209_p3), %s745_s15, 1  ;;  %s755_s30 = smov (!%p209_p3), 104  }
   0x7   : > { %212 = sbr.rel (%p209_p3) target bundleno = 834 (0x342), region = 36  ;;  %s756_s5 = smov (!%p209_p3), 120  }
   0x8   : > { %s757_s6 = smov (!%p209_p3), 112   ;;  %s758_s10 = smov (!%p209_p3), 8  }
   0x9   : > { %s759_s11 = smov (!%p209_p3), 24   ;;  %s760_s12 = smov (!%p209_p3), 16  }
   0xc   : > { %s882_s15 = smov (!%p251_p4, %s745_s15), 1  ;;  %vm296_vm0 = vcmask 64512   ;;  %vm316_vm1 = vcmask 130048   ;;  %vm538_vm2 = vcmask 195584   ;;  %vm542_vm3 = vcmask 257024  }
   0xd   : > { %s680_s19 = sshll.u32 %s882_s15, 3  ;;  %s656_s20 = sshll.u32 %s882_s15, 2 }
   0xe   : > { %s262_s23 = scalar_lea.vmem %s873_s1, %s680_s19  ;;  %s257_s26 = scalar_lea.vmem %s872_s0, %s656_s20 }
   0xf   : > { %v682_v0 = vld [vmem:[%s262_s23] sm:$0xff]  ;;  %s270_s29 = scalar_lea.vmem %s875_s3, %s882_s15  ;;  %s267_s9 = scalar_lea.vmem %s874_s2, %s680_s19 }
  0x10   : > { %v279_v1 = vld [vmem:[%s257_s26] sm:$0xf]  ;;  %v301_v3 = vsel %vm296_vm0, %v682_v0, 0  ;;  %465 = vrot.lane.b32.xlu2 %v682_v0, %s755_s30  ;;  %s277_s19 = scalar_lea.vmem %s876_s4, %s656_s20 }
  0x11   : > { %v285_v2 = vunpack.c.l.bf16 %v279_v1  ;;  %310 = vmatpush.bf16.xpose.msra.mxu0 %v301_v3  ;;  %v714_v9 = vld [vmem:[%s270_s29] ss:$0 sm:$0xff] }
  0x12   : > { %v683_v16 = vld [vmem:[%s267_s9] sm:$0xff] }
  0x13   : > { %v286_v4 = vmul.f32 0.35351563, %v285_v2  ;;  %344 = vmatpush.bf16.msra.mxu1 %v683_v16 }
  0x15   : > { %v287_v5 = vpack.c.bf16 %v286_v4, %v286_v4 }
  0x17   : > { %353 = vrot.lane.b32.xlu1 %v287_v5, %s756_s5 }
  0x18   : > { %666 = vmatmul.msk.bf16.vlgmr.msra.gmra.mxu0 %vm296_vm0, %v287_v5  ;;  %408 = vrot.lane.b32.xlu2 %v287_v5, %s757_s6 }
  0x1f   : > { %410 = vrot.lane.b32.xlu1 %v682_v0, %s757_s6 }
  0x27   : > { %463 = vrot.lane.b32.xlu1 %v287_v5, %s755_s30 }
  0x2f   : > { %387 = vrot.lane.b32.xlu1 %v683_v16, %s756_s5 }
  0x6a   : > { %v466_v7 = vpop.permute.xlu2 %465 }
  0x6b   : > { %v471_v8 = vsel %vm296_vm0, %v466_v7, 0 }
  0x6c   : > { %480 = vmatpush.bf16.xpose.msrb.mxu0 %v471_v8 }
  0x72   : > { %v409_v29 = vpop.permute.xlu2 %408 }
  0x89   : > { %v354_v6 = vpop.permute.xlu1 %353 }
  0x91   : > { %v411_v11 = vpop.permute.xlu1 %410 }
  0x92   : > { %v416_v17 = vsel %vm296_vm0, %v411_v11, 0 }
  0x93   : > { %425 = vmatpush.bf16.xpose.msrb.mxu1 %v416_v17 }
  0x95   : > { %v312_v10 = vpop.f32.mrf.mxu0 }
  0x96   : > { %v313_v12 = vadd.f32 %v714_v9, %v312_v10 }
  0x98   : > { %v317_v13 = vsel %vm316_vm1, %v313_v12, -inf }
  0x99   : > { %318 = vmax.xlane.f32.xlu0 %v317_v13  ;;  %v464_v15 = vpop.permute.xlu1 %463 }
  0x9a   : > { %676 = vmatmul.msk.bf16.vlgmr.msrb.gmra.mxu0 %vm296_vm0, %v464_v15 }
  0x9d   : > { %v314_v14 = vpop.f32.mrf.mxu0 }
  0xa1   : > { %v388_v32 = vpop.permute.xlu1 %387 }
  0xa2   : > { %400 = vmatpush.bf16.msra.mxu3 %v388_v32 }
  0xad   : > { %355 = vrot.lane.b32.xlu0 %v682_v0, %s756_s5 }
 0x10c   : > { %v319_v18 = vpop.xlane.xlu0 %318 }
 0x10d   : > { %v320_v19 = vsub.f32 %v313_v12, %v319_v18 }
 0x10f   : > { %v321_v20 = vmul.f32 1.442695, %v320_v19 }
 0x111   : > { %715 = vpow2.f32 %v321_v20 }
 0x117   : > { %v716_v21 = vpop.eup %715  ;;  %v482_v23 = vpop.f32.mrf.mxu0 }
 0x118   : > { %v327_v22 = vpack.c.bf16 %v716_v21, %v716_v21  ;;  %v483_v24 = vadd.f32 %v714_v9, %v482_v23  ;;  %v323_v41 = vsel %vm316_vm1, %v716_v21, 0.0 }
 0x11a   : > { %671 = vmatmul.msk.bf16.vlgmr.msra.gmra.mxu1 %vm316_vm1, %v327_v22  ;;  %v486_v25 = vsel %vm316_vm1, %v483_v24, -inf }
 0x11b   : > { %487 = vmax.xlane.f32.xlu1 %v486_v25 }
 0x11f   : > { %v356_v26 = vpop.permute.xlu0 %355  ;;  %v484_v28 = vpop.f32.mrf.mxu0 }
 0x120   : > { %v361_v27 = vsel %vm296_vm0, %v356_v26, 0 }
 0x121   : > { %370 = vmatpush.bf16.xpose.msra.mxu2 %v361_v27 }
 0x128   : > { %672 = vmatmul.msk.bf16.vlgmr.msra.gmra.mxu2 %vm296_vm0, %v354_v6 }
 0x12a   : > { %674 = vmatmul.msk.bf16.vlgmr.msrb.gmra.mxu1 %vm296_vm0, %v409_v29 }
 0x18e   : > { %v488_v43 = vpop.xlane.xlu1 %487 }
 0x18f   : > { %v489_v46 = vsub.f32 %v483_v24, %v488_v43 }
 0x191   : > { %v490_v50 = vmul.f32 1.442695, %v489_v46 }
 0x197   : > { %v842_v30 = vpop.f32.mrf.mxu1 }
 0x19f   : > { %v348_v31 = vpop.f32.mrf.mxu1 }
 0x1a7   : > { %v427_v33 = vpop.f32.mrf.mxu1 }
 0x1a8   : > { %v428_v34 = vadd.f32 %v714_v9, %v427_v33 }
 0x1aa   : > { %v431_v35 = vsel %vm316_vm1, %v428_v34, -inf }
 0x1ab   : > { %432 = vmax.xlane.f32.xlu0 %v431_v35  ;;  %v372_v36 = vpop.f32.mrf.mxu2 }
 0x1ac   : > { %v373_v37 = vadd.f32 %v714_v9, %v372_v36 }
 0x1ae   : > { %v376_v38 = vsel %vm316_vm1, %v373_v37, -inf }
 0x1af   : > { %377 = vmax.xlane.f32.xlu2 %v376_v38  ;;  %v429_v39 = vpop.f32.mrf.mxu1 }
 0x1b3   : > { %v374_v40 = vpop.f32.mrf.mxu2 }
 0x1bf   : > { %497 = vrot.lane.b32.xlu0 %v683_v16, %s755_s30 }
 0x1c7   : > { %442 = vrot.lane.b32.xlu2 %v683_v16, %s757_s6 }
 0x1e9   : > { %324 = vadd.xlane.f32.xlu0 %v323_v41 }
 0x21e   : > { %v433_v42 = vpop.xlane.xlu0 %432 }
 0x21f   : > { %v434_v44 = vsub.f32 %v428_v34, %v433_v42 }
 0x221   : > { %v435_v45 = vmul.f32 1.442695, %v434_v44 }
 0x222   : > { %v378_v47 = vpop.xlane.xlu2 %377 }
 0x223   : > { %717 = vpow2.f32 %v435_v45  ;;  %v379_v48 = vsub.f32 %v373_v37, %v378_v47 }
 0x225   : > { %v380_v49 = vmul.f32 1.442695, %v379_v48 }
 0x227   : > { %719 = vpow2.f32 %v380_v49 }
 0x228   : > { %721 = vpow2.f32 %v490_v50 }
 0x229   : > { %v718_v51 = vpop.eup %717 }
 0x22a   : > { %v437_v52 = vsel %vm316_vm1, %v718_v51, 0.0  ;;  %v443_v53 = vpop.permute.xlu2 %442  ;;  %v441_v61 = vpack.c.bf16 %v718_v51, %v718_v51 }
 0x22b   : > { %438 = vadd.xlane.f32.xlu2 %v437_v52  ;;  %455 = vmatpush.bf16.msrb.mxu3 %v443_v53 }
 0x22d   : > { %v720_v54 = vpop.eup %719 }
 0x22e   : > { %v382_v55 = vsel %vm316_vm1, %v720_v54, 0.0  ;;  %v386_v56 = vpack.c.bf16 %v720_v54, %v720_v54  ;;  %v722_v57 = vpop.eup %721 }
 0x22f   : > { %383 = vadd.xlane.f32.xlu1 %v382_v55  ;;  %v496_v59 = vpack.c.bf16 %v722_v57, %v722_v57  ;;  %v492_v60 = vsel %vm316_vm1, %v722_v57, 0.0 }
 0x230   : > { %673 = vmatmul.msk.bf16.vlgmr.msra.gmra.mxu3 %vm316_vm1, %v386_v56 }
 0x231   : > { %v498_v58 = vpop.permute.xlu0 %497 }
 0x232   : > { %510 = vmatpush.bf16.msrb.mxu2 %v498_v58 }
 0x235   : > { %677 = vmatmul.msk.bf16.vlgmr.msrb.gmra.mxu2 %vm316_vm1, %v496_v59 }
 0x237   : > { %493 = vadd.xlane.f32.xlu1 %v492_v60 }
 0x240   : > { %675 = vmatmul.msk.bf16.vlgmr.msrb.gmra.mxu3 %vm316_vm1, %v441_v61 }
 0x25c   : > { %v325_v22 = vpop.xlane.xlu0 %324 }
 0x29e   : > { %v439_v8 = vpop.xlane.xlu2 %438 }
 0x2a2   : > { %v384_v62 = vpop.xlane.xlu1 %383 }
 0x2a3   : > { %723 = vrcp.f32 %v384_v62 }
 0x2a9   : > { %v724_v0 = vpop.eup %723 }
 0x2aa   : > { %v494_v63 = vpop.xlane.xlu1 %493 }
 0x2ab   : > { %725 = vrcp.f32 %v494_v63 }
 0x2ac   : > { %727 = vrcp.f32 %v439_v8 }
 0x2ad   : > { %729 = vrcp.f32 %v325_v22 }
 0x2b1   : > { %v726_v4 = vpop.eup %725 }
 0x2b2   : > { %v728_v15 = vpop.eup %727 }
 0x2b3   : > { %v402_v1 = vpop.f32.mrf.mxu3  ;;  %v730_v23 = vpop.eup %729 }
 0x2b4   : > { %v406_v2 = vmul.f32 %v724_v0, %v402_v1  ;;  %v350_v25 = vmul.f32 %v730_v23, %v842_v30 }
 0x2b6   : > { %v407_v3 = vpack.c.bf16 %v406_v2, %v406_v2  ;;  %v351_v26 = vpack.c.bf16 %v350_v25, %v350_v25 }
 0x2b8   : > { %v519_v5 = vunpack.c.l.b16 %v407_v3  ;;  %v512_v6 = vpop.f32.mrf.mxu2 }
 0x2b9   : > { %v516_v7 = vmul.f32 %v726_v4, %v512_v6 }
 0x2ba   : > { %v520_v9 = vpack.c.b16 %v519_v5, %v519_v5 }
 0x2bb   : > { %v517_v10 = vpack.c.bf16 %v516_v7, %v516_v7  ;;  %v404_v11 = vpop.f32.mrf.mxu3 }
 0x2bc   : > { %521 = vrot.lane.b32.xlu1 %v520_v9, %s758_s10 }
 0x2bd   : > { %v529_v12 = vunpack.c.l.b16 %v517_v10 }
 0x2bf   : > { %v530_v13 = vpack.c.b16 %v529_v12, %v529_v12 }
 0x2c0   : > { %v514_v14 = vpop.f32.mrf.mxu2 }
 0x2c1   : > { %531 = vrot.lane.b32.xlu2 %v530_v13, %s759_s11 }
 0x2c3   : > { %v457_v16 = vpop.f32.mrf.mxu3 }
 0x2c4   : > { %v461_v17 = vmul.f32 %v728_v15, %v457_v16 }
 0x2c6   : > { %v462_v18 = vpack.c.bf16 %v461_v17, %v461_v17 }
 0x2c8   : > { %v524_v19 = vunpack.c.l.b16 %v462_v18 }
 0x2ca   : > { %v525_v20 = vpack.c.b16 %v524_v19, %v524_v19 }
 0x2cb   : > { %v459_v21 = vpop.f32.mrf.mxu3 }
 0x2cc   : > { %526 = vrot.lane.b32.xlu1 %v525_v20, %s760_s12 }
 0x31b   : > { %v532_v29 = vpop.permute.xlu2 %531 }
 0x32e   : > { %v522_v24 = vpop.permute.xlu1 %521 }
 0x32f   : > { %v535_v27 = vsel %vm296_vm0, %v351_v26, %v522_v24 }
 0x33e   : > { %v527_v28 = vpop.permute.xlu1 %526 }
 0x33f   : > { %v537_v31 = vsel %vm316_vm1, %v535_v27, %v527_v28 }
 0x340   : > { %v540_v32 = vsel %vm538_vm2, %v537_v31, %v532_v29 }
 0x341   : > { %543 = vst.msk [vmem:[%s277_s19] sm:$0xf] %vm542_vm3, %v540_v32 }
 0x342 PF: > { %s14_s17 = sadd.s32 1, %s753_s17   ;;  %s877_s15 = smov %s749_s16 }
 0x343   : > { %p11_p5 = scmp.ge.s32.totalorder %s14_s17, 4   ;;  %s878_s16 = smov %s880_s18 }
 0x345   :  { %13 = sbr.rel (!%p11_p5) target bundleno = 2 (0x2), region = 75 }

// kernel: _lambda_.43
= control target key start
LH: loop header
LB: loop body
LE: loop exit
PB: predicated region body
PF: predicated region fallthrough
CT: control target
= control target key end

     0   :  { %11 = vsyncpa [#allocation3], 0  ;;  %s370_s0 = inlined_call_operand.vmem [shape: bf16[16,32], index: 0, kind: input, shape index: {}]   ;;  %s371_s1 = inlined_call_operand.vmem [shape: bf16[32,32], index: 1, kind: input, shape index: {}]   ;;  %s372_s2 = inlined_call_operand.hbm [shape: f32[1,32], index: 2, kind: input, shape index: {}]   ;;  %s373_s3 = inlined_call_operand.vmem [shape: bf16[16,32], index: 3, kind: input, shape index: {}]   ;;  %s374_s4 = inlined_call_operand.hbm [shape: f32[1,32], index: 4, kind: input, shape index: {}]   ;;  %s375_s5 = inlined_call_operand.hbm [shape: f32[1,32], index: 5, kind: input, shape index: {}]   ;;  %s376_s6 = inlined_call_operand.vmem [shape: bf16[16,32], index: 6, kind: output, shape index: {}]  }
   0x1   :  { %12 = vsyncpa [#allocation5], 0  ;;  %s35_s23 = sshll.u32 %s374_s4, 4  ;;  %s299_s24 = smov [#allocation4]   ;;  %s36_s23 = int_to_ptr.hbm [resolvable:$true] %s35_s23 }
   0x2   :  { %s37_s25 = sshll.u32 %s299_s24, 4  ;;  %s22_s28 = sshll.u32 %s372_s2, 4  ;;  %s38_s25 = int_to_ptr.vmem [resolvable:$true] %s37_s25  ;;  %s23_s28 = int_to_ptr.hbm [resolvable:$true] %s22_s28 }
   0x3   :  { %40 = dma.hbm_to_vmem [thread:$0]  %s36_s23, 16, %s38_s25, [#allocation5]  }
   0x4   :  { %s300_s29 = smov [#allocation2]   ;;  %s46_s9 = sshll.u32 %s375_s5, 4  ;;  %s47_s9 = int_to_ptr.hbm [resolvable:$true] %s46_s9 }
   0x5   :  { %s24_s30 = sshll.u32 %s300_s29, 4  ;;  %s301_s4 = smov [#allocation6]   ;;  %s25_s30 = int_to_ptr.vmem [resolvable:$true] %s24_s30 }
   0x6   :  { %27 = dma.hbm_to_vmem [thread:$0]  %s23_s28, 16, %s25_s30, [#allocation3]  }
   0x7   :  { %s48_s10 = sshll.u32 %s301_s4, 4  ;;  %s49_s10 = int_to_ptr.vmem [resolvable:$true] %s48_s10 }
   0x8   :  { %51 = dma.hbm_to_vmem [thread:$0]  %s47_s9, 16, %s49_s10, [#allocation5]  }
   0x9   :  { %295 = dma.done.wait [#allocation3], 16  }
   0xa   :  { %296 = vsyncadd [#allocation3], 4294967280 }
   0xb   :  { %297 = dma.done.wait [#allocation5], 32  }
   0xc   :  { %298 = vsyncadd [#allocation5], 4294967264  ;;  %v205_v0 = vld [vmem:[%s371_s1 + $0x8] sm:$0xff]  ;;  %v204_v1 = vld [vmem:[%s371_s1] sm:$0xff]  ;;  %vm92_vm0 = vcmask 261120   ;;  %v302_v15 = vmov 32.0  }
   0xd   :  { %102 = vmatpush.bf16.msra.mxu0 %v205_v0  ;;  %v203_v2 = vld [vmem:[%s370_s0] sm:$0xff]  ;;  %217 = vrcp.f32 %v302_v15  ;;  %vm181_vm6 = vcmask 257024  }
   0xe   :  { %v207_v3 = vld [vmem:[%s373_s3] sm:$0xff]  }
   0xf   :  { %v214_v4 = vld [vmem:[#allocation2] ss:$0 sm:$0xff]  ;;  %v208_v5 = vunpack.c.l.bf16 %v207_v3  ;;  %v209_v10 = vunpack.c.h.bf16 %v207_v3  ;;  %v215_v46 = vld [vmem:[#allocation4] ss:$0 sm:$0xff]  ;;  %v216_v49 = vld [vmem:[#allocation6] ss:$0 sm:$0xff] }
  0x11   :  { %103 = vmatpush.bf16.msra.mxu0 %v204_v1 }
  0x13   :  { %v218_v16 = vpop.eup %217 }
  0x14   :  { %202 = vmatmul.msk.bf16.vlgmr.msra.gmra.mxu0 %vm92_vm0, %v203_v2  ;;  %v125_v17 = vmul.f32 32.0, %v218_v16  ;;  %vm129_vm1 = vweird.f32 %v218_v16 }
  0x16   :  { %v126_v18 = vsub.f32 1.0, %v125_v17 }
  0x18   :  { %v127_v19 = vmul.f32 %v218_v16, %v126_v18 }
  0x1a   :  { %v128_v20 = vadd.f32 %v218_v16, %v127_v19 }
  0x1c   :  { %v130_v21 = vsel %vm129_vm1, %v218_v16, %v128_v20 }
  0x91   :  { %v105_v6 = vpop.f32.mrf.mxu0 }
  0x92   :  { %v106_v7 = vadd.f32 %v214_v4, %v105_v6 }
  0x94   :  { %v114_v8 = vadd.f32 %v208_v5, %v106_v7 }
  0x96   :  { %v118_v9 = vsel %vm92_vm0, %v114_v8, 0.0 }
  0x97   :  { %119 = vadd.xlane.f32.xlu0 %v118_v9 }
  0x99   :  { %v107_v11 = vpop.f32.mrf.mxu0 }
  0x9a   :  { %v108_v12 = vadd.f32 %v214_v4, %v107_v11 }
  0x9c   :  { %v115_v13 = vadd.f32 %v209_v10, %v108_v12 }
  0x9e   :  { %v121_v14 = vsel %vm92_vm0, %v115_v13, 0.0 }
  0x9f   :  { %122 = vadd.xlane.f32.xlu0 %v121_v14 }
 0x10a   :  { %v120_v22 = vpop.xlane.xlu0 %119 }
 0x10b   :  { %v131_v23 = vmul.f32 %v130_v21, %v120_v22 }
 0x10d   :  { %v133_v24 = vsub.f32 %v114_v8, %v131_v23 }
 0x10f   :  { %v135_v25 = vmul.f32 %v133_v24, %v133_v24 }
 0x111   :  { %v137_v26 = vsel %vm92_vm0, %v135_v25, 0.0 }
 0x112   :  { %138 = vadd.xlane.f32.xlu1 %v137_v26  ;;  %v123_v27 = vpop.xlane.xlu0 %122 }
 0x113   :  { %v132_v28 = vmul.f32 %v130_v21, %v123_v27 }
 0x115   :  { %v134_v29 = vsub.f32 %v115_v13, %v132_v28 }
 0x117   :  { %v136_v30 = vmul.f32 %v134_v29, %v134_v29 }
 0x119   :  { %v140_v31 = vsel %vm92_vm0, %v136_v30, 0.0 }
 0x11a   :  { %141 = vadd.xlane.f32.xlu1 %v140_v31 }
 0x185   :  { %v139_v32 = vpop.xlane.xlu1 %138 }
 0x186   :  { %v143_v33 = vmul.f32 %v139_v32, %v130_v21 }
 0x188   :  { %v145_v34 = vadd.f32 1e-05, %v143_v33 }
 0x18a   :  { %219 = vrsqrt.f32 %v145_v34  ;;  %vm153_vm3 = vweird.f32 %v145_v34 }
 0x18d   :  { %v142_v35 = vpop.xlane.xlu1 %141 }
 0x18e   :  { %v144_v36 = vmul.f32 %v142_v35, %v130_v21 }
 0x190   :  { %v220_v37 = vpop.eup %219  ;;  %v146_v38 = vadd.f32 1e-05, %v144_v36 }
 0x191   :  { %v148_v39 = vmul.f32 %v220_v37, %v145_v34  ;;  %vm154_vm2 = vweird.f32 %v220_v37 }
 0x192   :  { %221 = vrsqrt.f32 %v146_v38  ;;  %vm155_vm4 = vmor %vm153_vm3, %vm154_vm2  ;;  %vm163_vm7 = vweird.f32 %v146_v38 }
 0x193   :  { %v149_v40 = vmul.f32 %v220_v37, %v148_v39 }
 0x195   :  { %v150_v41 = vmul.f32 0.5, %v149_v40 }
 0x197   :  { %v151_v42 = vsub.f32 1.5, %v150_v41 }
 0x198   :  { %v222_v43 = vpop.eup %221 }
 0x199   :  { %v152_v44 = vmul.f32 %v220_v37, %v151_v42  ;;  %v158_v45 = vmul.f32 %v222_v43, %v146_v38  ;;  %vm164_vm5 = vweird.f32 %v222_v43 }
 0x19a   :  { %vm165_vm8 = vmor %vm163_vm7, %vm164_vm5 }
 0x19b   :  { %v156_v47 = vsel %vm155_vm4, %v220_v37, %v152_v44  ;;  %v159_v48 = vmul.f32 %v222_v43, %v158_v45 }
 0x19c   :  { %v167_v50 = vmul.f32 %v156_v47, %v133_v24 }
 0x19d   :  { %v160_v51 = vmul.f32 0.5, %v159_v48 }
 0x19e   :  { %v172_v52 = vmul.f32 %v215_v46, %v167_v50 }
 0x19f   :  { %v161_v53 = vsub.f32 1.5, %v160_v51 }
 0x1a0   :  { %v177_v54 = vadd.f32 %v216_v49, %v172_v52 }
 0x1a1   :  { %v162_v55 = vmul.f32 %v222_v43, %v161_v53 }
 0x1a2   :  { %v179_v56 = vpack.c.bf16 %v177_v54, %v177_v54 }
 0x1a3   :  { %v166_v57 = vsel %vm165_vm8, %v222_v43, %v162_v55 }
 0x1a4   :  { %182 = vst.msk [vmem:[%s376_s6] sm:$0xf] %vm181_vm6, %v179_v56  ;;  %v168_v58 = vmul.f32 %v166_v57, %v134_v29 }
 0x1a6   :  { %v173_v59 = vmul.f32 %v215_v46, %v168_v58 }
 0x1a8   :  { %v178_v60 = vadd.f32 %v216_v49, %v173_v59 }
 0x1aa   :  { %v180_v61 = vpack.c.bf16 %v178_v60, %v178_v60 }
 0x1ac   :  { %183 = vst.msk [vmem:[%s376_s6 + $0x4] sm:$0xf] %vm181_vm6, %v180_v61 }
 0x1ad   :  { %188 = vsyncpa [#allocation3], 1 }
 0x1ae   :  { %189 = vsyncpa [#allocation5], 1 }

// kernel: _lambda_.44
= control target key start
LH: loop header
LB: loop body
LE: loop exit
PB: predicated region body
PF: predicated region fallthrough
CT: control target
= control target key end

     0   :  { %12 = vsyncpa [#allocation3], 0  ;;  %s509_s0 = inlined_call_operand.vmem [shape: bf16[16,32], index: 0, kind: input, shape index: {}]   ;;  %s510_s1 = inlined_call_operand.vmem [shape: bf16[32,64], index: 1, kind: input, shape index: {}]   ;;  %s511_s2 = inlined_call_operand.hbm [shape: f32[1,64], index: 2, kind: input, shape index: {}]   ;;  %s512_s3 = inlined_call_operand.vmem [shape: bf16[64,32], index: 3, kind: input, shape index: {}]   ;;  %s513_s4 = inlined_call_operand.hbm [shape: f32[1,32], index: 4, kind: input, shape index: {}]   ;;  %s514_s5 = inlined_call_operand.hbm [shape: f32[1,32], index: 5, kind: input, shape index: {}]   ;;  %s515_s6 = inlined_call_operand.hbm [shape: f32[1,32], index: 6, kind: input, shape index: {}]   ;;  %s516_s7 = inlined_call_operand.vmem [shape: bf16[16,32], index: 7, kind: output, shape index: {}]  }
   0x1   :  { %13 = vsyncpa [#allocation5], 0  ;;  %s37_s26 = sshll.u32 %s513_s4, 4  ;;  %s38_s26 = int_to_ptr.hbm [resolvable:$true] %s37_s26 }
   0x2   :  { %14 = vsyncpa [#allocation8], 0  ;;  %s417_s27 = smov [#allocation4]   ;;  %s24_s8 = sshll.u32 %s511_s2, 4  ;;  %s25_s8 = int_to_ptr.hbm [resolvable:$true] %s24_s8 }
   0x3   :  { %s39_s28 = sshll.u32 %s417_s27, 4  ;;  %s418_s9 = smov [#allocation2]   ;;  %s40_s28 = int_to_ptr.vmem [resolvable:$true] %s39_s28 }
   0x4   :  { %42 = dma.hbm_to_vmem [thread:$0]  %s38_s26, 16, %s40_s28, [#allocation5]  }
   0x5   :  { %s26_s10 = sshll.u32 %s418_s9, 4  ;;  %s48_s13 = sshll.u32 %s514_s5, 4  ;;  %s27_s10 = int_to_ptr.vmem [resolvable:$true] %s26_s10  ;;  %s49_s13 = int_to_ptr.hbm [resolvable:$true] %s48_s13 }
   0x6   :  { %29 = dma.hbm_to_vmem [thread:$0]  %s25_s8, 16, %s27_s10, [#allocation3]  }
   0x7   :  { %s59_s15 = sshll.u32 %s515_s6, 4  ;;  %s419_s16 = smov [#allocation6]   ;;  %s60_s15 = int_to_ptr.hbm [resolvable:$true] %s59_s15 }
   0x8   :  { %s50_s17 = sshll.u32 %s419_s16, 4  ;;  %s420_s2 = smov [#allocation7]   ;;  %s51_s17 = int_to_ptr.vmem [resolvable:$true] %s50_s17 }
   0x9   :  { %53 = dma.hbm_to_vmem [thread:$0]  %s49_s13, 16, %s51_s17, [#allocation5]  }
   0xa   :  { %s61_s18 = sshll.u32 %s420_s2, 4  ;;  %s62_s18 = int_to_ptr.vmem [resolvable:$true] %s61_s18 }
   0xb   :  { %64 = dma.hbm_to_vmem [thread:$0]  %s60_s15, 16, %s62_s18, [#allocation8]  }
   0xc   :  { %411 = dma.done.wait [#allocation3], 16  }
   0xd   :  { %412 = vsyncadd [#allocation3], 4294967280 }
   0xe   :  { %413 = dma.done.wait [#allocation5], 32  }
   0xf   :  { %414 = vsyncadd [#allocation5], 4294967264 }
  0x10   :  { %415 = dma.done.wait [#allocation8], 16  }
  0x11   :  { %416 = vsyncadd [#allocation8], 4294967280  ;;  %v295_v0 = vld [vmem:[%s510_s1 + $0x8] sm:$0xff]  ;;  %v294_v1 = vld [vmem:[%s510_s1] sm:$0xff]  ;;  %vm109_vm0 = vcmask 261120   ;;  %vm166_vm1 = vcmask 523264  }
  0x12   :  { %119 = vmatpush.bf16.msra.mxu0 %v295_v0  ;;  %v293_v2 = vld [vmem:[%s509_s0] sm:$0xff]  ;;  %v299_v3 = vld [vmem:[%s512_s3 + $0x18] sm:$0xff]  ;;  %v298_v4 = vld [vmem:[%s512_s3 + $0x10] sm:$0xff]  ;;  %v421_v27 = vmov 32.0   ;;  %vm253_vm7 = vcmask 257024  }
  0x13   :  { %174 = vmatpush.bf16.msra.mxu1 %v299_v3  ;;  %v297_v5 = vld [vmem:[%s512_s3 + $0x8] sm:$0xff]  ;;  %v296_v6 = vld [vmem:[%s512_s3] sm:$0xff]  ;;  %309 = vrcp.f32 %v421_v27 }
  0x14   :  { %v305_v8 = vld [vmem:[#allocation2] ss:$0 sm:$0xff]  ;;  %v306_v16 = vld [vmem:[#allocation4] ss:$0 sm:$0xff]  ;;  %v307_v58 = vld [vmem:[#allocation6] ss:$0 sm:$0xff] }
  0x15   :  { %v82_v15 = vld [vmem:[%s509_s0] sm:$0xff]  }
  0x16   :  { %120 = vmatpush.bf16.msra.mxu0 %v294_v1  ;;  %v184_v17 = vunpack.c.l.bf16 %v82_v15  ;;  %v185_v22 = vunpack.c.h.bf16 %v82_v15  ;;  %v308_v61 = vld [vmem:[#allocation7] ss:$0 sm:$0xff] }
  0x17   :  { %175 = vmatpush.bf16.msra.mxu1 %v298_v4 }
  0x19   :  { %275 = vmatmul.msk.bf16.vlgmr.msra.gmra.mxu0 %vm109_vm0, %v293_v2  ;;  %v310_v28 = vpop.eup %309 }
  0x1a   :  { %v195_v29 = vmul.f32 32.0, %v310_v28  ;;  %vm199_vm2 = vweird.f32 %v310_v28 }
  0x1b   :  { %176 = vmatpush.bf16.msra.mxu1 %v297_v5 }
  0x1c   :  { %v196_v30 = vsub.f32 1.0, %v195_v29 }
  0x1e   :  { %v197_v31 = vmul.f32 %v310_v28, %v196_v30 }
  0x1f   :  { %177 = vmatpush.bf16.msra.mxu1 %v296_v6 }
  0x20   :  { %v198_v32 = vadd.f32 %v310_v28, %v197_v31 }
  0x22   :  { %v200_v33 = vsel %vm199_vm2, %v310_v28, %v198_v32 }
  0x96   :  { %v122_v7 = vpop.f32.mrf.mxu0 }
  0x97   :  { %v123_v9 = vadd.f32 %v305_v8, %v122_v7 }
  0x99   :  { %v127_v12 = vmax.f32 %v123_v9, 0.0 }
  0x9e   :  { %v124_v10 = vpop.f32.mrf.mxu0 }
  0x9f   :  { %v125_v11 = vadd.f32 %v305_v8, %v124_v10 }
  0xa1   :  { %v128_v13 = vmax.f32 %v125_v11, 0.0 }
  0xa3   :  { %v129_v14 = vpack.c.bf16 %v128_v13, %v127_v12 }
  0xa5   :  { %292 = vmatmul.msk.bf16.vlgmr.msra.gmra.mxu1 %vm166_vm1, %v129_v14 }
 0x122   :  { %v179_v18 = vpop.f32.mrf.mxu1 }
 0x123   :  { %v180_v19 = vadd.f32 %v306_v16, %v179_v18 }
 0x125   :  { %v186_v20 = vadd.f32 %v184_v17, %v180_v19 }
 0x127   :  { %v188_v21 = vsel %vm109_vm0, %v186_v20, 0.0 }
 0x128   :  { %189 = vadd.xlane.f32.xlu0 %v188_v21 }
 0x12a   :  { %v181_v23 = vpop.f32.mrf.mxu1 }
 0x12b   :  { %v182_v24 = vadd.f32 %v306_v16, %v181_v23 }
 0x12d   :  { %v187_v25 = vadd.f32 %v185_v22, %v182_v24 }
 0x12f   :  { %v191_v26 = vsel %vm109_vm0, %v187_v25, 0.0 }
 0x130   :  { %192 = vadd.xlane.f32.xlu0 %v191_v26 }
 0x19b   :  { %v190_v34 = vpop.xlane.xlu0 %189 }
 0x19c   :  { %v201_v35 = vmul.f32 %v200_v33, %v190_v34 }
 0x19e   :  { %v203_v36 = vsub.f32 %v186_v20, %v201_v35 }
 0x1a0   :  { %v205_v37 = vmul.f32 %v203_v36, %v203_v36 }
 0x1a2   :  { %v207_v38 = vsel %vm109_vm0, %v205_v37, 0.0 }
 0x1a3   :  { %208 = vadd.xlane.f32.xlu1 %v207_v38  ;;  %v193_v39 = vpop.xlane.xlu0 %192 }
 0x1a4   :  { %v202_v40 = vmul.f32 %v200_v33, %v193_v39 }
 0x1a6   :  { %v204_v41 = vsub.f32 %v187_v25, %v202_v40 }
 0x1a8   :  { %v206_v42 = vmul.f32 %v204_v41, %v204_v41 }
 0x1aa   :  { %v210_v43 = vsel %vm109_vm0, %v206_v42, 0.0 }
 0x1ab   :  { %211 = vadd.xlane.f32.xlu1 %v210_v43 }
 0x216   :  { %v209_v44 = vpop.xlane.xlu1 %208 }
 0x217   :  { %v213_v45 = vmul.f32 %v209_v44, %v200_v33 }
 0x219   :  { %v215_v46 = vadd.f32 1e-05, %v213_v45 }
 0x21b   :  { %311 = vrsqrt.f32 %v215_v46  ;;  %vm223_vm4 = vweird.f32 %v215_v46 }
 0x21e   :  { %v212_v47 = vpop.xlane.xlu1 %211 }
 0x21f   :  { %v214_v48 = vmul.f32 %v212_v47, %v200_v33 }
 0x221   :  { %v312_v49 = vpop.eup %311  ;;  %v216_v50 = vadd.f32 1e-05, %v214_v48 }
 0x222   :  { %v218_v51 = vmul.f32 %v312_v49, %v215_v46  ;;  %vm224_vm3 = vweird.f32 %v312_v49 }
 0x223   :  { %313 = vrsqrt.f32 %v216_v50  ;;  %vm225_vm5 = vmor %vm223_vm4, %vm224_vm3  ;;  %vm233_vm8 = vweird.f32 %v216_v50 }
 0x224   :  { %v219_v52 = vmul.f32 %v312_v49, %v218_v51 }
 0x226   :  { %v220_v53 = vmul.f32 0.5, %v219_v52 }
 0x228   :  { %v221_v54 = vsub.f32 1.5, %v220_v53 }
 0x229   :  { %v314_v55 = vpop.eup %313 }
 0x22a   :  { %v222_v56 = vmul.f32 %v312_v49, %v221_v54  ;;  %v228_v57 = vmul.f32 %v314_v55, %v216_v50  ;;  %vm234_vm6 = vweird.f32 %v314_v55 }
 0x22b   :  { %vm235_vm9 = vmor %vm233_vm8, %vm234_vm6 }
 0x22c   :  { %v226_v59 = vsel %vm225_vm5, %v312_v49, %v222_v56  ;;  %v229_v60 = vmul.f32 %v314_v55, %v228_v57 }
 0x22d   :  { %v237_v62 = vmul.f32 %v226_v59, %v203_v36 }
 0x22e   :  { %v230_v63 = vmul.f32 0.5, %v229_v60 }
 0x22f   :  { %v243_v0 = vmul.f32 %v307_v58, %v237_v62 }
 0x230   :  { %v231_v1 = vsub.f32 1.5, %v230_v63 }
 0x231   :  { %v249_v2 = vadd.f32 %v308_v61, %v243_v0 }
 0x232   :  { %v232_v3 = vmul.f32 %v314_v55, %v231_v1 }
 0x233   :  { %v251_v4 = vpack.c.bf16 %v249_v2, %v249_v2 }
 0x234   :  { %v236_v5 = vsel %vm235_vm9, %v314_v55, %v232_v3 }
 0x235   :  { %254 = vst.msk [vmem:[%s516_s7] sm:$0xf] %vm253_vm7, %v251_v4  ;;  %v238_v6 = vmul.f32 %v236_v5, %v204_v41 }
 0x237   :  { %v244_v7 = vmul.f32 %v307_v58, %v238_v6 }
 0x239   :  { %v250_v8 = vadd.f32 %v308_v61, %v244_v7 }
 0x23b   :  { %v252_v9 = vpack.c.bf16 %v250_v8, %v250_v8 }
 0x23d   :  { %255 = vst.msk [vmem:[%s516_s7 + $0x4] sm:$0xf] %vm253_vm7, %v252_v9 }
 0x23e   :  { %260 = vsyncpa [#allocation3], 1 }
 0x23f   :  { %261 = vsyncpa [#allocation5], 1 }
 0x240   :  { %262 = vsyncpa [#allocation8], 1 }

// kernel: _lambda_.45
= control target key start
LH: loop header
LB: loop body
LE: loop exit
PB: predicated region body
PF: predicated region fallthrough
CT: control target
= control target key end

     0   :  { %14 = vsyncpa [#allocation3], 0  ;;  %s366_s0 = inlined_call_operand.vmem [shape: bf16[16,32], index: 0, kind: input, shape index: {}]   ;;  %s367_s1 = inlined_call_operand.vmem [shape: bf16[16,32], index: 1, kind: input, shape index: {}]   ;;  %s368_s2 = inlined_call_operand.vmem [shape: bf16[32,64], index: 2, kind: input, shape index: {}]   ;;  %s369_s3 = inlined_call_operand.hbm [shape: f32[1,64], index: 3, kind: input, shape index: {}]   ;;  %s370_s4 = inlined_call_operand.vmem [shape: bf16[32,32], index: 4, kind: input, shape index: {}]   ;;  %s371_s5 = inlined_call_operand.hbm [shape: f32[1,32], index: 5, kind: input, shape index: {}]   ;;  %s372_s6 = inlined_call_operand.vmem [shape: bf16[16,32], index: 6, kind: output, shape index: {0}]   ;;  %s373_s7 = inlined_call_operand.vmem [shape: bf16[16,32], index: 7, kind: output, shape index: {1}]   ;;  %s374_s8 = inlined_call_operand.vmem [shape: bf16[16,32], index: 8, kind: output, shape index: {2}]  }
   0x1   :  { %s27_s29 = sshll.u32 %s369_s3, 4  ;;  %s28_s29 = int_to_ptr.hbm [resolvable:$true] %s27_s29 }
   0x2   :  { %15 = vsyncpa [#allocation5], 0  ;;  %s267_s30 = smov [#allocation2]   ;;  %s40_s12 = sshll.u32 %s371_s5, 4  ;;  %s41_s12 = int_to_ptr.hbm [resolvable:$true] %s40_s12 }
   0x3   :  { %s29_s9 = sshll.u32 %s267_s30, 4  ;;  %s268_s13 = smov [#allocation4]   ;;  %s30_s9 = int_to_ptr.vmem [resolvable:$true] %s29_s9 }
   0x4   :  { %32 = dma.hbm_to_vmem [thread:$0]  %s28_s29, 16, %s30_s9, [#allocation3]  }
   0x5   :  { %s42_s14 = sshll.u32 %s268_s13, 4  ;;  %s43_s14 = int_to_ptr.vmem [resolvable:$true] %s42_s14 }
   0x6   :  { %45 = dma.hbm_to_vmem [thread:$0]  %s41_s12, 16, %s43_s14, [#allocation5]  }
   0x7   :  { %263 = dma.done.wait [#allocation3], 16  }
   0x8   :  { %264 = vsyncadd [#allocation3], 4294967280 }
   0x9   :  { %265 = dma.done.wait [#allocation5], 16  }
   0xa   :  { %266 = vsyncadd [#allocation5], 4294967280  ;;  %v203_v0 = vld [vmem:[%s368_s2 + $0x8] sm:$0xff]  ;;  %v55_v1 = vld [vmem:[%s366_s0] sm:$0xff]   ;;  %vm86_vm0 = vcmask 261120   ;;  %vm148_vm1 = vcmask 257024  }
   0xb   :  { %v207_v2 = vld [vmem:[%s367_s1] sm:$0xff]   ;;  %v59_v3 = vunpack.c.l.bf16 %v55_v1  ;;  %v60_v4 = vunpack.c.h.bf16 %v55_v1  ;;  %v205_v5 = vld [vmem:[%s370_s4 + $0x8] sm:$0xff]  ;;  %96 = vmatpush.bf16.msra.mxu0 %v203_v0  ;;  %s269_s26 = smov 96  }
   0xc   :  { %v202_v6 = vld [vmem:[%s368_s2] sm:$0xff]  ;;  %v208_v7 = vunpack.c.l.bf16 %v207_v2  ;;  %v209_v8 = vunpack.c.h.bf16 %v207_v2  ;;  %138 = vmatpush.bf16.msra.mxu1 %v205_v5 }
   0xd   :  { %v204_v9 = vld [vmem:[%s370_s4] sm:$0xff] }
   0xe   :  { %v63_v10 = vadd.f32 %v208_v7, %v59_v3  ;;  %v64_v11 = vadd.f32 %v209_v8, %v60_v4  ;;  %v201_v13 = vld [vmem:[%s366_s0] sm:$0xff] }
   0xf   :  { %97 = vmatpush.bf16.msra.mxu0 %v202_v6  ;;  %v213_v14 = vld [vmem:[#allocation2] ss:$0 sm:$0xff]  ;;  %v214_v15 = vld [vmem:[#allocation4] ss:$0 sm:$0xff] }
  0x10   :  { %v65_v12 = vpack.c.bf16 %v64_v11, %v63_v10  ;;  %139 = vmatpush.bf16.msra.mxu1 %v204_v9 }
  0x12   :  { %187 = vmatmul.msk.bf16.vlgmr.msra.gmra.mxu0 %vm86_vm0, %v65_v12 }
  0x13   :  { %200 = vmatmul.msk.bf16.vlgmr.msra.gmra.mxu1 %vm86_vm0, %v201_v13 }
  0x8f   :  { %v99_v16 = vpop.f32.mrf.mxu0 }
  0x90   :  { %v100_v17 = vadd.f32 %v213_v14, %v99_v16  ;;  %v141_v18 = vpop.f32.mrf.mxu1 }
  0x91   :  { %v142_v19 = vadd.f32 %v214_v15, %v141_v18 }
  0x92   :  { %v146_v20 = vpack.c.bf16 %v100_v17, %v100_v17 }
  0x93   :  { %v161_v21 = vpack.c.bf16 %v142_v19, %v142_v19 }
  0x94   :  { %149 = vst.msk [vmem:[%s372_s6] sm:$0xf] %vm148_vm1, %v146_v20  ;;  %153 = vrot.lane.b32.xlu0 %v146_v20, %s269_s26 }
  0x95   :  { %163 = vst.msk [vmem:[%s374_s8] sm:$0xf] %vm148_vm1, %v161_v21 }
  0x97   :  { %v101_v22 = vpop.f32.mrf.mxu0 }
  0x98   :  { %v102_v23 = vadd.f32 %v213_v14, %v101_v22  ;;  %v143_v24 = vpop.f32.mrf.mxu1 }
  0x99   :  { %v144_v25 = vadd.f32 %v214_v15, %v143_v24 }
  0x9a   :  { %v147_v26 = vpack.c.bf16 %v102_v23, %v102_v23 }
  0x9b   :  { %v162_v27 = vpack.c.bf16 %v144_v25, %v144_v25 }
  0x9c   :  { %150 = vst.msk [vmem:[%s372_s6 + $0x4] sm:$0xf] %vm148_vm1, %v147_v26  ;;  %155 = vrot.lane.b32.xlu0 %v147_v26, %s269_s26 }
  0x9d   :  { %164 = vst.msk [vmem:[%s374_s8 + $0x4] sm:$0xf] %vm148_vm1, %v162_v27 }
 0x106   :  { %v154_v28 = vpop.permute.xlu0 %153 }
 0x107   :  { %159 = vst.msk [vmem:[%s373_s7] sm:$0xf] %vm148_vm1, %v154_v28 }
 0x10e   :  { %v156_v29 = vpop.permute.xlu0 %155 }
 0x10f   :  { %160 = vst.msk [vmem:[%s373_s7 + $0x4] sm:$0xf] %vm148_vm1, %v156_v29 }
 0x110   :  { %177 = vsyncpa [#allocation3], 1 }
 0x111   :  { %178 = vsyncpa [#allocation5], 1 }

// kernel: _lambda_.53
= control target key start
LH: loop header
LB: loop body
LE: loop exit
PB: predicated region body
PF: predicated region fallthrough
CT: control target
= control target key end

     0   :  { %18 = vsyncpa [#allocation3], 0  ;;  %s763_s0 = inlined_call_operand.vmem [shape: bf16[16,32], index: 0, kind: input, shape index: {}]   ;;  %s764_s1 = inlined_call_operand.hbm [shape: f32[1,32], index: 1, kind: input, shape index: {}]   ;;  %s765_s2 = inlined_call_operand.hbm [shape: f32[1,32], index: 2, kind: input, shape index: {}]   ;;  %s766_s3 = inlined_call_operand.vmem [shape: bf16[32,128], index: 3, kind: input, shape index: {}]   ;;  %s767_s4 = inlined_call_operand.hbm [shape: f32[1,128], index: 4, kind: input, shape index: {}]   ;;  %s768_s5 = inlined_call_operand.vmem [shape: bf16[32,32], index: 5, kind: input, shape index: {}]   ;;  %s769_s6 = inlined_call_operand.hbm [shape: f32[1,32], index: 6, kind: input, shape index: {}]   ;;  %s770_s7 = inlined_call_operand.vmem [shape: bf16[32,32], index: 7, kind: input, shape index: {}]   ;;  %s771_s8 = inlined_call_operand.hbm [shape: f32[1,32], index: 8, kind: input, shape index: {}]   ;;  %s772_s9 = inlined_call_operand.vmem [shape: bf16[32,128], index: 9, kind: input, shape index: {}]   ;;  %s773_s10 = inlined_call_operand.hbm [shape: f32[1,128], index: 10, kind: input, shape index: {}]   ;;  %s774_s11 = inlined_call_operand.vmem [shape: f32[16,128], index: 11, kind: output, shape index: {0}]   ;;  %s775_s12 = inlined_call_operand.vmem [shape: f32[16,128], index: 12, kind: output, shape index: {1}]  }
   0x1   :  { %19 = vsyncpa [#allocation5], 0 }
   0x2   :  { %20 = vsyncpa [#allocation8], 0  ;;  %s40_s23 = sshll.u32 %s765_s2, 4  ;;  %s41_s23 = int_to_ptr.hbm [resolvable:$true] %s40_s23 }
   0x3   :  { %21 = vsyncpa [#allocation11], 0  ;;  %s626_s24 = smov [#allocation4]   ;;  %s66_s28 = sshll.u32 %s769_s6, 4  ;;  %s67_s28 = int_to_ptr.hbm [resolvable:$true] %s66_s28 }
   0x4   :  { %s42_s25 = sshll.u32 %s626_s24, 4  ;;  %s627_s29 = smov [#allocation7]   ;;  %s43_s25 = int_to_ptr.vmem [resolvable:$true] %s42_s25 }
   0x5   :  { %45 = dma.hbm_to_vmem [thread:$0]  %s41_s23, 16, %s43_s25, [#allocation5]  }
   0x6   :  { %s68_s30 = sshll.u32 %s627_s29, 4  ;;  %s29_s15 = sshll.u32 %s764_s1, 4  ;;  %s69_s30 = int_to_ptr.vmem [resolvable:$true] %s68_s30  ;;  %s30_s15 = int_to_ptr.hbm [resolvable:$true] %s29_s15 }
   0x7   :  { %71 = dma.hbm_to_vmem [thread:$0]  %s67_s28, 16, %s69_s30, [#allocation8]  }
   0x8   :  { %s53_s17 = sshll.u32 %s767_s4, 4  ;;  %s628_s18 = smov [#allocation2]   ;;  %s54_s17 = int_to_ptr.hbm [resolvable:$true] %s53_s17 }
   0x9   :  { %s31_s19 = sshll.u32 %s628_s18, 4  ;;  %s629_s6 = smov [#allocation6]   ;;  %s32_s19 = int_to_ptr.vmem [resolvable:$true] %s31_s19 }
   0xa   :  { %34 = dma.hbm_to_vmem [thread:$0]  %s30_s15, 16, %s32_s19, [#allocation3]  }
   0xb   :  { %s55_s20 = sshll.u32 %s629_s6, 4  ;;  %s79_s23 = sshll.u32 %s771_s8, 4  ;;  %s56_s20 = int_to_ptr.vmem [resolvable:$true] %s55_s20  ;;  %s80_s23 = int_to_ptr.hbm [resolvable:$true] %s79_s23 }
   0xc   :  { %58 = dma.hbm_to_vmem [thread:$0]  %s54_s17, 16, %s56_s20, [#allocation5]  }
   0xd   :  { %s92_s25 = sshll.u32 %s773_s10, 4  ;;  %s630_s26 = smov [#allocation9]   ;;  %s93_s25 = int_to_ptr.hbm [resolvable:$true] %s92_s25 }
   0xe   :  { %s81_s4 = sshll.u32 %s630_s26, 4  ;;  %s631_s27 = smov [#allocation10]   ;;  %s82_s4 = int_to_ptr.vmem [resolvable:$true] %s81_s4 }
   0xf   :  { %84 = dma.hbm_to_vmem [thread:$0]  %s80_s23, 16, %s82_s4, [#allocation8]  }
  0x10   :  { %s94_s28 = sshll.u32 %s631_s27, 4  ;;  %s95_s28 = int_to_ptr.vmem [resolvable:$true] %s94_s28 }
  0x11   :  { %97 = dma.hbm_to_vmem [thread:$0]  %s93_s25, 16, %s95_s28, [#allocation11]  }
  0x12   :  { %618 = dma.done.wait [#allocation3], 16  }
  0x13   :  { %619 = vsyncadd [#allocation3], 4294967280 }
  0x14   :  { %620 = dma.done.wait [#allocation5], 32  }
  0x15   :  { %621 = vsyncadd [#allocation5], 4294967264 }
  0x16   :  { %622 = dma.done.wait [#allocation8], 32  }
  0x17   :  { %623 = vsyncadd [#allocation8], 4294967264 }
  0x18   :  { %624 = dma.done.wait [#allocation11], 16  }
  0x19   :  { %625 = vsyncadd [#allocation11], 4294967280  ;;  %v444_v0 = vld [vmem:[%s763_s0] sm:$0xff]   ;;  %vm127_vm0 = vcmask 261120   ;;  %v632_v5 = vmov 32.0   ;;  %v436_v22 = vld [vmem:[%s766_s3 + $0x8] sm:$0xff] }
  0x1a   :  { %v445_v1 = vunpack.c.l.bf16 %v444_v0  ;;  %v446_v3 = vunpack.c.h.bf16 %v444_v0  ;;  %460 = vrcp.f32 %v632_v5  ;;  %v438_v23 = vld [vmem:[%s768_s5 + $0x8] sm:$0xff]  ;;  %221 = vmatpush.bf16.msra.mxu0 %v436_v22  ;;  %v435_v25 = vld [vmem:[%s766_s3] sm:$0xff] }
  0x1b   :  { %257 = vmatpush.bf16.msra.mxu1 %v438_v23  ;;  %v437_v26 = vld [vmem:[%s768_s5] sm:$0xff]  ;;  %v440_v55 = vld [vmem:[%s770_s7 + $0x8] sm:$0xff] }
  0x1c   :  { %v128_v2 = vsel %vm127_vm0, %v445_v1, 0.0  ;;  %v131_v4 = vsel %vm127_vm0, %v446_v3, 0.0  ;;  %v454_v45 = vld [vmem:[#allocation2] ss:$0 sm:$0xff]  ;;  %v455_v50 = vld [vmem:[#allocation4] ss:$0 sm:$0xff]  ;;  %297 = vmatpush.bf16.msra.mxu2 %v440_v55 }
  0x1d   :  { %129 = vadd.xlane.f32.xlu0 %v128_v2  ;;  %v439_v56 = vld [vmem:[%s770_s7] sm:$0xff] }
  0x1e   :  { %222 = vmatpush.bf16.msra.mxu0 %v435_v25  ;;  %v456_v57 = vld [vmem:[#allocation6] ss:$0 sm:$0xff]  ;;  %v457_v61 = vld [vmem:[#allocation7] ss:$0 sm:$0xff] }
  0x1f   :  { %258 = vmatpush.bf16.msra.mxu1 %v437_v26 }
  0x20   :  { %v461_v6 = vpop.eup %460  ;;  %298 = vmatpush.bf16.msra.mxu2 %v439_v56 }
  0x21   :  { %v135_v7 = vmul.f32 32.0, %v461_v6  ;;  %vm139_vm1 = vweird.f32 %v461_v6 }
  0x23   :  { %v136_v8 = vsub.f32 1.0, %v135_v7  ;;  %v441_v7 = vld [vmem:[%s772_s9] sm:$0xff] }
  0x25   :  { %132 = vadd.xlane.f32.xlu0 %v131_v4  ;;  %v137_v9 = vmul.f32 %v461_v6, %v136_v8 }
  0x27   :  { %v138_v10 = vadd.f32 %v461_v6, %v137_v9  ;;  %v458_v9 = vld [vmem:[#allocation9] ss:$0 sm:$0xff] }
  0x29   :  { %v140_v11 = vsel %vm139_vm1, %v461_v6, %v138_v10  ;;  %v442_v6 = vld [vmem:[%s772_s9 + $0x8] sm:$0xff] }
  0x2a   :  { %337 = vmatpush.bf16.msra.mxu3 %v442_v6 }
  0x2e   :  { %338 = vmatpush.bf16.msra.mxu3 %v441_v7 }
  0x90   :  { %v130_v12 = vpop.xlane.xlu0 %129 }
  0x91   :  { %v141_v13 = vmul.f32 %v140_v11, %v130_v12 }
  0x93   :  { %v143_v14 = vsub.f32 %v445_v1, %v141_v13 }
  0x95   :  { %v145_v15 = vmul.f32 %v143_v14, %v143_v14 }
  0x97   :  { %v147_v16 = vsel %vm127_vm0, %v145_v15, 0.0 }
  0x98   :  { %148 = vadd.xlane.f32.xlu1 %v147_v16  ;;  %v133_v17 = vpop.xlane.xlu0 %132  ;;  %v459_v16 = vld [vmem:[#allocation10] ss:$0 sm:$0xff] }
  0x99   :  { %v142_v18 = vmul.f32 %v140_v11, %v133_v17 }
  0x9b   :  { %v144_v19 = vsub.f32 %v446_v3, %v142_v18 }
  0x9d   :  { %v146_v20 = vmul.f32 %v144_v19, %v144_v19 }
  0x9f   :  { %v150_v21 = vsel %vm127_vm0, %v146_v20, 0.0 }
  0xa0   :  { %151 = vadd.xlane.f32.xlu1 %v150_v21 }
 0x10b   :  { %v149_v24 = vpop.xlane.xlu1 %148 }
 0x10c   :  { %v153_v27 = vmul.f32 %v149_v24, %v140_v11 }
 0x10e   :  { %v155_v28 = vadd.f32 1e-05, %v153_v27 }
 0x110   :  { %462 = vrsqrt.f32 %v155_v28  ;;  %vm163_vm3 = vweird.f32 %v155_v28 }
 0x113   :  { %v152_v29 = vpop.xlane.xlu1 %151 }
 0x114   :  { %v154_v30 = vmul.f32 %v152_v29, %v140_v11 }
 0x116   :  { %v463_v31 = vpop.eup %462  ;;  %v156_v32 = vadd.f32 1e-05, %v154_v30 }
 0x117   :  { %v158_v33 = vmul.f32 %v463_v31, %v155_v28  ;;  %vm164_vm2 = vweird.f32 %v463_v31 }
 0x118   :  { %464 = vrsqrt.f32 %v156_v32  ;;  %vm165_vm4 = vmor %vm163_vm3, %vm164_vm2  ;;  %vm173_vm6 = vweird.f32 %v156_v32 }
 0x119   :  { %v159_v34 = vmul.f32 %v463_v31, %v158_v33 }
 0x11b   :  { %v160_v35 = vmul.f32 0.5, %v159_v34 }
 0x11d   :  { %v161_v36 = vsub.f32 1.5, %v160_v35 }
 0x11e   :  { %v465_v37 = vpop.eup %464 }
 0x11f   :  { %v162_v38 = vmul.f32 %v463_v31, %v161_v36  ;;  %v168_v39 = vmul.f32 %v465_v37, %v156_v32  ;;  %vm174_vm5 = vweird.f32 %v465_v37 }
 0x120   :  { %vm175_vm7 = vmor %vm173_vm6, %vm174_vm5 }
 0x121   :  { %v169_v40 = vmul.f32 %v465_v37, %v168_v39  ;;  %v166_v41 = vsel %vm165_vm4, %v463_v31, %v162_v38 }
 0x122   :  { %v177_v44 = vmul.f32 %v166_v41, %v143_v14 }
 0x123   :  { %v170_v42 = vmul.f32 0.5, %v169_v40 }
 0x124   :  { %v183_v49 = vmul.f32 %v454_v45, %v177_v44 }
 0x125   :  { %v171_v43 = vsub.f32 1.5, %v170_v42 }
 0x126   :  { %v189_v52 = vadd.f32 %v455_v50, %v183_v49 }
 0x127   :  { %v172_v46 = vmul.f32 %v465_v37, %v171_v43 }
 0x129   :  { %v176_v47 = vsel %vm175_vm7, %v465_v37, %v172_v46 }
 0x12a   :  { %v178_v48 = vmul.f32 %v176_v47, %v144_v19 }
 0x12c   :  { %v184_v51 = vmul.f32 %v454_v45, %v178_v48 }
 0x12e   :  { %v190_v53 = vadd.f32 %v455_v50, %v184_v51 }
 0x130   :  { %v191_v54 = vpack.c.bf16 %v190_v53, %v189_v52 }
 0x132   :  { %405 = vmatmul.msk.bf16.vlgmr.msra.gmra.mxu0 %vm127_vm0, %v191_v54  ;;  %414 = vmatmul.msk.bf16.vlgmr.msra.gmra.mxu1 %vm127_vm0, %v191_v54 }
 0x1af   :  { %v224_v58 = vpop.f32.mrf.mxu0  ;;  %v260_v59 = vpop.f32.mrf.mxu1 }
 0x1b0   :  { %v225_v60 = vadd.f32 %v456_v57, %v224_v58  ;;  %v261_v62 = vadd.f32 %v457_v61, %v260_v59 }
 0x1b2   :  { %229 = vst [vmem:[%s774_s11] sm:$0xff] %v225_v60  ;;  %v265_v3 = vmax.f32 %v261_v62, 0.0 }
 0x1b7   :  { %v226_v63 = vpop.f32.mrf.mxu0  ;;  %v262_v0 = vpop.f32.mrf.mxu1 }
 0x1b8   :  { %v227_v1 = vadd.f32 %v456_v57, %v226_v63  ;;  %v263_v2 = vadd.f32 %v457_v61, %v262_v0 }
 0x1ba   :  { %230 = vst [vmem:[%s774_s11 + $0x8] sm:$0xff] %v227_v1  ;;  %v266_v4 = vmax.f32 %v263_v2, 0.0 }
 0x1bc   :  { %v267_v5 = vpack.c.bf16 %v266_v4, %v265_v3 }
 0x1be   :  { %423 = vmatmul.msk.bf16.vlgmr.msra.gmra.mxu2 %vm127_vm0, %v267_v5 }
 0x241   :  { %v300_v8 = vpop.f32.mrf.mxu2 }
 0x242   :  { %v301_v10 = vadd.f32 %v458_v9, %v300_v8 }
 0x244   :  { %v305_v13 = vmax.f32 %v301_v10, 0.0 }
 0x249   :  { %v302_v11 = vpop.f32.mrf.mxu2 }
 0x24a   :  { %v303_v12 = vadd.f32 %v458_v9, %v302_v11 }
 0x24c   :  { %v306_v14 = vmax.f32 %v303_v12, 0.0 }
 0x24e   :  { %v307_v15 = vpack.c.bf16 %v306_v14, %v305_v13 }
 0x250   :  { %432 = vmatmul.msk.bf16.vlgmr.msra.gmra.mxu3 %vm127_vm0, %v307_v15 }
 0x2d3   :  { %v340_v17 = vpop.f32.mrf.mxu3 }
 0x2d4   :  { %v341_v18 = vadd.f32 %v459_v16, %v340_v17 }
 0x2d6   :  { %v433_v19 = vmul.f32 -1.442695, %v341_v18 }
 0x2d8   :  { %466 = vpow2.f32 %v433_v19 }
 0x2db   :  { %v342_v20 = vpop.f32.mrf.mxu3 }
 0x2dc   :  { %v343_v21 = vadd.f32 %v459_v16, %v342_v20 }
 0x2de   :  { %v467_v22 = vpop.eup %466  ;;  %v434_v23 = vmul.f32 -1.442695, %v343_v21 }
 0x2df   :  { %v351_v24 = vadd.f32 1.0, %v467_v22 }
 0x2e0   :  { %468 = vpow2.f32 %v434_v23 }
 0x2e1   :  { %470 = vrcp.f32 %v351_v24  ;;  %v364_v30 = vand.u32 2147483648, %v351_v24  ;;  %v362_v32 = vand.u32 2147483647, %v351_v24  ;;  %vm358_vm9 = vweird.f32 %v351_v24 }
 0x2e3   :  { %v365_v35 = vor.u32 1.1754944e-38, %v364_v30  ;;  %vm363_vm11 = vcmp.eq.f32.partialorder %v362_v32, 8.507059e+37 }
 0x2e6   :  { %v469_v25 = vpop.eup %468 }
 0x2e7   :  { %v471_v26 = vpop.eup %470  ;;  %v352_v27 = vadd.f32 1.0, %v469_v25 }
 0x2e8   :  { %v354_v28 = vmul.f32 %v471_v26, %v351_v24  ;;  %vm359_vm8 = vweird.f32 %v471_v26 }
 0x2e9   :  { %472 = vrcp.f32 %v352_v27  ;;  %vm360_vm10 = vmor %vm358_vm9, %vm359_vm8  ;;  %v379_v40 = vand.u32 2147483648, %v352_v27  ;;  %v377_v42 = vand.u32 2147483647, %v352_v27  ;;  %vm373_vm13 = vweird.f32 %v352_v27 }
 0x2ea   :  { %v355_v29 = vsub.f32 1.0, %v354_v28 }
 0x2eb   :  { %v380_v44 = vor.u32 1.1754944e-38, %v379_v40  ;;  %vm378_vm15 = vcmp.eq.f32.partialorder %v377_v42, 8.507059e+37 }
 0x2ec   :  { %v356_v31 = vmul.f32 %v471_v26, %v355_v29 }
 0x2ee   :  { %v357_v33 = vadd.f32 %v471_v26, %v356_v31 }
 0x2ef   :  { %v473_v34 = vpop.eup %472 }
 0x2f0   :  { %v361_v36 = vsel %vm360_vm10, %v471_v26, %v357_v33  ;;  %v369_v37 = vmul.f32 %v473_v34, %v352_v27  ;;  %vm374_vm12 = vweird.f32 %v473_v34 }
 0x2f1   :  { %v366_v38 = vsel %vm363_vm11, %v365_v35, %v361_v36  ;;  %vm375_vm14 = vmor %vm373_vm13, %vm374_vm12 }
 0x2f2   :  { %383 = vst [vmem:[%s775_s12] sm:$0xff] %v366_v38  ;;  %v370_v39 = vsub.f32 1.0, %v369_v37 }
 0x2f4   :  { %v371_v41 = vmul.f32 %v473_v34, %v370_v39 }
 0x2f6   :  { %v372_v43 = vadd.f32 %v473_v34, %v371_v41 }
 0x2f8   :  { %v376_v45 = vsel %vm375_vm14, %v473_v34, %v372_v43 }
 0x2f9   :  { %v381_v46 = vsel %vm378_vm15, %v380_v44, %v376_v45 }
 0x2fa   :  { %384 = vst [vmem:[%s775_s12 + $0x8] sm:$0xff] %v381_v46 }
 0x2fb   :  { %393 = vsyncpa [#allocation3], 1 }
 0x2fc   :  { %394 = vsyncpa [#allocation5], 1 }
 0x2fd   :  { %395 = vsyncpa [#allocation8], 1 }
 0x2fe   :  { %396 = vsyncpa [#allocation11], 1 }

</bundles_post_ra>
